<compile_context>
chip_gen: v5e
topology: v5e:2x2
jax: 0.10.0
libtpu: 0.0.40
codegen_flags: <defaults>
</compile_context>

<pallas_src>
import jax
import jax.numpy as jnp
from jax import lax
from jax.experimental import pallas as pl
from jax.experimental.pallas import tpu as pltpu


def _round_up(x, m):
    return (x + m - 1) // m * m


def _pad_gate_weights(w, H, Hp):
    """(L, 4H, H) PyTorch LSTM weight -> (L, Hp, 4*Hp), pre-transposed for
    x @ W, with each (i, f, g, o) gate block at a 128-aligned lane offset and
    all padded rows/cols zero (padded hidden units then stay exactly 0)."""
    L = w.shape[0]
    w = w.reshape(L, 4, H, H)              # (L, gate, out, in)
    w = jnp.transpose(w, (0, 3, 1, 2))     # (L, in, gate, out)
    wp = jnp.zeros((L, Hp, 4, Hp), w.dtype).at[:, :H, :, :H].set(w)
    return wp.reshape(L, Hp, 4 * Hp)


def _pad_gate_bias(b, H, Hp):
    """(L, 4H) -> (L, 1, 4*Hp) with gate blocks at 128-aligned offsets."""
    L = b.shape[0]
    b = b.reshape(L, 4, H)
    bp = jnp.zeros((L, 4, Hp), b.dtype).at[:, :, :H].set(b)
    return bp.reshape(L, 4 * Hp)[:, None, :]


def _lstm_kernel(x_ref, len_ref, wih_ref, whh_ref, b_ref, out_ref,
                 seq_ref, gx_ref):
    Bp = len_ref.shape[0]                  # sublane-padded batch
    TB, Hp = x_ref.shape                   # (T*Bp, lane-padded hidden)
    T = TB // Bp
    n_layers = wih_ref.shape[0]

    zeros = jnp.zeros((Bp, Hp), jnp.float32)
    h = zeros

    for layer in range(n_layers):          # static unroll over layers
        src_ref = x_ref if layer == 0 else seq_ref

        # Hoisted input projection: single big matmul off the serial chain.
        # bf16 operands, f32 accumulation; bias folded in here (not per step).
        xs = src_ref[...].astype(jnp.bfloat16)            # (T*Bp, Hp)
        gx_ref[...] = (jnp.dot(xs, wih_ref[layer],
                               preferred_element_type=jnp.float32)
                       + b_ref[layer])                    # (T*Bp, 4Hp) f32

        write_next = layer < n_layers - 1

        def step(t, carry, _layer=layer, _write=write_next):
            h, c = carry
            row = pl.multiple_of(t * Bp, Bp)              # tile-aligned offset
            # Only the true recurrent dependency stays in the loop.
            gates = (jnp.dot(h.astype(jnp.bfloat16), whh_ref[_layer],
                             preferred_element_type=jnp.float32)
                     + gx_ref[pl.ds(row, Bp), :])         # (Bp, 4Hp)
            # Gate slices are 128-lane aligned (Hp is a multiple of 128).
            i_g = jax.nn.sigmoid(gates[:, 0:Hp])
            f_g = jax.nn.sigmoid(gates[:, Hp:2 * Hp])
            g_g = jnp.tanh(gates[:, 2 * Hp:3 * Hp])
            o_g = jax.nn.sigmoid(gates[:, 3 * Hp:4 * Hp])
            c_new = f_g * c + i_g * g_g
            h_new = o_g * jnp.tanh(c_new)
            # packed-sequence semantics: freeze (h, c) once t >= length.
            m = len_ref[...] > t                          # (Bp, 1)
            h = jnp.where(m, h_new, h)
            c = jnp.where(m, c_new, c)
            if _write:                                    # next layer's input
                seq_ref[pl.ds(row, Bp), :] = h
            return h, c

        # T is small & static: fully unroll the recurrence.
        h, c = lax.fori_loop(0, T, step, (zeros, zeros), unroll=True)

    out_ref[...] = h                                      # hidden[-1], (Bp, Hp)


def sentiment_lstm_forward(params, input_ids, attention_mask, tfidf_vector):
    emb = params["embedding"]                             # (V, H)
    H = emb.shape[1]
    B, T = input_ids.shape
    Hp = _round_up(H, 128)                                # lane-align hidden
    Bp = _round_up(B, 8)                                  # sublane-align batch

    # Embedding gather + layout prep in plain JAX (cheap; XLA handles it).
    x = emb[input_ids].astype(jnp.float32)                # (B, T, H)
    x = jnp.transpose(x, (1, 0, 2))                       # (T, B, H) time-major
    x = jnp.pad(x, ((0, 0), (0, Bp - B), (0, Hp - H)))
    x = x.reshape(T * Bp, Hp).astype(jnp.bfloat16)        # matmul operand only

    lengths = jnp.sum(attention_mask, axis=1).astype(jnp.int32)
    lengths = jnp.pad(lengths, (0, Bp - B))[:, None]      # (Bp, 1); pads len=0

    w_ih = _pad_gate_weights(params["w_ih"], H, Hp).astype(jnp.bfloat16)
    w_hh = _pad_gate_weights(params["w_hh"], H, Hp).astype(jnp.bfloat16)
    b = _pad_gate_bias((params["b_ih"] + params["b_hh"]).astype(jnp.float32),
                       H, Hp)                             # (L, 1, 4Hp) f32

    h_last = pl.pallas_call(
        _lstm_kernel,
        out_shape=jax.ShapeDtypeStruct((Bp, Hp), jnp.float32),
        in_specs=[pl.BlockSpec(memory_space=pltpu.MemorySpace.VMEM)] * 5,
        out_specs=pl.BlockSpec(memory_space=pltpu.MemorySpace.VMEM),
        scratch_shapes=[
            pltpu.VMEM((T * Bp, Hp), jnp.float32),        # layer-io sequence
            pltpu.VMEM((T * Bp, 4 * Hp), jnp.float32),    # hoisted input gates
        ],
    )(x, lengths, w_ih, w_hh, b)

    # Final fc(concat(hidden[-1], tfidf)): tiny (B, 4) output -> leave to XLA
    # (per perf review: avoids 4-lane masked stores in the kernel epilogue).
    h_last = h_last[:B, :H]
    combined = jnp.concatenate(
        [h_last, tfidf_vector.astype(jnp.float32)], axis=1)
    return combined @ params["w_fc"].T + params["b_fc"]


def reference_forward(params, input_ids, attention_mask, tfidf_vector):
    """Pure-JAX f32 reference replicating PyTorch packed-LSTM semantics."""
    emb = params["embedding"]
    x = emb[input_ids].astype(jnp.float32)                # (B, T, H)
    B, T, H = x.shape
    L = params["w_ih"].shape[0]
    lengths = jnp.sum(attention_mask, axis=1)
    seq = x
    h = None
    for l in range(L):
        w_ih, w_hh = params["w_ih"][l], params["w_hh"][l]
        b = params["b_ih"][l] + params["b_hh"][l]
        h = jnp.zeros((B, H), jnp.float32)
        c = jnp.zeros((B, H), jnp.float32)
        outs = []
        for t in range(T):
            gates = seq[:, t, :] @ w_ih.T + h @ w_hh.T + b
            i = jax.nn.sigmoid(gates[:, :H])
            f = jax.nn.sigmoid(gates[:, H:2 * H])
            g = jnp.tanh(gates[:, 2 * H:3 * H])
            o = jax.nn.sigmoid(gates[:, 3 * H:])
            c_new = f * c + i * g
            h_new = o * jnp.tanh(c_new)
            m = (t < lengths)[:, None]
            h = jnp.where(m, h_new, h)
            c = jnp.where(m, c_new, c)
            outs.append(h)
        seq = jnp.stack(outs, axis=1)
    combined = jnp.concatenate([h, tfidf_vector.astype(jnp.float32)], axis=1)
    return combined @ params["w_fc"].T + params["b_fc"]


if __name__ == "__main__":
    V, H, O, L = 50, 32, 4, 2      # vocab, hidden_dim, output_dim, n_layers
    B, T, TFIDF = 2, 8, 100        # batch, seq_len, tfidf feature dim (fixed by fc)

    key = jax.random.PRNGKey(0)
    ks = jax.random.split(key, 9)
    k = 1.0 / jnp.sqrt(jnp.float32(H))
    params = {
        "embedding": jax.random.normal(ks[0], (V, H), jnp.float32),
        "w_ih": jax.random.uniform(ks[1], (L, 4 * H, H), jnp.float32, -k, k),
        "w_hh": jax.random.uniform(ks[2], (L, 4 * H, H), jnp.float32, -k, k),
        "b_ih": jax.random.uniform(ks[3], (L, 4 * H), jnp.float32, -k, k),
        "b_hh": jax.random.uniform(ks[4], (L, 4 * H), jnp.float32, -k, k),
        "w_fc": jax.random.uniform(ks[5], (O, H + TFIDF), jnp.float32, -k, k),
        "b_fc": jax.random.uniform(ks[6], (O,), jnp.float32, -k, k),
    }

    input_ids = jax.random.randint(ks[7], (B, T), 0, V)
    seq_lens = jnp.array([T, 5], dtype=jnp.int32)
    attention_mask = (jnp.arange(T)[None, :] < seq_lens[:, None]).astype(jnp.int32)
    tfidf = jax.random.normal(ks[8], (B, TFIDF), jnp.float32)

    out = sentiment_lstm_forward(params, input_ids, attention_mask, tfidf)
    out = jax.block_until_ready(out)

    ref = reference_forward(params, input_ids, attention_mask, tfidf)
    assert out.shape == (B, O)
    assert bool(jnp.all(jnp.isfinite(out)))
    # bf16 MXU operands (f32 accumulation / f32 state) vs. the f32 reference:
    # tolerance loosened accordingly.
    assert bool(jnp.allclose(out, ref, rtol=5e-2, atol=1e-1)), (out, ref)
    print("KERNEL_OK")
</pallas_src>

<mosaic_0001>
module attributes {stable_mosaic.version = 11 : i64} {
  func.func @_lstm_kernel(%arg0: memref<64x128xbf16, #tpu.memory_space<vmem>>, %arg1: memref<8x1xi32, #tpu.memory_space<vmem>>, %arg2: memref<2x128x512xbf16, #tpu.memory_space<vmem>>, %arg3: memref<2x128x512xbf16, #tpu.memory_space<vmem>>, %arg4: memref<2x1x512xf32, #tpu.memory_space<vmem>>, %arg5: memref<8x128xf32, #tpu.memory_space<vmem>>, %arg6: memref<64x128xf32, #tpu.memory_space<vmem>>, %arg7: memref<64x512xf32, #tpu.memory_space<vmem>>) attributes {dimension_semantics = [], scalar_prefetch = 0 : i64, scratch_operands = 2 : i64, tpu.core_type = #tpu.core_type<tc>} {
    %cst = arith.constant 0.000000e+00 : f32
    %0 = vector.broadcast %cst : f32 to vector<8x128xf32>
    %c0 = arith.constant 0 : index
    %c0_0 = arith.constant 0 : index
    %1 = vector.load %arg0[%c0, %c0_0] : memref<64x128xbf16, #tpu.memory_space<vmem>>, vector<64x128xbf16>
    %c0_1 = arith.constant 0 : index
    %c0_2 = arith.constant 0 : index
    %c0_3 = arith.constant 0 : index
    %2 = vector.load %arg2[%c0_1, %c0_2, %c0_3] : memref<2x128x512xbf16, #tpu.memory_space<vmem>>, vector<1x128x512xbf16>
    %3 = vector.shape_cast %2 : vector<1x128x512xbf16> to vector<128x512xbf16>
    %cst_4 = arith.constant dense<0.000000e+00> : vector<64x512xf32>
    %4 = tpu.matmul %1, %3, %cst_4 {dimension_numbers = #tpu.dot_dimension_numbers<[1], [0], [0], [1], [0, 0, 1, 1], [], []>} : vector<64x128xbf16>, vector<128x512xbf16>, vector<64x512xf32> -> vector<64x512xf32>
    %c0_5 = arith.constant 0 : index
    %c0_6 = arith.constant 0 : index
    %c0_7 = arith.constant 0 : index
    %5 = vector.load %arg4[%c0_5, %c0_6, %c0_7] : memref<2x1x512xf32, #tpu.memory_space<vmem>>, vector<1x1x512xf32>
    %6 = vector.shape_cast %5 : vector<1x1x512xf32> to vector<1x512xf32>
    %7 = vector.broadcast %6 : vector<1x512xf32> to vector<64x512xf32>
    %8 = arith.addf %4, %7 : vector<64x512xf32>
    %c0_8 = arith.constant 0 : index
    %c0_9 = arith.constant 0 : index
    %9 = vector.load %arg7[%c0_8, %c0_9] : memref<64x512xf32, #tpu.memory_space<vmem>>, vector<64x512xf32>
    tpu.vector_store %arg7[%c0_8, %c0_9], %8 {strides = array<i32>} : memref<64x512xf32, #tpu.memory_space<vmem>>, vector<64x512xf32>,
    %c0_i32 = arith.constant 0 : i32
    %c8_i32 = arith.constant 8 : i32
    %10 = arith.muli %c0_i32, %c8_i32 : i32
    %11 = tpu.assume_multiple %10, 8 : i32
    %12 = arith.truncf %0 : vector<8x128xf32> to vector<8x128xbf16>
    %c0_10 = arith.constant 0 : index
    %c0_11 = arith.constant 0 : index
    %c0_12 = arith.constant 0 : index
    %13 = vector.load %arg3[%c0_10, %c0_11, %c0_12] : memref<2x128x512xbf16, #tpu.memory_space<vmem>>, vector<1x128x512xbf16>
    %14 = vector.shape_cast %13 : vector<1x128x512xbf16> to vector<128x512xbf16>
    %cst_13 = arith.constant dense<0.000000e+00> : vector<8x512xf32>
    %15 = tpu.matmul %12, %14, %cst_13 {dimension_numbers = #tpu.dot_dimension_numbers<[1], [0], [0], [1], [0, 0, 1, 1], [], []>} : vector<8x128xbf16>, vector<128x512xbf16>, vector<8x512xf32> -> vector<8x512xf32>
    %16 = arith.index_cast %11 : i32 to index
    %c0_14 = arith.constant 0 : index
    %17 = vector.load %arg7[%16, %c0_14] : memref<64x512xf32, #tpu.memory_space<vmem>>, vector<8x512xf32>
    %18 = arith.addf %15, %17 : vector<8x512xf32>
    %19 = vector.extract_strided_slice %18 {offsets = [0, 0], sizes = [8, 128], strides = [1, 1]} : vector<8x512xf32> to vector<8x128xf32>
    %20 = arith.negf %19 : vector<8x128xf32>
    %21 = math.exp %20 : vector<8x128xf32>
    %cst_15 = arith.constant 1.000000e+00 : f32
    %22 = vector.broadcast %cst_15 : f32 to vector<8x128xf32>
    %23 = arith.addf %22, %21 : vector<8x128xf32>
    %24 = arith.divf %22, %23 : vector<8x128xf32>
    %25 = vector.extract_strided_slice %18 {offsets = [0, 128], sizes = [8, 128], strides = [1, 1]} : vector<8x512xf32> to vector<8x128xf32>
    %26 = arith.negf %25 : vector<8x128xf32>
    %27 = math.exp %26 : vector<8x128xf32>
    %cst_16 = arith.constant 1.000000e+00 : f32
    %28 = vector.broadcast %cst_16 : f32 to vector<8x128xf32>
    %29 = arith.addf %28, %27 : vector<8x128xf32>
    %30 = arith.divf %28, %29 : vector<8x128xf32>
    %31 = vector.extract_strided_slice %18 {offsets = [0, 256], sizes = [8, 128], strides = [1, 1]} : vector<8x512xf32> to vector<8x128xf32>
    %32 = math.tanh %31 : vector<8x128xf32>
    %33 = vector.extract_strided_slice %18 {offsets = [0, 384], sizes = [8, 128], strides = [1, 1]} : vector<8x512xf32> to vector<8x128xf32>
    %34 = arith.negf %33 : vector<8x128xf32>
    %35 = math.exp %34 : vector<8x128xf32>
    %cst_17 = arith.constant 1.000000e+00 : f32
    %36 = vector.broadcast %cst_17 : f32 to vector<8x128xf32>
    %37 = arith.addf %36, %35 : vector<8x128xf32>
    %38 = arith.divf %36, %37 : vector<8x128xf32>
    %39 = arith.mulf %30, %0 : vector<8x128xf32>
    %40 = arith.mulf %24, %32 : vector<8x128xf32>
    %41 = arith.addf %39, %40 : vector<8x128xf32>
    %42 = math.tanh %41 : vector<8x128xf32>
    %43 = arith.mulf %38, %42 : vector<8x128xf32>
    %c0_18 = arith.constant 0 : index
    %c0_19 = arith.constant 0 : index
    %44 = vector.load %arg1[%c0_18, %c0_19] : memref<8x1xi32, #tpu.memory_space<vmem>>, vector<8x1xi32>
    %45 = vector.broadcast %c0_i32 : i32 to vector<8x1xi32>
    %46 = arith.cmpi sgt, %44, %45 : vector<8x1xi32>
    %47 = vector.shape_cast %46 : vector<8x1xi1> to vector<8x1xi1>
    %48 = vector.broadcast %47 : vector<8x1xi1> to vector<8x128xi1>
    %49 = arith.select %48, %43, %0 : vector<8x128xi1>, vector<8x128xf32>
    %50 = vector.shape_cast %46 : vector<8x1xi1> to vector<8x1xi1>
    %51 = vector.broadcast %50 : vector<8x1xi1> to vector<8x128xi1>
    %52 = arith.select %51, %41, %0 : vector<8x128xi1>, vector<8x128xf32>
    %53 = arith.index_cast %11 : i32 to index
    %c0_20 = arith.constant 0 : index
    %54 = vector.load %arg6[%53, %c0_20] : memref<64x128xf32, #tpu.memory_space<vmem>>, vector<8x128xf32>
    tpu.vector_store %arg6[%53, %c0_20], %49 {strides = array<i32>} : memref<64x128xf32, #tpu.memory_space<vmem>>, vector<8x128xf32>,
    %c1_i32 = arith.constant 1 : i32
    %c8_i32_21 = arith.constant 8 : i32
    %55 = arith.muli %c1_i32, %c8_i32_21 : i32
    %56 = tpu.assume_multiple %55, 8 : i32
    %57 = arith.truncf %49 : vector<8x128xf32> to vector<8x128xbf16>
    %c0_22 = arith.constant 0 : index
    %c0_23 = arith.constant 0 : index
    %c0_24 = arith.constant 0 : index
    %58 = vector.load %arg3[%c0_22, %c0_23, %c0_24] : memref<2x128x512xbf16, #tpu.memory_space<vmem>>, vector<1x128x512xbf16>
    %59 = vector.shape_cast %58 : vector<1x128x512xbf16> to vector<128x512xbf16>
    %cst_25 = arith.constant dense<0.000000e+00> : vector<8x512xf32>
    %60 = tpu.matmul %57, %59, %cst_25 {dimension_numbers = #tpu.dot_dimension_numbers<[1], [0], [0], [1], [0, 0, 1, 1], [], []>} : vector<8x128xbf16>, vector<128x512xbf16>, vector<8x512xf32> -> vector<8x512xf32>
    %61 = arith.index_cast %56 : i32 to index
    %c0_26 = arith.constant 0 : index
    %62 = vector.load %arg7[%61, %c0_26] : memref<64x512xf32, #tpu.memory_space<vmem>>, vector<8x512xf32>
    %63 = arith.addf %60, %62 : vector<8x512xf32>
    %64 = vector.extract_strided_slice %63 {offsets = [0, 0], sizes = [8, 128], strides = [1, 1]} : vector<8x512xf32> to vector<8x128xf32>
    %65 = arith.negf %64 : vector<8x128xf32>
    %66 = math.exp %65 : vector<8x128xf32>
    %cst_27 = arith.constant 1.000000e+00 : f32
    %67 = vector.broadcast %cst_27 : f32 to vector<8x128xf32>
    %68 = arith.addf %67, %66 : vector<8x128xf32>
    %69 = arith.divf %67, %68 : vector<8x128xf32>
    %70 = vector.extract_strided_slice %63 {offsets = [0, 128], sizes = [8, 128], strides = [1, 1]} : vector<8x512xf32> to vector<8x128xf32>
    %71 = arith.negf %70 : vector<8x128xf32>
    %72 = math.exp %71 : vector<8x128xf32>
    %cst_28 = arith.constant 1.000000e+00 : f32
    %73 = vector.broadcast %cst_28 : f32 to vector<8x128xf32>
    %74 = arith.addf %73, %72 : vector<8x128xf32>
    %75 = arith.divf %73, %74 : vector<8x128xf32>
    %76 = vector.extract_strided_slice %63 {offsets = [0, 256], sizes = [8, 128], strides = [1, 1]} : vector<8x512xf32> to vector<8x128xf32>
    %77 = math.tanh %76 : vector<8x128xf32>
    %78 = vector.extract_strided_slice %63 {offsets = [0, 384], sizes = [8, 128], strides = [1, 1]} : vector<8x512xf32> to vector<8x128xf32>
    %79 = arith.negf %78 : vector<8x128xf32>
    %80 = math.exp %79 : vector<8x128xf32>
    %cst_29 = arith.constant 1.000000e+00 : f32
    %81 = vector.broadcast %cst_29 : f32 to vector<8x128xf32>
    %82 = arith.addf %81, %80 : vector<8x128xf32>
    %83 = arith.divf %81, %82 : vector<8x128xf32>
    %84 = arith.mulf %75, %52 : vector<8x128xf32>
    %85 = arith.mulf %69, %77 : vector<8x128xf32>
    %86 = arith.addf %84, %85 : vector<8x128xf32>
    %87 = math.tanh %86 : vector<8x128xf32>
    %88 = arith.mulf %83, %87 : vector<8x128xf32>
    %c0_30 = arith.constant 0 : index
    %c0_31 = arith.constant 0 : index
    %89 = vector.load %arg1[%c0_30, %c0_31] : memref<8x1xi32, #tpu.memory_space<vmem>>, vector<8x1xi32>
    %90 = vector.broadcast %c1_i32 : i32 to vector<8x1xi32>
    %91 = arith.cmpi sgt, %89, %90 : vector<8x1xi32>
    %92 = vector.shape_cast %91 : vector<8x1xi1> to vector<8x1xi1>
    %93 = vector.broadcast %92 : vector<8x1xi1> to vector<8x128xi1>
    %94 = arith.select %93, %88, %49 : vector<8x128xi1>, vector<8x128xf32>
    %95 = vector.shape_cast %91 : vector<8x1xi1> to vector<8x1xi1>
    %96 = vector.broadcast %95 : vector<8x1xi1> to vector<8x128xi1>
    %97 = arith.select %96, %86, %52 : vector<8x128xi1>, vector<8x128xf32>
    %98 = arith.index_cast %56 : i32 to index
    %c0_32 = arith.constant 0 : index
    %99 = vector.load %arg6[%98, %c0_32] : memref<64x128xf32, #tpu.memory_space<vmem>>, vector<8x128xf32>
    tpu.vector_store %arg6[%98, %c0_32], %94 {strides = array<i32>} : memref<64x128xf32, #tpu.memory_space<vmem>>, vector<8x128xf32>,
    %c2_i32 = arith.constant 2 : i32
    %c8_i32_33 = arith.constant 8 : i32
    %100 = arith.muli %c2_i32, %c8_i32_33 : i32
    %101 = tpu.assume_multiple %100, 8 : i32
    %102 = arith.truncf %94 : vector<8x128xf32> to vector<8x128xbf16>
    %c0_34 = arith.constant 0 : index
    %c0_35 = arith.constant 0 : index
    %c0_36 = arith.constant 0 : index
    %103 = vector.load %arg3[%c0_34, %c0_35, %c0_36] : memref<2x128x512xbf16, #tpu.memory_space<vmem>>, vector<1x128x512xbf16>
    %104 = vector.shape_cast %103 : vector<1x128x512xbf16> to vector<128x512xbf16>
    %cst_37 = arith.constant dense<0.000000e+00> : vector<8x512xf32>
    %105 = tpu.matmul %102, %104, %cst_37 {dimension_numbers = #tpu.dot_dimension_numbers<[1], [0], [0], [1], [0, 0, 1, 1], [], []>} : vector<8x128xbf16>, vector<128x512xbf16>, vector<8x512xf32> -> vector<8x512xf32>
    %106 = arith.index_cast %101 : i32 to index
    %c0_38 = arith.constant 0 : index
    %107 = vector.load %arg7[%106, %c0_38] : memref<64x512xf32, #tpu.memory_space<vmem>>, vector<8x512xf32>
    %108 = arith.addf %105, %107 : vector<8x512xf32>
    %109 = vector.extract_strided_slice %108 {offsets = [0, 0], sizes = [8, 128], strides = [1, 1]} : vector<8x512xf32> to vector<8x128xf32>
    %110 = arith.negf %109 : vector<8x128xf32>
    %111 = math.exp %110 : vector<8x128xf32>
    %cst_39 = arith.constant 1.000000e+00 : f32
    %112 = vector.broadcast %cst_39 : f32 to vector<8x128xf32>
    %113 = arith.addf %112, %111 : vector<8x128xf32>
    %114 = arith.divf %112, %113 : vector<8x128xf32>
    %115 = vector.extract_strided_slice %108 {offsets = [0, 128], sizes = [8, 128], strides = [1, 1]} : vector<8x512xf32> to vector<8x128xf32>
    %116 = arith.negf %115 : vector<8x128xf32>
    %117 = math.exp %116 : vector<8x128xf32>
    %cst_40 = arith.constant 1.000000e+00 : f32
    %118 = vector.broadcast %cst_40 : f32 to vector<8x128xf32>
    %119 = arith.addf %118, %117 : vector<8x128xf32>
    %120 = arith.divf %118, %119 : vector<8x128xf32>
    %121 = vector.extract_strided_slice %108 {offsets = [0, 256], sizes = [8, 128], strides = [1, 1]} : vector<8x512xf32> to vector<8x128xf32>
    %122 = math.tanh %121 : vector<8x128xf32>
    %123 = vector.extract_strided_slice %108 {offsets = [0, 384], sizes = [8, 128], strides = [1, 1]} : vector<8x512xf32> to vector<8x128xf32>
    %124 = arith.negf %123 : vector<8x128xf32>
    %125 = math.exp %124 : vector<8x128xf32>
    %cst_41 = arith.constant 1.000000e+00 : f32
    %126 = vector.broadcast %cst_41 : f32 to vector<8x128xf32>
    %127 = arith.addf %126, %125 : vector<8x128xf32>
    %128 = arith.divf %126, %127 : vector<8x128xf32>
    %129 = arith.mulf %120, %97 : vector<8x128xf32>
    %130 = arith.mulf %114, %122 : vector<8x128xf32>
    %131 = arith.addf %129, %130 : vector<8x128xf32>
    %132 = math.tanh %131 : vector<8x128xf32>
    %133 = arith.mulf %128, %132 : vector<8x128xf32>
    %c0_42 = arith.constant 0 : index
    %c0_43 = arith.constant 0 : index
    %134 = vector.load %arg1[%c0_42, %c0_43] : memref<8x1xi32, #tpu.memory_space<vmem>>, vector<8x1xi32>
    %135 = vector.broadcast %c2_i32 : i32 to vector<8x1xi32>
    %136 = arith.cmpi sgt, %134, %135 : vector<8x1xi32>
    %137 = vector.shape_cast %136 : vector<8x1xi1> to vector<8x1xi1>
    %138 = vector.broadcast %137 : vector<8x1xi1> to vector<8x128xi1>
    %139 = arith.select %138, %133, %94 : vector<8x128xi1>, vector<8x128xf32>
    %140 = vector.shape_cast %136 : vector<8x1xi1> to vector<8x1xi1>
    %141 = vector.broadcast %140 : vector<8x1xi1> to vector<8x128xi1>
    %142 = arith.select %141, %131, %97 : vector<8x128xi1>, vector<8x128xf32>
    %143 = arith.index_cast %101 : i32 to index
    %c0_44 = arith.constant 0 : index
    %144 = vector.load %arg6[%143, %c0_44] : memref<64x128xf32, #tpu.memory_space<vmem>>, vector<8x128xf32>
    tpu.vector_store %arg6[%143, %c0_44], %139 {strides = array<i32>} : memref<64x128xf32, #tpu.memory_space<vmem>>, vector<8x128xf32>,
    %c3_i32 = arith.constant 3 : i32
    %c8_i32_45 = arith.constant 8 : i32
    %145 = arith.muli %c3_i32, %c8_i32_45 : i32
    %146 = tpu.assume_multiple %145, 8 : i32
    %147 = arith.truncf %139 : vector<8x128xf32> to vector<8x128xbf16>
    %c0_46 = arith.constant 0 : index
    %c0_47 = arith.constant 0 : index
    %c0_48 = arith.constant 0 : index
    %148 = vector.load %arg3[%c0_46, %c0_47, %c0_48] : memref<2x128x512xbf16, #tpu.memory_space<vmem>>, vector<1x128x512xbf16>
    %149 = vector.shape_cast %148 : vector<1x128x512xbf16> to vector<128x512xbf16>
    %cst_49 = arith.constant dense<0.000000e+00> : vector<8x512xf32>
    %150 = tpu.matmul %147, %149, %cst_49 {dimension_numbers = #tpu.dot_dimension_numbers<[1], [0], [0], [1], [0, 0, 1, 1], [], []>} : vector<8x128xbf16>, vector<128x512xbf16>, vector<8x512xf32> -> vector<8x512xf32>
    %151 = arith.index_cast %146 : i32 to index
    %c0_50 = arith.constant 0 : index
    %152 = vector.load %arg7[%151, %c0_50] : memref<64x512xf32, #tpu.memory_space<vmem>>, vector<8x512xf32>
    %153 = arith.addf %150, %152 : vector<8x512xf32>
    %154 = vector.extract_strided_slice %153 {offsets = [0, 0], sizes = [8, 128], strides = [1, 1]} : vector<8x512xf32> to vector<8x128xf32>
    %155 = arith.negf %154 : vector<8x128xf32>
    %156 = math.exp %155 : vector<8x128xf32>
    %cst_51 = arith.constant 1.000000e+00 : f32
    %157 = vector.broadcast %cst_51 : f32 to vector<8x128xf32>
    %158 = arith.addf %157, %156 : vector<8x128xf32>
    %159 = arith.divf %157, %158 : vector<8x128xf32>
    %160 = vector.extract_strided_slice %153 {offsets = [0, 128], sizes = [8, 128], strides = [1, 1]} : vector<8x512xf32> to vector<8x128xf32>
    %161 = arith.negf %160 : vector<8x128xf32>
    %162 = math.exp %161 : vector<8x128xf32>
    %cst_52 = arith.constant 1.000000e+00 : f32
    %163 = vector.broadcast %cst_52 : f32 to vector<8x128xf32>
    %164 = arith.addf %163, %162 : vector<8x128xf32>
    %165 = arith.divf %163, %164 : vector<8x128xf32>
    %166 = vector.extract_strided_slice %153 {offsets = [0, 256], sizes = [8, 128], strides = [1, 1]} : vector<8x512xf32> to vector<8x128xf32>
    %167 = math.tanh %166 : vector<8x128xf32>
    %168 = vector.extract_strided_slice %153 {offsets = [0, 384], sizes = [8, 128], strides = [1, 1]} : vector<8x512xf32> to vector<8x128xf32>
    %169 = arith.negf %168 : vector<8x128xf32>
    %170 = math.exp %169 : vector<8x128xf32>
    %cst_53 = arith.constant 1.000000e+00 : f32
    %171 = vector.broadcast %cst_53 : f32 to vector<8x128xf32>
    %172 = arith.addf %171, %170 : vector<8x128xf32>
    %173 = arith.divf %171, %172 : vector<8x128xf32>
    %174 = arith.mulf %165, %142 : vector<8x128xf32>
    %175 = arith.mulf %159, %167 : vector<8x128xf32>
    %176 = arith.addf %174, %175 : vector<8x128xf32>
    %177 = math.tanh %176 : vector<8x128xf32>
    %178 = arith.mulf %173, %177 : vector<8x128xf32>
    %c0_54 = arith.constant 0 : index
    %c0_55 = arith.constant 0 : index
    %179 = vector.load %arg1[%c0_54, %c0_55] : memref<8x1xi32, #tpu.memory_space<vmem>>, vector<8x1xi32>
    %180 = vector.broadcast %c3_i32 : i32 to vector<8x1xi32>
    %181 = arith.cmpi sgt, %179, %180 : vector<8x1xi32>
    %182 = vector.shape_cast %181 : vector<8x1xi1> to vector<8x1xi1>
    %183 = vector.broadcast %182 : vector<8x1xi1> to vector<8x128xi1>
    %184 = arith.select %183, %178, %139 : vector<8x128xi1>, vector<8x128xf32>
    %185 = vector.shape_cast %181 : vector<8x1xi1> to vector<8x1xi1>
    %186 = vector.broadcast %185 : vector<8x1xi1> to vector<8x128xi1>
    %187 = arith.select %186, %176, %142 : vector<8x128xi1>, vector<8x128xf32>
    %188 = arith.index_cast %146 : i32 to index
    %c0_56 = arith.constant 0 : index
    %189 = vector.load %arg6[%188, %c0_56] : memref<64x128xf32, #tpu.memory_space<vmem>>, vector<8x128xf32>
    tpu.vector_store %arg6[%188, %c0_56], %184 {strides = array<i32>} : memref<64x128xf32, #tpu.memory_space<vmem>>, vector<8x128xf32>,
    %c4_i32 = arith.constant 4 : i32
    %c8_i32_57 = arith.constant 8 : i32
    %190 = arith.muli %c4_i32, %c8_i32_57 : i32
    %191 = tpu.assume_multiple %190, 8 : i32
    %192 = arith.truncf %184 : vector<8x128xf32> to vector<8x128xbf16>
    %c0_58 = arith.constant 0 : index
    %c0_59 = arith.constant 0 : index
    %c0_60 = arith.constant 0 : index
    %193 = vector.load %arg3[%c0_58, %c0_59, %c0_60] : memref<2x128x512xbf16, #tpu.memory_space<vmem>>, vector<1x128x512xbf16>
    %194 = vector.shape_cast %193 : vector<1x128x512xbf16> to vector<128x512xbf16>
    %cst_61 = arith.constant dense<0.000000e+00> : vector<8x512xf32>
    %195 = tpu.matmul %192, %194, %cst_61 {dimension_numbers = #tpu.dot_dimension_numbers<[1], [0], [0], [1], [0, 0, 1, 1], [], []>} : vector<8x128xbf16>, vector<128x512xbf16>, vector<8x512xf32> -> vector<8x512xf32>
    %196 = arith.index_cast %191 : i32 to index
    %c0_62 = arith.constant 0 : index
    %197 = vector.load %arg7[%196, %c0_62] : memref<64x512xf32, #tpu.memory_space<vmem>>, vector<8x512xf32>
    %198 = arith.addf %195, %197 : vector<8x512xf32>
    %199 = vector.extract_strided_slice %198 {offsets = [0, 0], sizes = [8, 128], strides = [1, 1]} : vector<8x512xf32> to vector<8x128xf32>
    %200 = arith.negf %199 : vector<8x128xf32>
    %201 = math.exp %200 : vector<8x128xf32>
    %cst_63 = arith.constant 1.000000e+00 : f32
    %202 = vector.broadcast %cst_63 : f32 to vector<8x128xf32>
    %203 = arith.addf %202, %201 : vector<8x128xf32>
    %204 = arith.divf %202, %203 : vector<8x128xf32>
    %205 = vector.extract_strided_slice %198 {offsets = [0, 128], sizes = [8, 128], strides = [1, 1]} : vector<8x512xf32> to vector<8x128xf32>
    %206 = arith.negf %205 : vector<8x128xf32>
    %207 = math.exp %206 : vector<8x128xf32>
    %cst_64 = arith.constant 1.000000e+00 : f32
    %208 = vector.broadcast %cst_64 : f32 to vector<8x128xf32>
    %209 = arith.addf %208, %207 : vector<8x128xf32>
    %210 = arith.divf %208, %209 : vector<8x128xf32>
    %211 = vector.extract_strided_slice %198 {offsets = [0, 256], sizes = [8, 128], strides = [1, 1]} : vector<8x512xf32> to vector<8x128xf32>
    %212 = math.tanh %211 : vector<8x128xf32>
    %213 = vector.extract_strided_slice %198 {offsets = [0, 384], sizes = [8, 128], strides = [1, 1]} : vector<8x512xf32> to vector<8x128xf32>
    %214 = arith.negf %213 : vector<8x128xf32>
    %215 = math.exp %214 : vector<8x128xf32>
    %cst_65 = arith.constant 1.000000e+00 : f32
    %216 = vector.broadcast %cst_65 : f32 to vector<8x128xf32>
    %217 = arith.addf %216, %215 : vector<8x128xf32>
    %218 = arith.divf %216, %217 : vector<8x128xf32>
    %219 = arith.mulf %210, %187 : vector<8x128xf32>
    %220 = arith.mulf %204, %212 : vector<8x128xf32>
    %221 = arith.addf %219, %220 : vector<8x128xf32>
    %222 = math.tanh %221 : vector<8x128xf32>
    %223 = arith.mulf %218, %222 : vector<8x128xf32>
    %c0_66 = arith.constant 0 : index
    %c0_67 = arith.constant 0 : index
    %224 = vector.load %arg1[%c0_66, %c0_67] : memref<8x1xi32, #tpu.memory_space<vmem>>, vector<8x1xi32>
    %225 = vector.broadcast %c4_i32 : i32 to vector<8x1xi32>
    %226 = arith.cmpi sgt, %224, %225 : vector<8x1xi32>
    %227 = vector.shape_cast %226 : vector<8x1xi1> to vector<8x1xi1>
    %228 = vector.broadcast %227 : vector<8x1xi1> to vector<8x128xi1>
    %229 = arith.select %228, %223, %184 : vector<8x128xi1>, vector<8x128xf32>
    %230 = vector.shape_cast %226 : vector<8x1xi1> to vector<8x1xi1>
    %231 = vector.broadcast %230 : vector<8x1xi1> to vector<8x128xi1>
    %232 = arith.select %231, %221, %187 : vector<8x128xi1>, vector<8x128xf32>
    %233 = arith.index_cast %191 : i32 to index
    %c0_68 = arith.constant 0 : index
    %234 = vector.load %arg6[%233, %c0_68] : memref<64x128xf32, #tpu.memory_space<vmem>>, vector<8x128xf32>
    tpu.vector_store %arg6[%233, %c0_68], %229 {strides = array<i32>} : memref<64x128xf32, #tpu.memory_space<vmem>>, vector<8x128xf32>,
    %c5_i32 = arith.constant 5 : i32
    %c8_i32_69 = arith.constant 8 : i32
    %235 = arith.muli %c5_i32, %c8_i32_69 : i32
    %236 = tpu.assume_multiple %235, 8 : i32
    %237 = arith.truncf %229 : vector<8x128xf32> to vector<8x128xbf16>
    %c0_70 = arith.constant 0 : index
    %c0_71 = arith.constant 0 : index
    %c0_72 = arith.constant 0 : index
    %238 = vector.load %arg3[%c0_70, %c0_71, %c0_72] : memref<2x128x512xbf16, #tpu.memory_space<vmem>>, vector<1x128x512xbf16>
    %239 = vector.shape_cast %238 : vector<1x128x512xbf16> to vector<128x512xbf16>
    %cst_73 = arith.constant dense<0.000000e+00> : vector<8x512xf32>
    %240 = tpu.matmul %237, %239, %cst_73 {dimension_numbers = #tpu.dot_dimension_numbers<[1], [0], [0], [1], [0, 0, 1, 1], [], []>} : vector<8x128xbf16>, vector<128x512xbf16>, vector<8x512xf32> -> vector<8x512xf32>
    %241 = arith.index_cast %236 : i32 to index
    %c0_74 = arith.constant 0 : index
    %242 = vector.load %arg7[%241, %c0_74] : memref<64x512xf32, #tpu.memory_space<vmem>>, vector<8x512xf32>
    %243 = arith.addf %240, %242 : vector<8x512xf32>
    %244 = vector.extract_strided_slice %243 {offsets = [0, 0], sizes = [8, 128], strides = [1, 1]} : vector<8x512xf32> to vector<8x128xf32>
    %245 = arith.negf %244 : vector<8x128xf32>
    %246 = math.exp %245 : vector<8x128xf32>
    %cst_75 = arith.constant 1.000000e+00 : f32
    %247 = vector.broadcast %cst_75 : f32 to vector<8x128xf32>
    %248 = arith.addf %247, %246 : vector<8x128xf32>
    %249 = arith.divf %247, %248 : vector<8x128xf32>
    %250 = vector.extract_strided_slice %243 {offsets = [0, 128], sizes = [8, 128], strides = [1, 1]} : vector<8x512xf32> to vector<8x128xf32>
    %251 = arith.negf %250 : vector<8x128xf32>
    %252 = math.exp %251 : vector<8x128xf32>
    %cst_76 = arith.constant 1.000000e+00 : f32
    %253 = vector.broadcast %cst_76 : f32 to vector<8x128xf32>
    %254 = arith.addf %253, %252 : vector<8x128xf32>
    %255 = arith.divf %253, %254 : vector<8x128xf32>
    %256 = vector.extract_strided_slice %243 {offsets = [0, 256], sizes = [8, 128], strides = [1, 1]} : vector<8x512xf32> to vector<8x128xf32>
    %257 = math.tanh %256 : vector<8x128xf32>
    %258 = vector.extract_strided_slice %243 {offsets = [0, 384], sizes = [8, 128], strides = [1, 1]} : vector<8x512xf32> to vector<8x128xf32>
    %259 = arith.negf %258 : vector<8x128xf32>
    %260 = math.exp %259 : vector<8x128xf32>
    %cst_77 = arith.constant 1.000000e+00 : f32
    %261 = vector.broadcast %cst_77 : f32 to vector<8x128xf32>
    %262 = arith.addf %261, %260 : vector<8x128xf32>
    %263 = arith.divf %261, %262 : vector<8x128xf32>
    %264 = arith.mulf %255, %232 : vector<8x128xf32>
    %265 = arith.mulf %249, %257 : vector<8x128xf32>
    %266 = arith.addf %264, %265 : vector<8x128xf32>
    %267 = math.tanh %266 : vector<8x128xf32>
    %268 = arith.mulf %263, %267 : vector<8x128xf32>
    %c0_78 = arith.constant 0 : index
    %c0_79 = arith.constant 0 : index
    %269 = vector.load %arg1[%c0_78, %c0_79] : memref<8x1xi32, #tpu.memory_space<vmem>>, vector<8x1xi32>
    %270 = vector.broadcast %c5_i32 : i32 to vector<8x1xi32>
    %271 = arith.cmpi sgt, %269, %270 : vector<8x1xi32>
    %272 = vector.shape_cast %271 : vector<8x1xi1> to vector<8x1xi1>
    %273 = vector.broadcast %272 : vector<8x1xi1> to vector<8x128xi1>
    %274 = arith.select %273, %268, %229 : vector<8x128xi1>, vector<8x128xf32>
    %275 = vector.shape_cast %271 : vector<8x1xi1> to vector<8x1xi1>
    %276 = vector.broadcast %275 : vector<8x1xi1> to vector<8x128xi1>
    %277 = arith.select %276, %266, %232 : vector<8x128xi1>, vector<8x128xf32>
    %278 = arith.index_cast %236 : i32 to index
    %c0_80 = arith.constant 0 : index
    %279 = vector.load %arg6[%278, %c0_80] : memref<64x128xf32, #tpu.memory_space<vmem>>, vector<8x128xf32>
    tpu.vector_store %arg6[%278, %c0_80], %274 {strides = array<i32>} : memref<64x128xf32, #tpu.memory_space<vmem>>, vector<8x128xf32>,
    %c6_i32 = arith.constant 6 : i32
    %c8_i32_81 = arith.constant 8 : i32
    %280 = arith.muli %c6_i32, %c8_i32_81 : i32
    %281 = tpu.assume_multiple %280, 8 : i32
    %282 = arith.truncf %274 : vector<8x128xf32> to vector<8x128xbf16>
    %c0_82 = arith.constant 0 : index
    %c0_83 = arith.constant 0 : index
    %c0_84 = arith.constant 0 : index
    %283 = vector.load %arg3[%c0_82, %c0_83, %c0_84] : memref<2x128x512xbf16, #tpu.memory_space<vmem>>, vector<1x128x512xbf16>
    %284 = vector.shape_cast %283 : vector<1x128x512xbf16> to vector<128x512xbf16>
    %cst_85 = arith.constant dense<0.000000e+00> : vector<8x512xf32>
    %285 = tpu.matmul %282, %284, %cst_85 {dimension_numbers = #tpu.dot_dimension_numbers<[1], [0], [0], [1], [0, 0, 1, 1], [], []>} : vector<8x128xbf16>, vector<128x512xbf16>, vector<8x512xf32> -> vector<8x512xf32>
    %286 = arith.index_cast %281 : i32 to index
    %c0_86 = arith.constant 0 : index
    %287 = vector.load %arg7[%286, %c0_86] : memref<64x512xf32, #tpu.memory_space<vmem>>, vector<8x512xf32>
    %288 = arith.addf %285, %287 : vector<8x512xf32>
    %289 = vector.extract_strided_slice %288 {offsets = [0, 0], sizes = [8, 128], strides = [1, 1]} : vector<8x512xf32> to vector<8x128xf32>
    %290 = arith.negf %289 : vector<8x128xf32>
    %291 = math.exp %290 : vector<8x128xf32>
    %cst_87 = arith.constant 1.000000e+00 : f32
    %292 = vector.broadcast %cst_87 : f32 to vector<8x128xf32>
    %293 = arith.addf %292, %291 : vector<8x128xf32>
    %294 = arith.divf %292, %293 : vector<8x128xf32>
    %295 = vector.extract_strided_slice %288 {offsets = [0, 128], sizes = [8, 128], strides = [1, 1]} : vector<8x512xf32> to vector<8x128xf32>
    %296 = arith.negf %295 : vector<8x128xf32>
    %297 = math.exp %296 : vector<8x128xf32>
    %cst_88 = arith.constant 1.000000e+00 : f32
    %298 = vector.broadcast %cst_88 : f32 to vector<8x128xf32>
    %299 = arith.addf %298, %297 : vector<8x128xf32>
    %300 = arith.divf %298, %299 : vector<8x128xf32>
    %301 = vector.extract_strided_slice %288 {offsets = [0, 256], sizes = [8, 128], strides = [1, 1]} : vector<8x512xf32> to vector<8x128xf32>
    %302 = math.tanh %301 : vector<8x128xf32>
    %303 = vector.extract_strided_slice %288 {offsets = [0, 384], sizes = [8, 128], strides = [1, 1]} : vector<8x512xf32> to vector<8x128xf32>
    %304 = arith.negf %303 : vector<8x128xf32>
    %305 = math.exp %304 : vector<8x128xf32>
    %cst_89 = arith.constant 1.000000e+00 : f32
    %306 = vector.broadcast %cst_89 : f32 to vector<8x128xf32>
    %307 = arith.addf %306, %305 : vector<8x128xf32>
    %308 = arith.divf %306, %307 : vector<8x128xf32>
    %309 = arith.mulf %300, %277 : vector<8x128xf32>
    %310 = arith.mulf %294, %302 : vector<8x128xf32>
    %311 = arith.addf %309, %310 : vector<8x128xf32>
    %312 = math.tanh %311 : vector<8x128xf32>
    %313 = arith.mulf %308, %312 : vector<8x128xf32>
    %c0_90 = arith.constant 0 : index
    %c0_91 = arith.constant 0 : index
    %314 = vector.load %arg1[%c0_90, %c0_91] : memref<8x1xi32, #tpu.memory_space<vmem>>, vector<8x1xi32>
    %315 = vector.broadcast %c6_i32 : i32 to vector<8x1xi32>
    %316 = arith.cmpi sgt, %314, %315 : vector<8x1xi32>
    %317 = vector.shape_cast %316 : vector<8x1xi1> to vector<8x1xi1>
    %318 = vector.broadcast %317 : vector<8x1xi1> to vector<8x128xi1>
    %319 = arith.select %318, %313, %274 : vector<8x128xi1>, vector<8x128xf32>
    %320 = vector.shape_cast %316 : vector<8x1xi1> to vector<8x1xi1>
    %321 = vector.broadcast %320 : vector<8x1xi1> to vector<8x128xi1>
    %322 = arith.select %321, %311, %277 : vector<8x128xi1>, vector<8x128xf32>
    %323 = arith.index_cast %281 : i32 to index
    %c0_92 = arith.constant 0 : index
    %324 = vector.load %arg6[%323, %c0_92] : memref<64x128xf32, #tpu.memory_space<vmem>>, vector<8x128xf32>
    tpu.vector_store %arg6[%323, %c0_92], %319 {strides = array<i32>} : memref<64x128xf32, #tpu.memory_space<vmem>>, vector<8x128xf32>,
    %c7_i32 = arith.constant 7 : i32
    %c8_i32_93 = arith.constant 8 : i32
    %325 = arith.muli %c7_i32, %c8_i32_93 : i32
    %326 = tpu.assume_multiple %325, 8 : i32
    %327 = arith.truncf %319 : vector<8x128xf32> to vector<8x128xbf16>
    %c0_94 = arith.constant 0 : index
    %c0_95 = arith.constant 0 : index
    %c0_96 = arith.constant 0 : index
    %328 = vector.load %arg3[%c0_94, %c0_95, %c0_96] : memref<2x128x512xbf16, #tpu.memory_space<vmem>>, vector<1x128x512xbf16>
    %329 = vector.shape_cast %328 : vector<1x128x512xbf16> to vector<128x512xbf16>
    %cst_97 = arith.constant dense<0.000000e+00> : vector<8x512xf32>
    %330 = tpu.matmul %327, %329, %cst_97 {dimension_numbers = #tpu.dot_dimension_numbers<[1], [0], [0], [1], [0, 0, 1, 1], [], []>} : vector<8x128xbf16>, vector<128x512xbf16>, vector<8x512xf32> -> vector<8x512xf32>
    %331 = arith.index_cast %326 : i32 to index
    %c0_98 = arith.constant 0 : index
    %332 = vector.load %arg7[%331, %c0_98] : memref<64x512xf32, #tpu.memory_space<vmem>>, vector<8x512xf32>
    %333 = arith.addf %330, %332 : vector<8x512xf32>
    %334 = vector.extract_strided_slice %333 {offsets = [0, 0], sizes = [8, 128], strides = [1, 1]} : vector<8x512xf32> to vector<8x128xf32>
    %335 = arith.negf %334 : vector<8x128xf32>
    %336 = math.exp %335 : vector<8x128xf32>
    %cst_99 = arith.constant 1.000000e+00 : f32
    %337 = vector.broadcast %cst_99 : f32 to vector<8x128xf32>
    %338 = arith.addf %337, %336 : vector<8x128xf32>
    %339 = arith.divf %337, %338 : vector<8x128xf32>
    %340 = vector.extract_strided_slice %333 {offsets = [0, 128], sizes = [8, 128], strides = [1, 1]} : vector<8x512xf32> to vector<8x128xf32>
    %341 = arith.negf %340 : vector<8x128xf32>
    %342 = math.exp %341 : vector<8x128xf32>
    %cst_100 = arith.constant 1.000000e+00 : f32
    %343 = vector.broadcast %cst_100 : f32 to vector<8x128xf32>
    %344 = arith.addf %343, %342 : vector<8x128xf32>
    %345 = arith.divf %343, %344 : vector<8x128xf32>
    %346 = vector.extract_strided_slice %333 {offsets = [0, 256], sizes = [8, 128], strides = [1, 1]} : vector<8x512xf32> to vector<8x128xf32>
    %347 = math.tanh %346 : vector<8x128xf32>
    %348 = vector.extract_strided_slice %333 {offsets = [0, 384], sizes = [8, 128], strides = [1, 1]} : vector<8x512xf32> to vector<8x128xf32>
    %349 = arith.negf %348 : vector<8x128xf32>
    %350 = math.exp %349 : vector<8x128xf32>
    %cst_101 = arith.constant 1.000000e+00 : f32
    %351 = vector.broadcast %cst_101 : f32 to vector<8x128xf32>
    %352 = arith.addf %351, %350 : vector<8x128xf32>
    %353 = arith.divf %351, %352 : vector<8x128xf32>
    %354 = arith.mulf %345, %322 : vector<8x128xf32>
    %355 = arith.mulf %339, %347 : vector<8x128xf32>
    %356 = arith.addf %354, %355 : vector<8x128xf32>
    %357 = math.tanh %356 : vector<8x128xf32>
    %358 = arith.mulf %353, %357 : vector<8x128xf32>
    %c0_102 = arith.constant 0 : index
    %c0_103 = arith.constant 0 : index
    %359 = vector.load %arg1[%c0_102, %c0_103] : memref<8x1xi32, #tpu.memory_space<vmem>>, vector<8x1xi32>
    %360 = vector.broadcast %c7_i32 : i32 to vector<8x1xi32>
    %361 = arith.cmpi sgt, %359, %360 : vector<8x1xi32>
    %362 = vector.shape_cast %361 : vector<8x1xi1> to vector<8x1xi1>
    %363 = vector.broadcast %362 : vector<8x1xi1> to vector<8x128xi1>
    %364 = arith.select %363, %358, %319 : vector<8x128xi1>, vector<8x128xf32>
    %365 = vector.shape_cast %361 : vector<8x1xi1> to vector<8x1xi1>
    %366 = vector.broadcast %365 : vector<8x1xi1> to vector<8x128xi1>
    %367 = arith.select %366, %356, %322 : vector<8x128xi1>, vector<8x128xf32>
    %368 = arith.index_cast %326 : i32 to index
    %c0_104 = arith.constant 0 : index
    %369 = vector.load %arg6[%368, %c0_104] : memref<64x128xf32, #tpu.memory_space<vmem>>, vector<8x128xf32>
    tpu.vector_store %arg6[%368, %c0_104], %364 {strides = array<i32>} : memref<64x128xf32, #tpu.memory_space<vmem>>, vector<8x128xf32>,
    %c8_i32_105 = arith.constant 8 : i32
    %c0_106 = arith.constant 0 : index
    %c0_107 = arith.constant 0 : index
    %370 = vector.load %arg6[%c0_106, %c0_107] : memref<64x128xf32, #tpu.memory_space<vmem>>, vector<64x128xf32>
    %371 = arith.truncf %370 : vector<64x128xf32> to vector<64x128xbf16>
    %c1 = arith.constant 1 : index
    %c0_108 = arith.constant 0 : index
    %c0_109 = arith.constant 0 : index
    %372 = vector.load %arg2[%c1, %c0_108, %c0_109] : memref<2x128x512xbf16, #tpu.memory_space<vmem>>, vector<1x128x512xbf16>
    %373 = vector.shape_cast %372 : vector<1x128x512xbf16> to vector<128x512xbf16>
    %cst_110 = arith.constant dense<0.000000e+00> : vector<64x512xf32>
    %374 = tpu.matmul %371, %373, %cst_110 {dimension_numbers = #tpu.dot_dimension_numbers<[1], [0], [0], [1], [0, 0, 1, 1], [], []>} : vector<64x128xbf16>, vector<128x512xbf16>, vector<64x512xf32> -> vector<64x512xf32>
    %c1_111 = arith.constant 1 : index
    %c0_112 = arith.constant 0 : index
    %c0_113 = arith.constant 0 : index
    %375 = vector.load %arg4[%c1_111, %c0_112, %c0_113] : memref<2x1x512xf32, #tpu.memory_space<vmem>>, vector<1x1x512xf32>
    %376 = vector.shape_cast %375 : vector<1x1x512xf32> to vector<1x512xf32>
    %377 = vector.broadcast %376 : vector<1x512xf32> to vector<64x512xf32>
    %378 = arith.addf %374, %377 : vector<64x512xf32>
    %c0_114 = arith.constant 0 : index
    %c0_115 = arith.constant 0 : index
    %379 = vector.load %arg7[%c0_114, %c0_115] : memref<64x512xf32, #tpu.memory_space<vmem>>, vector<64x512xf32>
    tpu.vector_store %arg7[%c0_114, %c0_115], %378 {strides = array<i32>} : memref<64x512xf32, #tpu.memory_space<vmem>>, vector<64x512xf32>,
    %c0_i32_116 = arith.constant 0 : i32
    %c8_i32_117 = arith.constant 8 : i32
    %380 = arith.muli %c0_i32_116, %c8_i32_117 : i32
    %381 = tpu.assume_multiple %380, 8 : i32
    %382 = arith.truncf %0 : vector<8x128xf32> to vector<8x128xbf16>
    %c1_118 = arith.constant 1 : index
    %c0_119 = arith.constant 0 : index
    %c0_120 = arith.constant 0 : index
    %383 = vector.load %arg3[%c1_118, %c0_119, %c0_120] : memref<2x128x512xbf16, #tpu.memory_space<vmem>>, vector<1x128x512xbf16>
    %384 = vector.shape_cast %383 : vector<1x128x512xbf16> to vector<128x512xbf16>
    %cst_121 = arith.constant dense<0.000000e+00> : vector<8x512xf32>
    %385 = tpu.matmul %382, %384, %cst_121 {dimension_numbers = #tpu.dot_dimension_numbers<[1], [0], [0], [1], [0, 0, 1, 1], [], []>} : vector<8x128xbf16>, vector<128x512xbf16>, vector<8x512xf32> -> vector<8x512xf32>
    %386 = arith.index_cast %381 : i32 to index
    %c0_122 = arith.constant 0 : index
    %387 = vector.load %arg7[%386, %c0_122] : memref<64x512xf32, #tpu.memory_space<vmem>>, vector<8x512xf32>
    %388 = arith.addf %385, %387 : vector<8x512xf32>
    %389 = vector.extract_strided_slice %388 {offsets = [0, 0], sizes = [8, 128], strides = [1, 1]} : vector<8x512xf32> to vector<8x128xf32>
    %390 = arith.negf %389 : vector<8x128xf32>
    %391 = math.exp %390 : vector<8x128xf32>
    %cst_123 = arith.constant 1.000000e+00 : f32
    %392 = vector.broadcast %cst_123 : f32 to vector<8x128xf32>
    %393 = arith.addf %392, %391 : vector<8x128xf32>
    %394 = arith.divf %392, %393 : vector<8x128xf32>
    %395 = vector.extract_strided_slice %388 {offsets = [0, 128], sizes = [8, 128], strides = [1, 1]} : vector<8x512xf32> to vector<8x128xf32>
    %396 = arith.negf %395 : vector<8x128xf32>
    %397 = math.exp %396 : vector<8x128xf32>
    %cst_124 = arith.constant 1.000000e+00 : f32
    %398 = vector.broadcast %cst_124 : f32 to vector<8x128xf32>
    %399 = arith.addf %398, %397 : vector<8x128xf32>
    %400 = arith.divf %398, %399 : vector<8x128xf32>
    %401 = vector.extract_strided_slice %388 {offsets = [0, 256], sizes = [8, 128], strides = [1, 1]} : vector<8x512xf32> to vector<8x128xf32>
    %402 = math.tanh %401 : vector<8x128xf32>
    %403 = vector.extract_strided_slice %388 {offsets = [0, 384], sizes = [8, 128], strides = [1, 1]} : vector<8x512xf32> to vector<8x128xf32>
    %404 = arith.negf %403 : vector<8x128xf32>
    %405 = math.exp %404 : vector<8x128xf32>
    %cst_125 = arith.constant 1.000000e+00 : f32
    %406 = vector.broadcast %cst_125 : f32 to vector<8x128xf32>
    %407 = arith.addf %406, %405 : vector<8x128xf32>
    %408 = arith.divf %406, %407 : vector<8x128xf32>
    %409 = arith.mulf %400, %0 : vector<8x128xf32>
    %410 = arith.mulf %394, %402 : vector<8x128xf32>
    %411 = arith.addf %409, %410 : vector<8x128xf32>
    %412 = math.tanh %411 : vector<8x128xf32>
    %413 = arith.mulf %408, %412 : vector<8x128xf32>
    %c0_126 = arith.constant 0 : index
    %c0_127 = arith.constant 0 : index
    %414 = vector.load %arg1[%c0_126, %c0_127] : memref<8x1xi32, #tpu.memory_space<vmem>>, vector<8x1xi32>
    %415 = vector.broadcast %c0_i32_116 : i32 to vector<8x1xi32>
    %416 = arith.cmpi sgt, %414, %415 : vector<8x1xi32>
    %417 = vector.shape_cast %416 : vector<8x1xi1> to vector<8x1xi1>
    %418 = vector.broadcast %417 : vector<8x1xi1> to vector<8x128xi1>
    %419 = arith.select %418, %413, %0 : vector<8x128xi1>, vector<8x128xf32>
    %420 = vector.shape_cast %416 : vector<8x1xi1> to vector<8x1xi1>
    %421 = vector.broadcast %420 : vector<8x1xi1> to vector<8x128xi1>
    %422 = arith.select %421, %411, %0 : vector<8x128xi1>, vector<8x128xf32>
    %c1_i32_128 = arith.constant 1 : i32
    %c8_i32_129 = arith.constant 8 : i32
    %423 = arith.muli %c1_i32_128, %c8_i32_129 : i32
    %424 = tpu.assume_multiple %423, 8 : i32
    %425 = arith.truncf %419 : vector<8x128xf32> to vector<8x128xbf16>
    %c1_130 = arith.constant 1 : index
    %c0_131 = arith.constant 0 : index
    %c0_132 = arith.constant 0 : index
    %426 = vector.load %arg3[%c1_130, %c0_131, %c0_132] : memref<2x128x512xbf16, #tpu.memory_space<vmem>>, vector<1x128x512xbf16>
    %427 = vector.shape_cast %426 : vector<1x128x512xbf16> to vector<128x512xbf16>
    %cst_133 = arith.constant dense<0.000000e+00> : vector<8x512xf32>
    %428 = tpu.matmul %425, %427, %cst_133 {dimension_numbers = #tpu.dot_dimension_numbers<[1], [0], [0], [1], [0, 0, 1, 1], [], []>} : vector<8x128xbf16>, vector<128x512xbf16>, vector<8x512xf32> -> vector<8x512xf32>
    %429 = arith.index_cast %424 : i32 to index
    %c0_134 = arith.constant 0 : index
    %430 = vector.load %arg7[%429, %c0_134] : memref<64x512xf32, #tpu.memory_space<vmem>>, vector<8x512xf32>
    %431 = arith.addf %428, %430 : vector<8x512xf32>
    %432 = vector.extract_strided_slice %431 {offsets = [0, 0], sizes = [8, 128], strides = [1, 1]} : vector<8x512xf32> to vector<8x128xf32>
    %433 = arith.negf %432 : vector<8x128xf32>
    %434 = math.exp %433 : vector<8x128xf32>
    %cst_135 = arith.constant 1.000000e+00 : f32
    %435 = vector.broadcast %cst_135 : f32 to vector<8x128xf32>
    %436 = arith.addf %435, %434 : vector<8x128xf32>
    %437 = arith.divf %435, %436 : vector<8x128xf32>
    %438 = vector.extract_strided_slice %431 {offsets = [0, 128], sizes = [8, 128], strides = [1, 1]} : vector<8x512xf32> to vector<8x128xf32>
    %439 = arith.negf %438 : vector<8x128xf32>
    %440 = math.exp %439 : vector<8x128xf32>
    %cst_136 = arith.constant 1.000000e+00 : f32
    %441 = vector.broadcast %cst_136 : f32 to vector<8x128xf32>
    %442 = arith.addf %441, %440 : vector<8x128xf32>
    %443 = arith.divf %441, %442 : vector<8x128xf32>
    %444 = vector.extract_strided_slice %431 {offsets = [0, 256], sizes = [8, 128], strides = [1, 1]} : vector<8x512xf32> to vector<8x128xf32>
    %445 = math.tanh %444 : vector<8x128xf32>
    %446 = vector.extract_strided_slice %431 {offsets = [0, 384], sizes = [8, 128], strides = [1, 1]} : vector<8x512xf32> to vector<8x128xf32>
    %447 = arith.negf %446 : vector<8x128xf32>
    %448 = math.exp %447 : vector<8x128xf32>
    %cst_137 = arith.constant 1.000000e+00 : f32
    %449 = vector.broadcast %cst_137 : f32 to vector<8x128xf32>
    %450 = arith.addf %449, %448 : vector<8x128xf32>
    %451 = arith.divf %449, %450 : vector<8x128xf32>
    %452 = arith.mulf %443, %422 : vector<8x128xf32>
    %453 = arith.mulf %437, %445 : vector<8x128xf32>
    %454 = arith.addf %452, %453 : vector<8x128xf32>
    %455 = math.tanh %454 : vector<8x128xf32>
    %456 = arith.mulf %451, %455 : vector<8x128xf32>
    %c0_138 = arith.constant 0 : index
    %c0_139 = arith.constant 0 : index
    %457 = vector.load %arg1[%c0_138, %c0_139] : memref<8x1xi32, #tpu.memory_space<vmem>>, vector<8x1xi32>
    %458 = vector.broadcast %c1_i32_128 : i32 to vector<8x1xi32>
    %459 = arith.cmpi sgt, %457, %458 : vector<8x1xi32>
    %460 = vector.shape_cast %459 : vector<8x1xi1> to vector<8x1xi1>
    %461 = vector.broadcast %460 : vector<8x1xi1> to vector<8x128xi1>
    %462 = arith.select %461, %456, %419 : vector<8x128xi1>, vector<8x128xf32>
    %463 = vector.shape_cast %459 : vector<8x1xi1> to vector<8x1xi1>
    %464 = vector.broadcast %463 : vector<8x1xi1> to vector<8x128xi1>
    %465 = arith.select %464, %454, %422 : vector<8x128xi1>, vector<8x128xf32>
    %c2_i32_140 = arith.constant 2 : i32
    %c8_i32_141 = arith.constant 8 : i32
    %466 = arith.muli %c2_i32_140, %c8_i32_141 : i32
    %467 = tpu.assume_multiple %466, 8 : i32
    %468 = arith.truncf %462 : vector<8x128xf32> to vector<8x128xbf16>
    %c1_142 = arith.constant 1 : index
    %c0_143 = arith.constant 0 : index
    %c0_144 = arith.constant 0 : index
    %469 = vector.load %arg3[%c1_142, %c0_143, %c0_144] : memref<2x128x512xbf16, #tpu.memory_space<vmem>>, vector<1x128x512xbf16>
    %470 = vector.shape_cast %469 : vector<1x128x512xbf16> to vector<128x512xbf16>
    %cst_145 = arith.constant dense<0.000000e+00> : vector<8x512xf32>
    %471 = tpu.matmul %468, %470, %cst_145 {dimension_numbers = #tpu.dot_dimension_numbers<[1], [0], [0], [1], [0, 0, 1, 1], [], []>} : vector<8x128xbf16>, vector<128x512xbf16>, vector<8x512xf32> -> vector<8x512xf32>
    %472 = arith.index_cast %467 : i32 to index
    %c0_146 = arith.constant 0 : index
    %473 = vector.load %arg7[%472, %c0_146] : memref<64x512xf32, #tpu.memory_space<vmem>>, vector<8x512xf32>
    %474 = arith.addf %471, %473 : vector<8x512xf32>
    %475 = vector.extract_strided_slice %474 {offsets = [0, 0], sizes = [8, 128], strides = [1, 1]} : vector<8x512xf32> to vector<8x128xf32>
    %476 = arith.negf %475 : vector<8x128xf32>
    %477 = math.exp %476 : vector<8x128xf32>
    %cst_147 = arith.constant 1.000000e+00 : f32
    %478 = vector.broadcast %cst_147 : f32 to vector<8x128xf32>
    %479 = arith.addf %478, %477 : vector<8x128xf32>
    %480 = arith.divf %478, %479 : vector<8x128xf32>
    %481 = vector.extract_strided_slice %474 {offsets = [0, 128], sizes = [8, 128], strides = [1, 1]} : vector<8x512xf32> to vector<8x128xf32>
    %482 = arith.negf %481 : vector<8x128xf32>
    %483 = math.exp %482 : vector<8x128xf32>
    %cst_148 = arith.constant 1.000000e+00 : f32
    %484 = vector.broadcast %cst_148 : f32 to vector<8x128xf32>
    %485 = arith.addf %484, %483 : vector<8x128xf32>
    %486 = arith.divf %484, %485 : vector<8x128xf32>
    %487 = vector.extract_strided_slice %474 {offsets = [0, 256], sizes = [8, 128], strides = [1, 1]} : vector<8x512xf32> to vector<8x128xf32>
    %488 = math.tanh %487 : vector<8x128xf32>
    %489 = vector.extract_strided_slice %474 {offsets = [0, 384], sizes = [8, 128], strides = [1, 1]} : vector<8x512xf32> to vector<8x128xf32>
    %490 = arith.negf %489 : vector<8x128xf32>
    %491 = math.exp %490 : vector<8x128xf32>
    %cst_149 = arith.constant 1.000000e+00 : f32
    %492 = vector.broadcast %cst_149 : f32 to vector<8x128xf32>
    %493 = arith.addf %492, %491 : vector<8x128xf32>
    %494 = arith.divf %492, %493 : vector<8x128xf32>
    %495 = arith.mulf %486, %465 : vector<8x128xf32>
    %496 = arith.mulf %480, %488 : vector<8x128xf32>
    %497 = arith.addf %495, %496 : vector<8x128xf32>
    %498 = math.tanh %497 : vector<8x128xf32>
    %499 = arith.mulf %494, %498 : vector<8x128xf32>
    %c0_150 = arith.constant 0 : index
    %c0_151 = arith.constant 0 : index
    %500 = vector.load %arg1[%c0_150, %c0_151] : memref<8x1xi32, #tpu.memory_space<vmem>>, vector<8x1xi32>
    %501 = vector.broadcast %c2_i32_140 : i32 to vector<8x1xi32>
    %502 = arith.cmpi sgt, %500, %501 : vector<8x1xi32>
    %503 = vector.shape_cast %502 : vector<8x1xi1> to vector<8x1xi1>
    %504 = vector.broadcast %503 : vector<8x1xi1> to vector<8x128xi1>
    %505 = arith.select %504, %499, %462 : vector<8x128xi1>, vector<8x128xf32>
    %506 = vector.shape_cast %502 : vector<8x1xi1> to vector<8x1xi1>
    %507 = vector.broadcast %506 : vector<8x1xi1> to vector<8x128xi1>
    %508 = arith.select %507, %497, %465 : vector<8x128xi1>, vector<8x128xf32>
    %c3_i32_152 = arith.constant 3 : i32
    %c8_i32_153 = arith.constant 8 : i32
    %509 = arith.muli %c3_i32_152, %c8_i32_153 : i32
    %510 = tpu.assume_multiple %509, 8 : i32
    %511 = arith.truncf %505 : vector<8x128xf32> to vector<8x128xbf16>
    %c1_154 = arith.constant 1 : index
    %c0_155 = arith.constant 0 : index
    %c0_156 = arith.constant 0 : index
    %512 = vector.load %arg3[%c1_154, %c0_155, %c0_156] : memref<2x128x512xbf16, #tpu.memory_space<vmem>>, vector<1x128x512xbf16>
    %513 = vector.shape_cast %512 : vector<1x128x512xbf16> to vector<128x512xbf16>
    %cst_157 = arith.constant dense<0.000000e+00> : vector<8x512xf32>
    %514 = tpu.matmul %511, %513, %cst_157 {dimension_numbers = #tpu.dot_dimension_numbers<[1], [0], [0], [1], [0, 0, 1, 1], [], []>} : vector<8x128xbf16>, vector<128x512xbf16>, vector<8x512xf32> -> vector<8x512xf32>
    %515 = arith.index_cast %510 : i32 to index
    %c0_158 = arith.constant 0 : index
    %516 = vector.load %arg7[%515, %c0_158] : memref<64x512xf32, #tpu.memory_space<vmem>>, vector<8x512xf32>
    %517 = arith.addf %514, %516 : vector<8x512xf32>
    %518 = vector.extract_strided_slice %517 {offsets = [0, 0], sizes = [8, 128], strides = [1, 1]} : vector<8x512xf32> to vector<8x128xf32>
    %519 = arith.negf %518 : vector<8x128xf32>
    %520 = math.exp %519 : vector<8x128xf32>
    %cst_159 = arith.constant 1.000000e+00 : f32
    %521 = vector.broadcast %cst_159 : f32 to vector<8x128xf32>
    %522 = arith.addf %521, %520 : vector<8x128xf32>
    %523 = arith.divf %521, %522 : vector<8x128xf32>
    %524 = vector.extract_strided_slice %517 {offsets = [0, 128], sizes = [8, 128], strides = [1, 1]} : vector<8x512xf32> to vector<8x128xf32>
    %525 = arith.negf %524 : vector<8x128xf32>
    %526 = math.exp %525 : vector<8x128xf32>
    %cst_160 = arith.constant 1.000000e+00 : f32
    %527 = vector.broadcast %cst_160 : f32 to vector<8x128xf32>
    %528 = arith.addf %527, %526 : vector<8x128xf32>
    %529 = arith.divf %527, %528 : vector<8x128xf32>
    %530 = vector.extract_strided_slice %517 {offsets = [0, 256], sizes = [8, 128], strides = [1, 1]} : vector<8x512xf32> to vector<8x128xf32>
    %531 = math.tanh %530 : vector<8x128xf32>
    %532 = vector.extract_strided_slice %517 {offsets = [0, 384], sizes = [8, 128], strides = [1, 1]} : vector<8x512xf32> to vector<8x128xf32>
    %533 = arith.negf %532 : vector<8x128xf32>
    %534 = math.exp %533 : vector<8x128xf32>
    %cst_161 = arith.constant 1.000000e+00 : f32
    %535 = vector.broadcast %cst_161 : f32 to vector<8x128xf32>
    %536 = arith.addf %535, %534 : vector<8x128xf32>
    %537 = arith.divf %535, %536 : vector<8x128xf32>
    %538 = arith.mulf %529, %508 : vector<8x128xf32>
    %539 = arith.mulf %523, %531 : vector<8x128xf32>
    %540 = arith.addf %538, %539 : vector<8x128xf32>
    %541 = math.tanh %540 : vector<8x128xf32>
    %542 = arith.mulf %537, %541 : vector<8x128xf32>
    %c0_162 = arith.constant 0 : index
    %c0_163 = arith.constant 0 : index
    %543 = vector.load %arg1[%c0_162, %c0_163] : memref<8x1xi32, #tpu.memory_space<vmem>>, vector<8x1xi32>
    %544 = vector.broadcast %c3_i32_152 : i32 to vector<8x1xi32>
    %545 = arith.cmpi sgt, %543, %544 : vector<8x1xi32>
    %546 = vector.shape_cast %545 : vector<8x1xi1> to vector<8x1xi1>
    %547 = vector.broadcast %546 : vector<8x1xi1> to vector<8x128xi1>
    %548 = arith.select %547, %542, %505 : vector<8x128xi1>, vector<8x128xf32>
    %549 = vector.shape_cast %545 : vector<8x1xi1> to vector<8x1xi1>
    %550 = vector.broadcast %549 : vector<8x1xi1> to vector<8x128xi1>
    %551 = arith.select %550, %540, %508 : vector<8x128xi1>, vector<8x128xf32>
    %c4_i32_164 = arith.constant 4 : i32
    %c8_i32_165 = arith.constant 8 : i32
    %552 = arith.muli %c4_i32_164, %c8_i32_165 : i32
    %553 = tpu.assume_multiple %552, 8 : i32
    %554 = arith.truncf %548 : vector<8x128xf32> to vector<8x128xbf16>
    %c1_166 = arith.constant 1 : index
    %c0_167 = arith.constant 0 : index
    %c0_168 = arith.constant 0 : index
    %555 = vector.load %arg3[%c1_166, %c0_167, %c0_168] : memref<2x128x512xbf16, #tpu.memory_space<vmem>>, vector<1x128x512xbf16>
    %556 = vector.shape_cast %555 : vector<1x128x512xbf16> to vector<128x512xbf16>
    %cst_169 = arith.constant dense<0.000000e+00> : vector<8x512xf32>
    %557 = tpu.matmul %554, %556, %cst_169 {dimension_numbers = #tpu.dot_dimension_numbers<[1], [0], [0], [1], [0, 0, 1, 1], [], []>} : vector<8x128xbf16>, vector<128x512xbf16>, vector<8x512xf32> -> vector<8x512xf32>
    %558 = arith.index_cast %553 : i32 to index
    %c0_170 = arith.constant 0 : index
    %559 = vector.load %arg7[%558, %c0_170] : memref<64x512xf32, #tpu.memory_space<vmem>>, vector<8x512xf32>
    %560 = arith.addf %557, %559 : vector<8x512xf32>
    %561 = vector.extract_strided_slice %560 {offsets = [0, 0], sizes = [8, 128], strides = [1, 1]} : vector<8x512xf32> to vector<8x128xf32>
    %562 = arith.negf %561 : vector<8x128xf32>
    %563 = math.exp %562 : vector<8x128xf32>
    %cst_171 = arith.constant 1.000000e+00 : f32
    %564 = vector.broadcast %cst_171 : f32 to vector<8x128xf32>
    %565 = arith.addf %564, %563 : vector<8x128xf32>
    %566 = arith.divf %564, %565 : vector<8x128xf32>
    %567 = vector.extract_strided_slice %560 {offsets = [0, 128], sizes = [8, 128], strides = [1, 1]} : vector<8x512xf32> to vector<8x128xf32>
    %568 = arith.negf %567 : vector<8x128xf32>
    %569 = math.exp %568 : vector<8x128xf32>
    %cst_172 = arith.constant 1.000000e+00 : f32
    %570 = vector.broadcast %cst_172 : f32 to vector<8x128xf32>
    %571 = arith.addf %570, %569 : vector<8x128xf32>
    %572 = arith.divf %570, %571 : vector<8x128xf32>
    %573 = vector.extract_strided_slice %560 {offsets = [0, 256], sizes = [8, 128], strides = [1, 1]} : vector<8x512xf32> to vector<8x128xf32>
    %574 = math.tanh %573 : vector<8x128xf32>
    %575 = vector.extract_strided_slice %560 {offsets = [0, 384], sizes = [8, 128], strides = [1, 1]} : vector<8x512xf32> to vector<8x128xf32>
    %576 = arith.negf %575 : vector<8x128xf32>
    %577 = math.exp %576 : vector<8x128xf32>
    %cst_173 = arith.constant 1.000000e+00 : f32
    %578 = vector.broadcast %cst_173 : f32 to vector<8x128xf32>
    %579 = arith.addf %578, %577 : vector<8x128xf32>
    %580 = arith.divf %578, %579 : vector<8x128xf32>
    %581 = arith.mulf %572, %551 : vector<8x128xf32>
    %582 = arith.mulf %566, %574 : vector<8x128xf32>
    %583 = arith.addf %581, %582 : vector<8x128xf32>
    %584 = math.tanh %583 : vector<8x128xf32>
    %585 = arith.mulf %580, %584 : vector<8x128xf32>
    %c0_174 = arith.constant 0 : index
    %c0_175 = arith.constant 0 : index
    %586 = vector.load %arg1[%c0_174, %c0_175] : memref<8x1xi32, #tpu.memory_space<vmem>>, vector<8x1xi32>
    %587 = vector.broadcast %c4_i32_164 : i32 to vector<8x1xi32>
    %588 = arith.cmpi sgt, %586, %587 : vector<8x1xi32>
    %589 = vector.shape_cast %588 : vector<8x1xi1> to vector<8x1xi1>
    %590 = vector.broadcast %589 : vector<8x1xi1> to vector<8x128xi1>
    %591 = arith.select %590, %585, %548 : vector<8x128xi1>, vector<8x128xf32>
    %592 = vector.shape_cast %588 : vector<8x1xi1> to vector<8x1xi1>
    %593 = vector.broadcast %592 : vector<8x1xi1> to vector<8x128xi1>
    %594 = arith.select %593, %583, %551 : vector<8x128xi1>, vector<8x128xf32>
    %c5_i32_176 = arith.constant 5 : i32
    %c8_i32_177 = arith.constant 8 : i32
    %595 = arith.muli %c5_i32_176, %c8_i32_177 : i32
    %596 = tpu.assume_multiple %595, 8 : i32
    %597 = arith.truncf %591 : vector<8x128xf32> to vector<8x128xbf16>
    %c1_178 = arith.constant 1 : index
    %c0_179 = arith.constant 0 : index
    %c0_180 = arith.constant 0 : index
    %598 = vector.load %arg3[%c1_178, %c0_179, %c0_180] : memref<2x128x512xbf16, #tpu.memory_space<vmem>>, vector<1x128x512xbf16>
    %599 = vector.shape_cast %598 : vector<1x128x512xbf16> to vector<128x512xbf16>
    %cst_181 = arith.constant dense<0.000000e+00> : vector<8x512xf32>
    %600 = tpu.matmul %597, %599, %cst_181 {dimension_numbers = #tpu.dot_dimension_numbers<[1], [0], [0], [1], [0, 0, 1, 1], [], []>} : vector<8x128xbf16>, vector<128x512xbf16>, vector<8x512xf32> -> vector<8x512xf32>
    %601 = arith.index_cast %596 : i32 to index
    %c0_182 = arith.constant 0 : index
    %602 = vector.load %arg7[%601, %c0_182] : memref<64x512xf32, #tpu.memory_space<vmem>>, vector<8x512xf32>
    %603 = arith.addf %600, %602 : vector<8x512xf32>
    %604 = vector.extract_strided_slice %603 {offsets = [0, 0], sizes = [8, 128], strides = [1, 1]} : vector<8x512xf32> to vector<8x128xf32>
    %605 = arith.negf %604 : vector<8x128xf32>
    %606 = math.exp %605 : vector<8x128xf32>
    %cst_183 = arith.constant 1.000000e+00 : f32
    %607 = vector.broadcast %cst_183 : f32 to vector<8x128xf32>
    %608 = arith.addf %607, %606 : vector<8x128xf32>
    %609 = arith.divf %607, %608 : vector<8x128xf32>
    %610 = vector.extract_strided_slice %603 {offsets = [0, 128], sizes = [8, 128], strides = [1, 1]} : vector<8x512xf32> to vector<8x128xf32>
    %611 = arith.negf %610 : vector<8x128xf32>
    %612 = math.exp %611 : vector<8x128xf32>
    %cst_184 = arith.constant 1.000000e+00 : f32
    %613 = vector.broadcast %cst_184 : f32 to vector<8x128xf32>
    %614 = arith.addf %613, %612 : vector<8x128xf32>
    %615 = arith.divf %613, %614 : vector<8x128xf32>
    %616 = vector.extract_strided_slice %603 {offsets = [0, 256], sizes = [8, 128], strides = [1, 1]} : vector<8x512xf32> to vector<8x128xf32>
    %617 = math.tanh %616 : vector<8x128xf32>
    %618 = vector.extract_strided_slice %603 {offsets = [0, 384], sizes = [8, 128], strides = [1, 1]} : vector<8x512xf32> to vector<8x128xf32>
    %619 = arith.negf %618 : vector<8x128xf32>
    %620 = math.exp %619 : vector<8x128xf32>
    %cst_185 = arith.constant 1.000000e+00 : f32
    %621 = vector.broadcast %cst_185 : f32 to vector<8x128xf32>
    %622 = arith.addf %621, %620 : vector<8x128xf32>
    %623 = arith.divf %621, %622 : vector<8x128xf32>
    %624 = arith.mulf %615, %594 : vector<8x128xf32>
    %625 = arith.mulf %609, %617 : vector<8x128xf32>
    %626 = arith.addf %624, %625 : vector<8x128xf32>
    %627 = math.tanh %626 : vector<8x128xf32>
    %628 = arith.mulf %623, %627 : vector<8x128xf32>
    %c0_186 = arith.constant 0 : index
    %c0_187 = arith.constant 0 : index
    %629 = vector.load %arg1[%c0_186, %c0_187] : memref<8x1xi32, #tpu.memory_space<vmem>>, vector<8x1xi32>
    %630 = vector.broadcast %c5_i32_176 : i32 to vector<8x1xi32>
    %631 = arith.cmpi sgt, %629, %630 : vector<8x1xi32>
    %632 = vector.shape_cast %631 : vector<8x1xi1> to vector<8x1xi1>
    %633 = vector.broadcast %632 : vector<8x1xi1> to vector<8x128xi1>
    %634 = arith.select %633, %628, %591 : vector<8x128xi1>, vector<8x128xf32>
    %635 = vector.shape_cast %631 : vector<8x1xi1> to vector<8x1xi1>
    %636 = vector.broadcast %635 : vector<8x1xi1> to vector<8x128xi1>
    %637 = arith.select %636, %626, %594 : vector<8x128xi1>, vector<8x128xf32>
    %c6_i32_188 = arith.constant 6 : i32
    %c8_i32_189 = arith.constant 8 : i32
    %638 = arith.muli %c6_i32_188, %c8_i32_189 : i32
    %639 = tpu.assume_multiple %638, 8 : i32
    %640 = arith.truncf %634 : vector<8x128xf32> to vector<8x128xbf16>
    %c1_190 = arith.constant 1 : index
    %c0_191 = arith.constant 0 : index
    %c0_192 = arith.constant 0 : index
    %641 = vector.load %arg3[%c1_190, %c0_191, %c0_192] : memref<2x128x512xbf16, #tpu.memory_space<vmem>>, vector<1x128x512xbf16>
    %642 = vector.shape_cast %641 : vector<1x128x512xbf16> to vector<128x512xbf16>
    %cst_193 = arith.constant dense<0.000000e+00> : vector<8x512xf32>
    %643 = tpu.matmul %640, %642, %cst_193 {dimension_numbers = #tpu.dot_dimension_numbers<[1], [0], [0], [1], [0, 0, 1, 1], [], []>} : vector<8x128xbf16>, vector<128x512xbf16>, vector<8x512xf32> -> vector<8x512xf32>
    %644 = arith.index_cast %639 : i32 to index
    %c0_194 = arith.constant 0 : index
    %645 = vector.load %arg7[%644, %c0_194] : memref<64x512xf32, #tpu.memory_space<vmem>>, vector<8x512xf32>
    %646 = arith.addf %643, %645 : vector<8x512xf32>
    %647 = vector.extract_strided_slice %646 {offsets = [0, 0], sizes = [8, 128], strides = [1, 1]} : vector<8x512xf32> to vector<8x128xf32>
    %648 = arith.negf %647 : vector<8x128xf32>
    %649 = math.exp %648 : vector<8x128xf32>
    %cst_195 = arith.constant 1.000000e+00 : f32
    %650 = vector.broadcast %cst_195 : f32 to vector<8x128xf32>
    %651 = arith.addf %650, %649 : vector<8x128xf32>
    %652 = arith.divf %650, %651 : vector<8x128xf32>
    %653 = vector.extract_strided_slice %646 {offsets = [0, 128], sizes = [8, 128], strides = [1, 1]} : vector<8x512xf32> to vector<8x128xf32>
    %654 = arith.negf %653 : vector<8x128xf32>
    %655 = math.exp %654 : vector<8x128xf32>
    %cst_196 = arith.constant 1.000000e+00 : f32
    %656 = vector.broadcast %cst_196 : f32 to vector<8x128xf32>
    %657 = arith.addf %656, %655 : vector<8x128xf32>
    %658 = arith.divf %656, %657 : vector<8x128xf32>
    %659 = vector.extract_strided_slice %646 {offsets = [0, 256], sizes = [8, 128], strides = [1, 1]} : vector<8x512xf32> to vector<8x128xf32>
    %660 = math.tanh %659 : vector<8x128xf32>
    %661 = vector.extract_strided_slice %646 {offsets = [0, 384], sizes = [8, 128], strides = [1, 1]} : vector<8x512xf32> to vector<8x128xf32>
    %662 = arith.negf %661 : vector<8x128xf32>
    %663 = math.exp %662 : vector<8x128xf32>
    %cst_197 = arith.constant 1.000000e+00 : f32
    %664 = vector.broadcast %cst_197 : f32 to vector<8x128xf32>
    %665 = arith.addf %664, %663 : vector<8x128xf32>
    %666 = arith.divf %664, %665 : vector<8x128xf32>
    %667 = arith.mulf %658, %637 : vector<8x128xf32>
    %668 = arith.mulf %652, %660 : vector<8x128xf32>
    %669 = arith.addf %667, %668 : vector<8x128xf32>
    %670 = math.tanh %669 : vector<8x128xf32>
    %671 = arith.mulf %666, %670 : vector<8x128xf32>
    %c0_198 = arith.constant 0 : index
    %c0_199 = arith.constant 0 : index
    %672 = vector.load %arg1[%c0_198, %c0_199] : memref<8x1xi32, #tpu.memory_space<vmem>>, vector<8x1xi32>
    %673 = vector.broadcast %c6_i32_188 : i32 to vector<8x1xi32>
    %674 = arith.cmpi sgt, %672, %673 : vector<8x1xi32>
    %675 = vector.shape_cast %674 : vector<8x1xi1> to vector<8x1xi1>
    %676 = vector.broadcast %675 : vector<8x1xi1> to vector<8x128xi1>
    %677 = arith.select %676, %671, %634 : vector<8x128xi1>, vector<8x128xf32>
    %678 = vector.shape_cast %674 : vector<8x1xi1> to vector<8x1xi1>
    %679 = vector.broadcast %678 : vector<8x1xi1> to vector<8x128xi1>
    %680 = arith.select %679, %669, %637 : vector<8x128xi1>, vector<8x128xf32>
    %c7_i32_200 = arith.constant 7 : i32
    %c8_i32_201 = arith.constant 8 : i32
    %681 = arith.muli %c7_i32_200, %c8_i32_201 : i32
    %682 = tpu.assume_multiple %681, 8 : i32
    %683 = arith.truncf %677 : vector<8x128xf32> to vector<8x128xbf16>
    %c1_202 = arith.constant 1 : index
    %c0_203 = arith.constant 0 : index
    %c0_204 = arith.constant 0 : index
    %684 = vector.load %arg3[%c1_202, %c0_203, %c0_204] : memref<2x128x512xbf16, #tpu.memory_space<vmem>>, vector<1x128x512xbf16>
    %685 = vector.shape_cast %684 : vector<1x128x512xbf16> to vector<128x512xbf16>
    %cst_205 = arith.constant dense<0.000000e+00> : vector<8x512xf32>
    %686 = tpu.matmul %683, %685, %cst_205 {dimension_numbers = #tpu.dot_dimension_numbers<[1], [0], [0], [1], [0, 0, 1, 1], [], []>} : vector<8x128xbf16>, vector<128x512xbf16>, vector<8x512xf32> -> vector<8x512xf32>
    %687 = arith.index_cast %682 : i32 to index
    %c0_206 = arith.constant 0 : index
    %688 = vector.load %arg7[%687, %c0_206] : memref<64x512xf32, #tpu.memory_space<vmem>>, vector<8x512xf32>
    %689 = arith.addf %686, %688 : vector<8x512xf32>
    %690 = vector.extract_strided_slice %689 {offsets = [0, 0], sizes = [8, 128], strides = [1, 1]} : vector<8x512xf32> to vector<8x128xf32>
    %691 = arith.negf %690 : vector<8x128xf32>
    %692 = math.exp %691 : vector<8x128xf32>
    %cst_207 = arith.constant 1.000000e+00 : f32
    %693 = vector.broadcast %cst_207 : f32 to vector<8x128xf32>
    %694 = arith.addf %693, %692 : vector<8x128xf32>
    %695 = arith.divf %693, %694 : vector<8x128xf32>
    %696 = vector.extract_strided_slice %689 {offsets = [0, 128], sizes = [8, 128], strides = [1, 1]} : vector<8x512xf32> to vector<8x128xf32>
    %697 = arith.negf %696 : vector<8x128xf32>
    %698 = math.exp %697 : vector<8x128xf32>
    %cst_208 = arith.constant 1.000000e+00 : f32
    %699 = vector.broadcast %cst_208 : f32 to vector<8x128xf32>
    %700 = arith.addf %699, %698 : vector<8x128xf32>
    %701 = arith.divf %699, %700 : vector<8x128xf32>
    %702 = vector.extract_strided_slice %689 {offsets = [0, 256], sizes = [8, 128], strides = [1, 1]} : vector<8x512xf32> to vector<8x128xf32>
    %703 = math.tanh %702 : vector<8x128xf32>
    %704 = vector.extract_strided_slice %689 {offsets = [0, 384], sizes = [8, 128], strides = [1, 1]} : vector<8x512xf32> to vector<8x128xf32>
    %705 = arith.negf %704 : vector<8x128xf32>
    %706 = math.exp %705 : vector<8x128xf32>
    %cst_209 = arith.constant 1.000000e+00 : f32
    %707 = vector.broadcast %cst_209 : f32 to vector<8x128xf32>
    %708 = arith.addf %707, %706 : vector<8x128xf32>
    %709 = arith.divf %707, %708 : vector<8x128xf32>
    %710 = arith.mulf %701, %680 : vector<8x128xf32>
    %711 = arith.mulf %695, %703 : vector<8x128xf32>
    %712 = arith.addf %710, %711 : vector<8x128xf32>
    %713 = math.tanh %712 : vector<8x128xf32>
    %714 = arith.mulf %709, %713 : vector<8x128xf32>
    %c0_210 = arith.constant 0 : index
    %c0_211 = arith.constant 0 : index
    %715 = vector.load %arg1[%c0_210, %c0_211] : memref<8x1xi32, #tpu.memory_space<vmem>>, vector<8x1xi32>
    %716 = vector.broadcast %c7_i32_200 : i32 to vector<8x1xi32>
    %717 = arith.cmpi sgt, %715, %716 : vector<8x1xi32>
    %718 = vector.shape_cast %717 : vector<8x1xi1> to vector<8x1xi1>
    %719 = vector.broadcast %718 : vector<8x1xi1> to vector<8x128xi1>
    %720 = arith.select %719, %714, %677 : vector<8x128xi1>, vector<8x128xf32>
    %721 = vector.shape_cast %717 : vector<8x1xi1> to vector<8x1xi1>
    %722 = vector.broadcast %721 : vector<8x1xi1> to vector<8x128xi1>
    %723 = arith.select %722, %712, %680 : vector<8x128xi1>, vector<8x128xf32>
    %c8_i32_212 = arith.constant 8 : i32
    %c0_213 = arith.constant 0 : index
    %c0_214 = arith.constant 0 : index
    %724 = vector.load %arg5[%c0_213, %c0_214] : memref<8x128xf32, #tpu.memory_space<vmem>>, vector<8x128xf32>
    tpu.vector_store %arg5[%c0_213, %c0_214], %720 {strides = array<i32>} : memref<8x128xf32, #tpu.memory_space<vmem>>, vector<8x128xf32>,
    return
  }
}

</mosaic_0001>

<bundles_post_ra>
// kernel: tpu_custom_call.1
= control target key start
LH: loop header
LB: loop body
LE: loop exit
PB: predicated region body
PF: predicated region fallthrough
CT: control target
= control target key end

     0   :  { %10 = vsyncpa [#allocation5], 0  ;;  %s7859_s0 = inlined_call_operand.hbm [shape: bf16[64,128], index: 0, kind: input, shape index: {}]   ;;  %s7860_s1 = inlined_call_operand.vmem [shape: s32[8,1], index: 1, kind: input, shape index: {}]   ;;  %s7861_s2 = inlined_call_operand.hbm [shape: bf16[2,128,512], index: 2, kind: input, shape index: {}]   ;;  %s7862_s3 = inlined_call_operand.hbm [shape: bf16[2,128,512], index: 3, kind: input, shape index: {}]   ;;  %s7863_s4 = inlined_call_operand.vmem [shape: f32[2,1,512], index: 4, kind: input, shape index: {}]   ;;  %s7864_s5 = inlined_call_operand.hbm [shape: f32[8,128], index: 5, kind: output, shape index: {}]  }
   0x1   :  { %11 = vsyncpa [#allocation8], 0  ;;  %s32_s20 = sshll.u32 %s7861_s2, 4  ;;  %s33_s20 = int_to_ptr.hbm [resolvable:$true] %s32_s20 }
   0x2   :  { %12 = vsyncpa [#allocation6], 0  ;;  %s6899_s21 = smov [#allocation7]   ;;  %s17_s25 = sshll.u32 %s7859_s0, 4  ;;  %s18_s25 = int_to_ptr.hbm [resolvable:$true] %s17_s25 }
   0x3   :  { %s34_s22 = sshll.u32 %s6899_s21, 4  ;;  %s6900_s26 = smov 256   ;;  %s35_s22 = int_to_ptr.vmem [resolvable:$true] %s34_s22 }
   0x4   :  { %s6901_s27 = smov 16   ;;  %s6902_s28 = smov [#allocation4]  }
   0x5   :  { %40 = dma.hbm_to_vmem [thread:$0]  %s33_s20, 8192, %s35_s22, [#allocation8], %s6900_s26, %s6900_s26, %s6901_s27  }
   0x6   :  { %s19_s29 = sshll.u32 %s6902_s28, 4  ;;  %s6903_s30 = smov 64   ;;  %s20_s29 = int_to_ptr.vmem [resolvable:$true] %s19_s29 }
   0x7   :  { %s6904_s6 = smov 4   ;;  %s45_s8 = sshll.u32 %s7862_s3, 4  ;;  %s46_s8 = int_to_ptr.hbm [resolvable:$true] %s45_s8 }
   0x8   :  { %25 = dma.hbm_to_vmem [thread:$0]  %s18_s25, 512, %s20_s29, [#allocation5], %s6903_s30, %s6903_s30, %s6904_s6  }
   0x9   :  { %s6905_s9 = smov [#allocation9]  }
   0xa   :  { %s47_s10 = sshll.u32 %s6905_s9, 4  ;;  %s48_s10 = int_to_ptr.vmem [resolvable:$true] %s47_s10 }
   0xb   :  { %53 = dma.hbm_to_vmem [thread:$0]  %s46_s8, 8192, %s48_s10, [#allocation8], %s6900_s26, %s6900_s26, %s6901_s27  }
   0xc   :  { %6893 = dma.done.wait [#allocation5], 512  }
   0xd   :  { %6894 = vsyncadd [#allocation5], 4294966784 }
   0xe   :  { %6895 = dma.done.wait [#allocation8], 16384  }
   0xf   :  { %6896 = vsyncadd [#allocation8], 4294950912  ;;  %v4792_v0 = vld [vmem:[#allocation7 + $0xe0] sm:$0xf]  ;;  %v6193_v1 = vld [vmem:[#allocation7 + $0xec] sm:$0xf0] }
  0x10   :  { %v6191_v2 = vld [vmem:[#allocation7 + $0xe4] sm:$0xf]  ;;  %v4793_v3 = vor.u32 %v6193_v1, %v4792_v0  ;;  %v4794_v4 = vld [vmem:[#allocation7 + $0xf0] sm:$0xf0]  ;;  %v4800_v5 = vld [vmem:[#allocation7 + $0xe8] sm:$0xf] }
  0x11   :  { %v6194_v6 = vld [vmem:[#allocation7 + $0xf4] sm:$0xf0]  ;;  %v4797_v7 = vor.u32 %v6191_v2, %v4794_v4  ;;  %v6192_v9 = vld [vmem:[#allocation7 + $0xec] sm:$0xf]  ;;  %v4802_v10 = vld [vmem:[#allocation7 + $0xf8] sm:$0xf0] }
  0x12   :  { %v4801_v8 = vor.u32 %v6194_v6, %v4800_v5  ;;  %v4776_v11 = vld [vmem:[#allocation7 + $0xc0] sm:$0xf]  ;;  %303 = vmatpush.bf16.msra.mxu0 %v4793_v3  ;;  %v4805_v12 = vor.u32 %v6192_v9, %v4802_v10  ;;  %v6189_v13 = vld [vmem:[#allocation7 + $0xcc] sm:$0xf0]  ;;  %v6187_v14 = vld [vmem:[#allocation7 + $0xc4] sm:$0xf] }
  0x13   :  { %v4778_v15 = vld [vmem:[#allocation7 + $0xd0] sm:$0xf0]  ;;  %332 = vmatpush.bf16.msra.mxu1 %v4797_v7  ;;  %v4777_v16 = vor.u32 %v6189_v13, %v4776_v11  ;;  %v4784_v18 = vld [vmem:[#allocation7 + $0xc8] sm:$0xf]  ;;  %v6190_v19 = vld [vmem:[#allocation7 + $0xd4] sm:$0xf0] }
  0x14   :  { %361 = vmatpush.bf16.msra.mxu2 %v4801_v8  ;;  %v4781_v17 = vor.u32 %v6187_v14, %v4778_v15  ;;  %v6188_v20 = vld [vmem:[#allocation7 + $0xcc] sm:$0xf]  ;;  %390 = vmatpush.bf16.msra.mxu3 %v4805_v12  ;;  %v4785_v21 = vor.u32 %v6190_v19, %v4784_v18  ;;  %v4786_v22 = vld [vmem:[#allocation7 + $0xd8] sm:$0xf0]  ;;  %v4760_v23 = vld [vmem:[#allocation7 + $0xa0] sm:$0xf] }
  0x15   :  { %v6185_v24 = vld [vmem:[#allocation7 + $0xac] sm:$0xf0]  ;;  %v4789_v25 = vor.u32 %v6188_v20, %v4786_v22  ;;  %v6183_v26 = vld [vmem:[#allocation7 + $0xa4] sm:$0xf]  ;;  %v4762_v27 = vld [vmem:[#allocation7 + $0xb0] sm:$0xf0] }
  0x16   :  { %v4768_v28 = vld [vmem:[#allocation7 + $0xa8] sm:$0xf]  ;;  %304 = vmatpush.bf16.msra.mxu0 %v4777_v16  ;;  %v4761_v29 = vor.u32 %v6185_v24, %v4760_v23  ;;  %v6186_v30 = vld [vmem:[#allocation7 + $0xb4] sm:$0xf0]  ;;  %v6184_v31 = vld [vmem:[#allocation7 + $0xac] sm:$0xf]  ;;  %v4765_v33 = vor.u32 %v6183_v26, %v4762_v27 }
  0x17   :  { %v4770_v32 = vld [vmem:[#allocation7 + $0xb8] sm:$0xf0]  ;;  %333 = vmatpush.bf16.msra.mxu1 %v4781_v17  ;;  %v4769_v34 = vor.u32 %v6186_v30, %v4768_v28  ;;  %v4744_v35 = vld [vmem:[#allocation7 + $0x80] sm:$0xf]  ;;  %v6181_v36 = vld [vmem:[#allocation7 + $0x8c] sm:$0xf0] }
  0x18   :  { %362 = vmatpush.bf16.msra.mxu2 %v4785_v21  ;;  %v6179_v37 = vld [vmem:[#allocation7 + $0x84] sm:$0xf]  ;;  %391 = vmatpush.bf16.msra.mxu3 %v4789_v25  ;;  %v4773_v38 = vor.u32 %v6184_v31, %v4770_v32  ;;  %v4746_v39 = vld [vmem:[#allocation7 + $0x90] sm:$0xf0]  ;;  %v4752_v40 = vld [vmem:[#allocation7 + $0x88] sm:$0xf]  ;;  %v4745_v44 = vor.u32 %v6181_v36, %v4744_v35 }
  0x19   :  { %v6182_v41 = vld [vmem:[#allocation7 + $0x94] sm:$0xf0]  ;;  %v6180_v42 = vld [vmem:[#allocation7 + $0x8c] sm:$0xf]  ;;  %v4754_v43 = vld [vmem:[#allocation7 + $0x98] sm:$0xf0]  ;;  %v4749_v45 = vor.u32 %v6179_v37, %v4746_v39 }
  0x1a   :  { %305 = vmatpush.bf16.msra.mxu0 %v4761_v29  ;;  %v4753_v46 = vor.u32 %v6182_v41, %v4752_v40  ;;  %v4728_v47 = vld [vmem:[#allocation7 + $0x60] sm:$0xf]  ;;  %v6177_v48 = vld [vmem:[#allocation7 + $0x6c] sm:$0xf0]  ;;  %v6175_v49 = vld [vmem:[#allocation7 + $0x64] sm:$0xf]  ;;  %v4757_v50 = vor.u32 %v6180_v42, %v4754_v43 }
  0x1b   :  { %334 = vmatpush.bf16.msra.mxu1 %v4765_v33  ;;  %v4730_v51 = vld [vmem:[#allocation7 + $0x70] sm:$0xf0]  ;;  %v4736_v52 = vld [vmem:[#allocation7 + $0x68] sm:$0xf]  ;;  %v6178_v53 = vld [vmem:[#allocation7 + $0x74] sm:$0xf0]  ;;  %v4729_v56 = vor.u32 %v6177_v48, %v4728_v47 }
  0x1c   :  { %363 = vmatpush.bf16.msra.mxu2 %v4769_v34  ;;  %392 = vmatpush.bf16.msra.mxu3 %v4773_v38  ;;  %v6176_v54 = vld [vmem:[#allocation7 + $0x6c] sm:$0xf]  ;;  %v4738_v55 = vld [vmem:[#allocation7 + $0x78] sm:$0xf0]  ;;  %v4733_v57 = vor.u32 %v6175_v49, %v4730_v51  ;;  %v4737_v58 = vor.u32 %v6178_v53, %v4736_v52  ;;  %v4712_v59 = vld [vmem:[#allocation7 + $0x40] sm:$0xf] }
  0x1d   :  { %v6173_v60 = vld [vmem:[#allocation7 + $0x4c] sm:$0xf0]  ;;  %v6171_v61 = vld [vmem:[#allocation7 + $0x44] sm:$0xf]  ;;  %v4741_v62 = vor.u32 %v6176_v54, %v4738_v55  ;;  %v4714_v63 = vld [vmem:[#allocation7 + $0x50] sm:$0xf0] }
  0x1e   :  { %306 = vmatpush.bf16.msra.mxu0 %v4745_v44  ;;  %v4720_v0 = vld [vmem:[#allocation7 + $0x48] sm:$0xf]  ;;  %v6174_v1 = vld [vmem:[#allocation7 + $0x54] sm:$0xf0]  ;;  %v6172_v2 = vld [vmem:[#allocation7 + $0x4c] sm:$0xf]  ;;  %v4713_v4 = vor.u32 %v6173_v60, %v4712_v59  ;;  %v4717_v5 = vor.u32 %v6171_v61, %v4714_v63 }
  0x1f   :  { %335 = vmatpush.bf16.msra.mxu1 %v4749_v45  ;;  %v4722_v3 = vld [vmem:[#allocation7 + $0x58] sm:$0xf0]  ;;  %v4721_v6 = vor.u32 %v6174_v1, %v4720_v0  ;;  %v4696_v7 = vld [vmem:[#allocation7 + $0x20] sm:$0xf]  ;;  %v6169_v8 = vld [vmem:[#allocation7 + $0x2c] sm:$0xf0] }
  0x20   :  { %364 = vmatpush.bf16.msra.mxu2 %v4753_v46  ;;  %393 = vmatpush.bf16.msra.mxu3 %v4757_v50  ;;  %v6167_v9 = vld [vmem:[#allocation7 + $0x24] sm:$0xf]  ;;  %v4725_v10 = vor.u32 %v6172_v2, %v4722_v3  ;;  %v4698_v11 = vld [vmem:[#allocation7 + $0x30] sm:$0xf0]  ;;  %v4704_v12 = vld [vmem:[#allocation7 + $0x28] sm:$0xf]  ;;  %v4697_v16 = vor.u32 %v6169_v8, %v4696_v7 }
  0x21   :  { %v6170_v13 = vld [vmem:[#allocation7 + $0x34] sm:$0xf0]  ;;  %v6168_v14 = vld [vmem:[#allocation7 + $0x2c] sm:$0xf]  ;;  %v4706_v15 = vld [vmem:[#allocation7 + $0x38] sm:$0xf0]  ;;  %v4701_v18 = vor.u32 %v6167_v9, %v4698_v11 }
  0x22   :  { %307 = vmatpush.bf16.msra.mxu0 %v4729_v56  ;;  %v4680_v17 = vld [vmem:[#allocation7] sm:$0xf]  ;;  %v4705_v19 = vor.u32 %v6170_v13, %v4704_v12  ;;  %v6165_v20 = vld [vmem:[#allocation7 + $0xc] sm:$0xf0]  ;;  %v6163_v21 = vld [vmem:[#allocation7 + $0x4] sm:$0xf]  ;;  %v4709_v23 = vor.u32 %v6168_v14, %v4706_v15 }
  0x23   :  { %336 = vmatpush.bf16.msra.mxu1 %v4733_v57  ;;  %v4682_v22 = vld [vmem:[#allocation7 + $0x10] sm:$0xf0]  ;;  %v4688_v24 = vld [vmem:[#allocation7 + $0x8] sm:$0xf]  ;;  %v6166_v25 = vld [vmem:[#allocation7 + $0x14] sm:$0xf0]  ;;  %v4681_v30 = vor.u32 %v6165_v20, %v4680_v17 }
  0x24   :  { %365 = vmatpush.bf16.msra.mxu2 %v4737_v58  ;;  %394 = vmatpush.bf16.msra.mxu3 %v4741_v62  ;;  %v6164_v26 = vld [vmem:[#allocation7 + $0xc] sm:$0xf]  ;;  %v4690_v27 = vld [vmem:[#allocation7 + $0x18] sm:$0xf0]  ;;  %v4920_v28 = vld [vmem:[#allocation9 + $0xe0] sm:$0xf]  ;;  %v4685_v33 = vor.u32 %v6163_v21, %v4682_v22  ;;  %v4689_v34 = vor.u32 %v6166_v25, %v4688_v24 }
  0x25   :  { %v6225_v29 = vld [vmem:[#allocation9 + $0xec] sm:$0xf0]  ;;  %v6223_v31 = vld [vmem:[#allocation9 + $0xe4] sm:$0xf]  ;;  %v4922_v32 = vld [vmem:[#allocation9 + $0xf0] sm:$0xf0]  ;;  %v4693_v36 = vor.u32 %v6164_v26, %v4690_v27 }
  0x26   :  { %308 = vmatpush.bf16.msra.mxu0 %v4713_v4  ;;  %v6159_v35 = vld [vmem:[#allocation4] sm:$0xff]  ;;  %v4921_v37 = vor.u32 %v6225_v29, %v4920_v28  ;;  %v6224_v38 = vld [vmem:[#allocation9 + $0xec] sm:$0xf]  ;;  %v4928_v39 = vld [vmem:[#allocation9 + $0xe8] sm:$0xf]  ;;  %v4925_v41 = vor.u32 %v6223_v31, %v4922_v32  ;;  %s4644_s21 = sshll.u32 %s7864_s5, 4  ;;  %s4645_s21 = int_to_ptr.hbm [resolvable:$true] %s4644_s21 }
  0x27   :  { %337 = vmatpush.bf16.msra.mxu1 %v4717_v5  ;;  %v6226_v40 = vld [vmem:[#allocation9 + $0xf4] sm:$0xf0]  ;;  %v4930_v42 = vld [vmem:[#allocation9 + $0xf8] sm:$0xf0]  ;;  %v4904_v43 = vld [vmem:[#allocation9 + $0xc0] sm:$0xf] }
  0x28   :  { %366 = vmatpush.bf16.msra.mxu2 %v4721_v6  ;;  %395 = vmatpush.bf16.msra.mxu3 %v4725_v10  ;;  %v6221_v44 = vld [vmem:[#allocation9 + $0xcc] sm:$0xf0]  ;;  %v6219_v45 = vld [vmem:[#allocation9 + $0xc4] sm:$0xf]  ;;  %v4906_v46 = vld [vmem:[#allocation9 + $0xd0] sm:$0xf0]  ;;  %v4929_v47 = vor.u32 %v6226_v40, %v4928_v39  ;;  %v4933_v48 = vor.u32 %v6224_v38, %v4930_v42 }
  0x29   :  { %v4905_v49 = vor.u32 %v6221_v44, %v4904_v43  ;;  %v6220_v50 = vld [vmem:[#allocation9 + $0xcc] sm:$0xf]  ;;  %v4912_v51 = vld [vmem:[#allocation9 + $0xc8] sm:$0xf]  ;;  %v6222_v52 = vld [vmem:[#allocation9 + $0xd4] sm:$0xf0]  ;;  %v4909_v53 = vor.u32 %v6219_v45, %v4906_v46 }
  0x2a   :  { %309 = vmatpush.bf16.msra.mxu0 %v4697_v16  ;;  %v4914_v54 = vld [vmem:[#allocation9 + $0xd8] sm:$0xf0]  ;;  %v4888_v55 = vld [vmem:[#allocation9 + $0xa0] sm:$0xf]  ;;  %v6217_v56 = vld [vmem:[#allocation9 + $0xac] sm:$0xf0]  ;;  %v4913_v59 = vor.u32 %v6222_v52, %v4912_v51 }
  0x2b   :  { %338 = vmatpush.bf16.msra.mxu1 %v4701_v18  ;;  %v6215_v57 = vld [vmem:[#allocation9 + $0xa4] sm:$0xf]  ;;  %v4890_v58 = vld [vmem:[#allocation9 + $0xb0] sm:$0xf0]  ;;  %v4917_v60 = vor.u32 %v6220_v50, %v4914_v54  ;;  %v4889_v61 = vor.u32 %v6217_v56, %v4888_v55  ;;  %v6216_v62 = vld [vmem:[#allocation9 + $0xac] sm:$0xf] }
  0x2c   :  { %367 = vmatpush.bf16.msra.mxu2 %v4705_v19  ;;  %396 = vmatpush.bf16.msra.mxu3 %v4709_v23  ;;  %v4896_v63 = vld [vmem:[#allocation9 + $0xa8] sm:$0xf]  ;;  %v6218_v0 = vld [vmem:[#allocation9 + $0xb4] sm:$0xf0]  ;;  %v4893_v1 = vor.u32 %v6215_v57, %v4890_v58  ;;  %v4898_v2 = vld [vmem:[#allocation9 + $0xb8] sm:$0xf0] }
  0x2d   :  { %v4872_v3 = vld [vmem:[#allocation9 + $0x80] sm:$0xf]  ;;  %v6213_v4 = vld [vmem:[#allocation9 + $0x8c] sm:$0xf0]  ;;  %v6211_v5 = vld [vmem:[#allocation9 + $0x84] sm:$0xf]  ;;  %v4897_v7 = vor.u32 %v6218_v0, %v4896_v63  ;;  %v4901_v8 = vor.u32 %v6216_v62, %v4898_v2 }
  0x2e   :  { %310 = vmatpush.bf16.msra.mxu0 %v4681_v30  ;;  %v4874_v6 = vld [vmem:[#allocation9 + $0x90] sm:$0xf0]  ;;  %v4873_v9 = vor.u32 %v6213_v4, %v4872_v3  ;;  %v6212_v10 = vld [vmem:[#allocation9 + $0x8c] sm:$0xf]  ;;  %v4880_v11 = vld [vmem:[#allocation9 + $0x88] sm:$0xf] }
  0x2f   :  { %339 = vmatpush.bf16.msra.mxu1 %v4685_v33  ;;  %v6214_v12 = vld [vmem:[#allocation9 + $0x94] sm:$0xf0]  ;;  %v4877_v13 = vor.u32 %v6211_v5, %v4874_v6  ;;  %v4882_v14 = vld [vmem:[#allocation9 + $0x98] sm:$0xf0]  ;;  %v4856_v15 = vld [vmem:[#allocation9 + $0x60] sm:$0xf] }
  0x30   :  { %368 = vmatpush.bf16.msra.mxu2 %v4689_v34  ;;  %397 = vmatpush.bf16.msra.mxu3 %v4693_v36  ;;  %v6209_v16 = vld [vmem:[#allocation9 + $0x6c] sm:$0xf0]  ;;  %v6207_v17 = vld [vmem:[#allocation9 + $0x64] sm:$0xf]  ;;  %v4858_v18 = vld [vmem:[#allocation9 + $0x70] sm:$0xf0]  ;;  %v4881_v20 = vor.u32 %v6214_v12, %v4880_v11  ;;  %v4885_v21 = vor.u32 %v6212_v10, %v4882_v14 }
  0x31   :  { %311 = vmatmul.bf16.vlgmr.msra.gmra.mxu0 %v6159_v35  ;;  %v6160_v19 = vld [vmem:[#allocation4 + $0x8] sm:$0xff]  ;;  %v4857_v22 = vor.u32 %v6209_v16, %v4856_v15  ;;  %v6210_v25 = vld [vmem:[#allocation9 + $0x74] sm:$0xf0]  ;;  %v4861_v26 = vor.u32 %v6207_v17, %v4858_v18  ;;  %v4866_v27 = vld [vmem:[#allocation9 + $0x78] sm:$0xf0]  ;;  %v6906_v0 = vmov 0  }
  0x32   :  { %650 = vmatpush.bf16.msrb.mxu0 %v4921_v37  ;;  %340 = vmatmul.bf16.vlgmr.msra.gmra.mxu1 %v6159_v35  ;;  %v6208_v23 = vld [vmem:[#allocation9 + $0x6c] sm:$0xf]  ;;  %v4864_v24 = vld [vmem:[#allocation9 + $0x68] sm:$0xf]  ;;  %v4840_v28 = vld [vmem:[#allocation9 + $0x40] sm:$0xf] }
  0x33   :  { %663 = vmatpush.bf16.msrb.mxu1 %v4925_v41  ;;  %369 = vmatmul.bf16.vlgmr.msra.gmra.mxu2 %v6159_v35  ;;  %v6205_v29 = vld [vmem:[#allocation9 + $0x4c] sm:$0xf0]  ;;  %v6203_v30 = vld [vmem:[#allocation9 + $0x44] sm:$0xf]  ;;  %v4842_v31 = vld [vmem:[#allocation9 + $0x50] sm:$0xf0]  ;;  %v4865_v32 = vor.u32 %v6210_v25, %v4864_v24  ;;  %v4869_v33 = vor.u32 %v6208_v23, %v4866_v27 }
  0x34   :  { %398 = vmatmul.bf16.vlgmr.msra.gmra.mxu3 %v6159_v35  ;;  %676 = vmatpush.bf16.msrb.mxu2 %v4929_v47  ;;  %v4841_v34 = vor.u32 %v6205_v29, %v4840_v28  ;;  %v4845_v35 = vor.u32 %v6203_v30, %v4842_v31  ;;  %v6204_v36 = vld [vmem:[#allocation9 + $0x4c] sm:$0xf]  ;;  %v4850_v37 = vld [vmem:[#allocation9 + $0x58] sm:$0xf0]  ;;  %v4824_v38 = vld [vmem:[#allocation9 + $0x20] sm:$0xf] }
  0x35   :  { %689 = vmatpush.bf16.msrb.mxu3 %v4933_v48  ;;  %v6201_v39 = vld [vmem:[#allocation9 + $0x2c] sm:$0xf0]  ;;  %v6199_v40 = vld [vmem:[#allocation9 + $0x24] sm:$0xf]  ;;  %v4853_v41 = vor.u32 %v6204_v36, %v4850_v37  ;;  %v4826_v43 = vld [vmem:[#allocation9 + $0x30] sm:$0xf0]  ;;  %6537 = vset.pattern.permute.xlu0 %v6906_v0 }
  0x36   :  { %651 = vmatpush.bf16.msrb.mxu0 %v4905_v49  ;;  %v4825_v42 = vor.u32 %v6201_v39, %v4824_v38  ;;  %v4848_v44 = vld [vmem:[#allocation9 + $0x48] sm:$0xf]  ;;  %v6206_v45 = vld [vmem:[#allocation9 + $0x54] sm:$0xf0]  ;;  %v4829_v46 = vor.u32 %v6199_v40, %v4826_v43  ;;  %v6200_v48 = vld [vmem:[#allocation9 + $0x2c] sm:$0xf]  ;;  %6538 = vset.pattern.permute.xlu1 %v6906_v0 }
  0x37   :  { %664 = vmatpush.bf16.msrb.mxu1 %v4909_v53  ;;  %v4849_v47 = vor.u32 %v6206_v45, %v4848_v44  ;;  %v4834_v49 = vld [vmem:[#allocation9 + $0x38] sm:$0xf0]  ;;  %v4808_v50 = vld [vmem:[#allocation9] sm:$0xf]  ;;  %v6197_v51 = vld [vmem:[#allocation9 + $0xc] sm:$0xf0]  ;;  %6539 = vset.pattern.permute.xlu2 %v6906_v0 }
  0x38   :  { %677 = vmatpush.bf16.msrb.mxu2 %v4913_v59  ;;  %v6195_v52 = vld [vmem:[#allocation9 + $0x4] sm:$0xf]  ;;  %v4810_v53 = vld [vmem:[#allocation9 + $0x10] sm:$0xf0]  ;;  %v4832_v54 = vld [vmem:[#allocation9 + $0x28] sm:$0xf]  ;;  %v4837_v56 = vor.u32 %v6200_v48, %v4834_v49  ;;  %v4809_v57 = vor.u32 %v6197_v51, %v4808_v50 }
  0x39   :  { %690 = vmatpush.bf16.msrb.mxu3 %v4917_v60  ;;  %v6202_v55 = vld [vmem:[#allocation9 + $0x34] sm:$0xf0]  ;;  %v4816_v59 = vld [vmem:[#allocation9 + $0x8] sm:$0xf]  ;;  %v6196_v62 = vld [vmem:[#allocation9 + $0xc] sm:$0xf] }
  0x3a   :  { %652 = vmatpush.bf16.msrb.mxu0 %v4889_v61  ;;  %v4833_v58 = vor.u32 %v6202_v55, %v4832_v54  ;;  %v6198_v60 = vld [vmem:[#allocation9 + $0x14] sm:$0xf0]  ;;  %v4813_v61 = vor.u32 %v6195_v52, %v4810_v53  ;;  %v4818_v63 = vld [vmem:[#allocation9 + $0x18] sm:$0xf0]  ;;  %v6161_v3 = vld [vmem:[#allocation4 + $0x10] sm:$0xff] }
  0x3b   :  { %665 = vmatpush.bf16.msrb.mxu1 %v4893_v1  ;;  %v4817_v1 = vor.u32 %v6198_v60, %v4816_v59  ;;  %v4821_v2 = vor.u32 %v6196_v62, %v4818_v63  ;;  %v6954_v4 = vld [vmem:[%s7860_s1] sm:$0xff]  ;;  %v6257_v48 = vld [vmem:[#allocation9 + $0xec] sm:$0xf0]  ;;  %v5053_v53 = vld [vmem:[#allocation9 + $0xf0] sm:$0xf0] }
  0x3c   :  { %678 = vmatpush.bf16.msrb.mxu2 %v4897_v7  ;;  %vm766_vm0 = vcmp.gt.s32.totalorder %v6954_v4, 0  ;;  %vm1091_vm1 = vcmp.gt.s32.totalorder %v6954_v4, 1  ;;  %v6162_v7 = vld [vmem:[#allocation4 + $0x18] sm:$0xff]  ;;  %vm2721_vm2 = vcmp.gt.s32.totalorder %v6954_v4, 6  ;;  %vm4245_vm3 = vcmp.gt.s32.totalorder %v6954_v4, 4 }
  0x3d   :  { %691 = vmatpush.bf16.msrb.mxu3 %v4901_v8  ;;  %v767_v5 = vsel %vm766_vm0, 1, %v6906_v0  ;;  %v1092_v6 = vsel %vm1091_vm1, 1, %v6906_v0  ;;  %v2722_v8 = vsel %vm2721_vm2, 1, %v6906_v0  ;;  %vm4629_vm4 = vcmp.gt.s32.totalorder %v6954_v4, 7  ;;  %v109_v17 = vld [vmem:[%s7863_s4] sm:$0xf] }
  0x3e   :  { %653 = vmatpush.bf16.msrb.mxu0 %v4873_v9  ;;  %769 = vperm.xlu0 %6537, %v767_v5   ;;  %v4246_v9 = vsel %vm4245_vm3, 1, %v6906_v0  ;;  %v4630_v10 = vsel %vm4629_vm4, 1, %v6906_v0  ;;  %v6985_v18 = vperm.slane %v109_v17, 0  ;;  %v7001_v27 = vperm.slane %v109_v17, 3  ;;  %v6255_v49 = vld [vmem:[#allocation9 + $0xe4] sm:$0xf] }
  0x3f   :  { %666 = vmatpush.bf16.msrb.mxu1 %v4877_v13  ;;  %v5059_v54 = vld [vmem:[#allocation9 + $0xe8] sm:$0xf]  ;;  %v6258_v55 = vld [vmem:[#allocation9 + $0xf4] sm:$0xf0]  ;;  %v6256_v60 = vld [vmem:[#allocation9 + $0xec] sm:$0xf] }
  0x40   :  { %679 = vmatpush.bf16.msrb.mxu2 %v4881_v20  ;;  %v6989_v20 = vperm.slane %v109_v17, 1  ;;  %v5060_v59 = vor.u32 %v6258_v55, %v5059_v54 }
  0x41   :  { %692 = vmatpush.bf16.msrb.mxu3 %v4885_v21  ;;  %316 = vmatmul.bf16.gmra.mxu0 %v6160_v19 }
  0x42   :  { %654 = vmatpush.bf16.msrb.mxu0 %v4857_v22  ;;  %345 = vmatmul.bf16.gmra.mxu1 %v6160_v19 }
  0x43   :  { %667 = vmatpush.bf16.msrb.mxu1 %v4861_v26  ;;  %374 = vmatmul.bf16.gmra.mxu2 %v6160_v19  ;;  %v6999_v26 = vperm.slane %v109_v17, 2  ;;  %v6252_v17 = vld [vmem:[#allocation9 + $0xcc] sm:$0xf] }
  0x44   :  { %403 = vmatmul.bf16.gmra.mxu3 %v6160_v19  ;;  %680 = vmatpush.bf16.msrb.mxu2 %v4865_v32 }
  0x45   :  { %693 = vmatpush.bf16.msrb.mxu3 %v4869_v33 }
  0x46   :  { %655 = vmatpush.bf16.msrb.mxu0 %v4841_v34  ;;  %1094 = vperm.xlu0 %6537, %v1092_v6  }
  0x47   :  { %668 = vmatpush.bf16.msrb.mxu1 %v4845_v35 }
  0x48   :  { %681 = vmatpush.bf16.msrb.mxu2 %v4849_v47  ;;  %v5051_v47 = vld [vmem:[#allocation9 + $0xe0] sm:$0xf] }
  0x49   :  { %694 = vmatpush.bf16.msrb.mxu3 %v4853_v41  ;;  %v5052_v52 = vor.u32 %v6257_v48, %v5051_v47 }
  0x4a   :  { %656 = vmatpush.bf16.msrb.mxu0 %v4825_v42 }
  0x4b   :  { %669 = vmatpush.bf16.msrb.mxu1 %v4829_v46 }
  0x4c   :  { %682 = vmatpush.bf16.msrb.mxu2 %v4833_v58  ;;  %v5056_v58 = vor.u32 %v6255_v49, %v5053_v53  ;;  %v5021_v49 = vld [vmem:[#allocation9 + $0xb0] sm:$0xf0] }
  0x4d   :  { %695 = vmatpush.bf16.msrb.mxu3 %v4837_v56 }
  0x4e   :  { %657 = vmatpush.bf16.msrb.mxu0 %v4809_v57  ;;  %2724 = vperm.xlu0 %6537, %v2722_v8   ;;  %v6254_v8 = vld [vmem:[#allocation9 + $0xd4] sm:$0xf0] }
  0x4f   :  { %670 = vmatpush.bf16.msrb.mxu1 %v4813_v61  ;;  %v5061_v61 = vld [vmem:[#allocation9 + $0xf8] sm:$0xf0] }
  0x50   :  { %683 = vmatpush.bf16.msrb.mxu2 %v4817_v1  ;;  %v5064_v63 = vor.u32 %v6256_v60, %v5061_v61  ;;  %v5035_v1 = vld [vmem:[#allocation9 + $0xc0] sm:$0xf] }
  0x51   :  { %696 = vmatpush.bf16.msrb.mxu3 %v4821_v2  ;;  %321 = vmatmul.bf16.gmra.mxu0 %v6161_v3  ;;  %v6253_v2 = vld [vmem:[#allocation9 + $0xcc] sm:$0xf0]  ;;  %v5003_v61 = vld [vmem:[#allocation9 + $0x80] sm:$0xf] }
  0x52   :  { %350 = vmatmul.bf16.gmra.mxu1 %v6161_v3  ;;  %975 = vmatpush.bf16.msra.mxu0 %v5052_v52  ;;  %v5036_v5 = vor.u32 %v6253_v2, %v5035_v1  ;;  %v6250_v52 = vld [vmem:[#allocation9 + $0xb4] sm:$0xf0]  ;;  %v6243_v2 = vld [vmem:[#allocation9 + $0x84] sm:$0xf] }
  0x53   :  { %379 = vmatmul.bf16.gmra.mxu2 %v6161_v3  ;;  %988 = vmatpush.bf16.msra.mxu1 %v5056_v58  ;;  %v6248_v58 = vld [vmem:[#allocation9 + $0xac] sm:$0xf] }
  0x54   :  { %408 = vmatmul.bf16.gmra.mxu3 %v6161_v3  ;;  %1001 = vmatpush.bf16.msra.mxu2 %v5060_v59  ;;  %v6251_v3 = vld [vmem:[#allocation9 + $0xc4] sm:$0xf]  ;;  %v5029_v59 = vld [vmem:[#allocation9 + $0xb8] sm:$0xf0] }
  0x55   :  { %1014 = vmatpush.bf16.msra.mxu3 %v5064_v63  ;;  %v5032_v60 = vor.u32 %v6248_v58, %v5029_v59  ;;  %v6245_v63 = vld [vmem:[#allocation9 + $0x8c] sm:$0xf0] }
  0x56   :  { %3864 = vperm.xlu0 %6537, %v1092_v6   ;;  %v5037_v6 = vld [vmem:[#allocation9 + $0xd0] sm:$0xf0]  ;;  %976 = vmatpush.bf16.msra.mxu0 %v5036_v5  ;;  %v5004_v1 = vor.u32 %v6245_v63, %v5003_v61  ;;  %v4997_v61 = vld [vmem:[#allocation9 + $0x78] sm:$0xf0] }
  0x5e   :  { %4248 = vperm.xlu0 %6537, %v4246_v9   ;;  %v5040_v9 = vor.u32 %v6251_v3, %v5037_v6  ;;  %v5005_v3 = vld [vmem:[#allocation9 + $0x90] sm:$0xf0]  ;;  %v5011_v6 = vld [vmem:[#allocation9 + $0x88] sm:$0xf] }
  0x5f   :  { %v5008_v5 = vor.u32 %v6243_v2, %v5005_v3  ;;  %v6237_v3 = vld [vmem:[#allocation9 + $0x4c] sm:$0xf0] }
  0x60   :  { %989 = vmatpush.bf16.msra.mxu1 %v5040_v9 }
  0x61   :  { %326 = vmatmul.bf16.gmra.mxu0 %v6162_v7 }
  0x62   :  { %355 = vmatmul.bf16.gmra.mxu1 %v6162_v7 }
  0x63   :  { %384 = vmatmul.bf16.gmra.mxu2 %v6162_v7 }
  0x64   :  { %413 = vmatmul.bf16.gmra.mxu3 %v6162_v7  ;;  %v5043_v7 = vld [vmem:[#allocation9 + $0xc8] sm:$0xf] }
  0x66   :  { %4632 = vperm.xlu0 %6537, %v4630_v10   ;;  %v5044_v10 = vor.u32 %v6254_v8, %v5043_v7  ;;  %v6246_v7 = vld [vmem:[#allocation9 + $0x94] sm:$0xf0]  ;;  %v6244_v8 = vld [vmem:[#allocation9 + $0x8c] sm:$0xf] }
  0x67   :  { %v5012_v9 = vor.u32 %v6246_v7, %v5011_v6  ;;  %v6235_v7 = vld [vmem:[#allocation9 + $0x44] sm:$0xf] }
  0x68   :  { %1002 = vmatpush.bf16.msra.mxu2 %v5044_v10  ;;  %v5013_v10 = vld [vmem:[#allocation9 + $0x98] sm:$0xf0] }
  0x71   :  { %658 = vmatmul.bf16.vlgmr.msrb.gmra.mxu0 %v6906_v0 }
  0x72   :  { %671 = vmatmul.bf16.vlgmr.msrb.gmra.mxu1 %v6906_v0 }
  0x73   :  { %684 = vmatmul.bf16.vlgmr.msrb.gmra.mxu2 %v6906_v0 }
  0x74   :  { %697 = vmatmul.bf16.vlgmr.msrb.gmra.mxu3 %v6906_v0 }
  0xae   :  { %v6970_v11 = vpop.f32.mrf.mxu0 }
  0xaf   :  { %v6972_v12 = vpop.f32.mrf.mxu1 }
  0xb6   :  { %v6974_v13 = vpop.f32.mrf.mxu2  ;;  %v6978_v15 = vpop.f32.mrf.mxu0 }
  0xb7   :  { %v6976_v14 = vpop.f32.mrf.mxu3  ;;  %v6980_v16 = vpop.f32.mrf.mxu1 }
  0xbe   :  { %v6987_v19 = vpop.f32.mrf.mxu2  ;;  %v317_v22 = vpop.f32.mrf.mxu0 }
  0xbf   :  { %v6991_v21 = vpop.f32.mrf.mxu3  ;;  %v6994_v23 = vadd.f32 %v317_v22, %v6985_v18  ;;  %v346_v24 = vpop.f32.mrf.mxu1  ;;  %v5045_v22 = vld [vmem:[#allocation9 + $0xd8] sm:$0xf0] }
  0xc0   :  { %v6997_v25 = vadd.f32 %v346_v24, %v6989_v20  ;;  %v5048_v24 = vor.u32 %v6252_v17, %v5045_v22  ;;  %v313_v17 = vadd.f32 %v6970_v11, %v6985_v18 }
  0xc2   :  { %1015 = vmatpush.bf16.msra.mxu3 %v5048_v24  ;;  %v5016_v24 = vor.u32 %v6244_v8, %v5013_v10  ;;  %v4973_v8 = vld [vmem:[#allocation9 + $0x50] sm:$0xf0] }
  0xc3   :  { %v4976_v10 = vor.u32 %v6235_v7, %v4973_v8  ;;  %v6227_v7 = vld [vmem:[#allocation9 + $0x4] sm:$0xf] }
  0xc6   :  { %v375_v28 = vpop.f32.mrf.mxu2  ;;  %v7006_v31 = vpop.f32.mrf.mxu0  ;;  %1016 = vmatpush.bf16.msra.mxu3 %v5032_v60  ;;  %v6240_v60 = vld [vmem:[#allocation9 + $0x6c] sm:$0xf] }
  0xc7   :  { %v7004_v29 = vadd.f32 %v375_v28, %v6999_v26  ;;  %v404_v30 = vpop.f32.mrf.mxu3  ;;  %v7011_v33 = vpop.f32.mrf.mxu1 }
  0xc8   :  { %v7009_v32 = vadd.f32 %v404_v30, %v7001_v27  ;;  %v5019_v30 = vld [vmem:[#allocation9 + $0xa0] sm:$0xf] }
  0xca   :  { %1017 = vmatpush.bf16.msra.mxu3 %v5016_v24  ;;  %v6236_v24 = vld [vmem:[#allocation9 + $0x4c] sm:$0xf] }
  0xce   :  { %v7013_v34 = vpop.f32.mrf.mxu2  ;;  %v322_v36 = vpop.f32.mrf.mxu0 }
  0xcf   :  { %v7015_v35 = vpop.f32.mrf.mxu3  ;;  %v7018_v37 = vadd.f32 %v322_v36, %v6985_v18  ;;  %v351_v38 = vpop.f32.mrf.mxu1  ;;  %v6249_v36 = vld [vmem:[#allocation9 + $0xac] sm:$0xf0] }
  0xd0   :  { %v7021_v39 = vadd.f32 %v351_v38, %v6989_v20  ;;  %v6247_v38 = vld [vmem:[#allocation9 + $0xa4] sm:$0xf]  ;;  %v5020_v48 = vor.u32 %v6249_v36, %v5019_v30  ;;  %v6241_v30 = vld [vmem:[#allocation9 + $0x6c] sm:$0xf0] }
  0xd1   :  { %v5024_v55 = vor.u32 %v6247_v38, %v5021_v49  ;;  %v6239_v36 = vld [vmem:[#allocation9 + $0x64] sm:$0xf]  ;;  %v342_v38 = vadd.f32 %v6972_v12, %v6989_v20  ;;  %v4971_v12 = vld [vmem:[#allocation9 + $0x40] sm:$0xf] }
  0xd2   :  { %977 = vmatpush.bf16.msra.mxu0 %v5020_v48  ;;  %v4972_v6 = vor.u32 %v6237_v3, %v4971_v12 }
  0xd3   :  { %990 = vmatpush.bf16.msra.mxu1 %v5024_v55  ;;  %v6242_v55 = vld [vmem:[#allocation9 + $0x74] sm:$0xf0] }
  0xd6   :  { %v380_v40 = vpop.f32.mrf.mxu2  ;;  %v7026_v43 = vpop.f32.mrf.mxu0  ;;  %978 = vmatpush.bf16.msra.mxu0 %v5004_v1  ;;  %v5000_v1 = vor.u32 %v6240_v60, %v4997_v61 }
  0xd7   :  { %v7024_v41 = vadd.f32 %v380_v40, %v6999_v26  ;;  %v409_v42 = vpop.f32.mrf.mxu3  ;;  %v7031_v45 = vpop.f32.mrf.mxu1  ;;  %991 = vmatpush.bf16.msra.mxu1 %v5008_v5 }
  0xd8   :  { %v7029_v44 = vadd.f32 %v409_v42, %v7001_v27  ;;  %1018 = vmatpush.bf16.msra.mxu3 %v5000_v1  ;;  %v6234_v1 = vld [vmem:[#allocation9 + $0x34] sm:$0xf0] }
  0xde   :  { %v7033_v46 = vpop.f32.mrf.mxu2  ;;  %v327_v51 = vpop.f32.mrf.mxu0 }
  0xdf   :  { %v7035_v50 = vpop.f32.mrf.mxu3  ;;  %v7038_v56 = vadd.f32 %v327_v51, %v6985_v18  ;;  %v356_v57 = vpop.f32.mrf.mxu1  ;;  %v5027_v51 = vld [vmem:[#allocation9 + $0xa8] sm:$0xf] }
  0xe0   :  { %v7041_v62 = vadd.f32 %v356_v57, %v6989_v20  ;;  %v5028_v57 = vor.u32 %v6250_v52, %v5027_v51  ;;  %v4989_v51 = vld [vmem:[#allocation9 + $0x70] sm:$0xf0]  ;;  %v4995_v52 = vld [vmem:[#allocation9 + $0x68] sm:$0xf] }
  0xe1   :  { %v4992_v58 = vor.u32 %v6239_v36, %v4989_v51  ;;  %v4996_v59 = vor.u32 %v6242_v55, %v4995_v52  ;;  %v6233_v51 = vld [vmem:[#allocation9 + $0x2c] sm:$0xf0] }
  0xe2   :  { %1003 = vmatpush.bf16.msra.mxu2 %v5028_v57 }
  0xe3   :  { %992 = vmatpush.bf16.msra.mxu1 %v4992_v58  ;;  %v4957_v58 = vld [vmem:[#allocation9 + $0x30] sm:$0xf0] }
  0xe6   :  { %v385_v28 = vpop.f32.mrf.mxu2  ;;  %v7046_v47 = vpop.f32.mrf.mxu0  ;;  %1004 = vmatpush.bf16.msra.mxu2 %v5012_v9  ;;  %v4979_v9 = vld [vmem:[#allocation9 + $0x48] sm:$0xf] }
  0xe7   :  { %v7044_v40 = vadd.f32 %v385_v28, %v6999_v26  ;;  %v414_v42 = vpop.f32.mrf.mxu3  ;;  %v7051_v54 = vpop.f32.mrf.mxu1  ;;  %v4987_v28 = vld [vmem:[#allocation9 + $0x60] sm:$0xf]  ;;  %993 = vmatpush.bf16.msra.mxu1 %v4976_v10 }
  0xe8   :  { %v7049_v53 = vadd.f32 %v414_v42, %v7001_v27  ;;  %v4988_v49 = vor.u32 %v6241_v30, %v4987_v28  ;;  %v4981_v28 = vld [vmem:[#allocation9 + $0x58] sm:$0xf0]  ;;  %v400_v30 = vadd.f32 %v6976_v14, %v7001_v27 }
  0xe9   :  { %v4965_v14 = vld [vmem:[#allocation9 + $0x38] sm:$0xf0] }
  0xea   :  { %979 = vmatpush.bf16.msra.mxu0 %v4988_v49  ;;  %1005 = vmatpush.bf16.msra.mxu2 %v4996_v59  ;;  %v4955_v49 = vld [vmem:[#allocation9 + $0x20] sm:$0xf]  ;;  %v4963_v59 = vld [vmem:[#allocation9 + $0x28] sm:$0xf] }
  0xeb   :  { %v4964_v12 = vor.u32 %v6234_v1, %v4963_v59  ;;  %v371_v59 = vadd.f32 %v6974_v13, %v6999_v26 }
  0xee   :  { %v7055_v22 = vpop.f32.mrf.mxu2  ;;  %v659_v48 = vpop.f32.mrf.mxu0  ;;  %980 = vmatpush.bf16.msra.mxu0 %v4972_v6  ;;  %v6229_v6 = vld [vmem:[#allocation9 + $0xc] sm:$0xf0] }
  0xef   :  { %v7059_v42 = vpop.f32.mrf.mxu3  ;;  %v660_v57 = vadd.f32 %v659_v48, %v313_v17  ;;  %v672_v11 = vpop.f32.mrf.mxu1  ;;  %v6238_v17 = vld [vmem:[#allocation9 + $0x54] sm:$0xf0]  ;;  %v4984_v48 = vor.u32 %v6236_v24, %v4981_v28  ;;  %v4947_v24 = vld [vmem:[#allocation9 + $0x8] sm:$0xf] }
  0xf0   :  { %v673_v63 = vadd.f32 %v672_v11, %v342_v38  ;;  %v4980_v38 = vor.u32 %v6238_v17, %v4979_v9  ;;  %v6231_v11 = vld [vmem:[#allocation9 + $0x24] sm:$0xf]  ;;  %v4941_v17 = vld [vmem:[#allocation9 + $0x10] sm:$0xf0] }
  0xf1   :  { %v4934_v2 = vmul.f32 -1.442695, %v660_v57  ;;  %v4956_v57 = vor.u32 %v6233_v51, %v4955_v49  ;;  %1019 = vmatpush.bf16.msra.mxu3 %v4984_v48  ;;  %v6230_v48 = vld [vmem:[#allocation9 + $0x14] sm:$0xf0] }
  0xf2   :  { %v4935_v5 = vmul.f32 -1.442695, %v673_v63  ;;  %1006 = vmatpush.bf16.msra.mxu2 %v4980_v38  ;;  %v4960_v63 = vor.u32 %v6231_v11, %v4957_v58  ;;  %v4944_v38 = vor.u32 %v6227_v7, %v4941_v17  ;;  %v4948_v51 = vor.u32 %v6230_v48, %v4947_v24 }
  0xf3   :  { %6540 = vpow2.f32 %v4934_v2  ;;  %v6232_v2 = vld [vmem:[#allocation9 + $0x2c] sm:$0xf]  ;;  %981 = vmatpush.bf16.msra.mxu0 %v4956_v57 }
  0xf4   :  { %6542 = vpow2.f32 %v4935_v5  ;;  %v4968_v3 = vor.u32 %v6232_v2, %v4965_v14  ;;  %v4939_v5 = vld [vmem:[#allocation9] sm:$0xf]  ;;  %994 = vmatpush.bf16.msra.mxu1 %v4960_v63 }
  0xf5   :  { %v4940_v10 = vor.u32 %v6229_v6, %v4939_v5 }
  0xf6   :  { %v685_v36 = vpop.f32.mrf.mxu2  ;;  %v661_v55 = vpop.f32.mrf.mxu0  ;;  %1007 = vmatpush.bf16.msra.mxu2 %v4964_v12  ;;  %1020 = vmatpush.bf16.msra.mxu3 %v4968_v3 }
  0xf7   :  { %v698_v52 = vpop.f32.mrf.mxu3  ;;  %v674_v61 = vpop.f32.mrf.mxu1  ;;  %v4949_v55 = vld [vmem:[#allocation9 + $0x18] sm:$0xf0]  ;;  %982 = vmatpush.bf16.msra.mxu0 %v4940_v10  ;;  %v686_v63 = vadd.f32 %v685_v36, %v371_v59 }
  0xf8   :  { %v699_v60 = vadd.f32 %v698_v52, %v400_v30  ;;  %v6228_v52 = vld [vmem:[#allocation9 + $0xc] sm:$0xf]  ;;  %995 = vmatpush.bf16.msra.mxu1 %v4944_v38 }
  0xf9   :  { %v6541_v8 = vpop.eup %6540  ;;  %v4952_v58 = vor.u32 %v6228_v52, %v4949_v55 }
  0xfa   :  { %v4936_v9 = vmul.f32 -1.442695, %v699_v60  ;;  %v6543_v28 = vpop.eup %6542  ;;  %v705_v30 = vadd.f32 1.0, %v6541_v8  ;;  %1008 = vmatpush.bf16.msra.mxu2 %v4948_v51 }
  0xfb   :  { %v724_v49 = vadd.f32 1.0, %v6543_v28  ;;  %1021 = vmatpush.bf16.msra.mxu3 %v4952_v58 }
  0xfc   :  { %6544 = vpow2.f32 %v4936_v9  ;;  %v717_v6 = vand.u32 2147483648, %v705_v30  ;;  %v715_v9 = vand.u32 2147483647, %v705_v30  ;;  %vm711_vm7 = vweird.f32 %v705_v30 }
  0xfd   :  { %6546 = vrcp.f32 %v705_v30  ;;  %v736_v7 = vand.u32 2147483648, %v724_v49  ;;  %v734_v13 = vand.u32 2147483647, %v724_v49  ;;  %vm730_vm8 = vweird.f32 %v724_v49 }
  0xfe   :  { %6548 = vrcp.f32 %v724_v49  ;;  %v687_v57 = vpop.f32.mrf.mxu2  ;;  %v718_v36 = vor.u32 1.1754944e-38, %v717_v6  ;;  %vm716_vm10 = vcmp.eq.f32.partialorder %v715_v9, 8.507059e+37 }
  0xff   :  { %v700_v11 = vpop.f32.mrf.mxu3  ;;  %v737_v38 = vor.u32 1.1754944e-38, %v736_v7  ;;  %vm735_vm12 = vcmp.eq.f32.partialorder %v734_v13, 8.507059e+37  ;;  %v6287_v13 = vld [vmem:[#allocation9 + $0xe4] sm:$0xf] }
 0x102   :  { %v6545_v60 = vpop.eup %6544 }
 0x103   :  { %v6547_v61 = vpop.eup %6546  ;;  %v744_v1 = vadd.f32 1.0, %v6545_v60  ;;  %v7065_v60 = vpop.permute.xlu0 %769 }
 0x104   :  { %v6549_v2 = vpop.eup %6548  ;;  %v707_v14 = vmul.f32 %v6547_v61, %v705_v30  ;;  %vm712_vm5 = vweird.f32 %v6547_v61  ;;  %vm771_vm13 = vcmp.eq.s32.totalorder %v7065_v60, 1 }
 0x105   :  { %v726_v12 = vmul.f32 %v6549_v2, %v724_v49  ;;  %6550 = vrcp.f32 %v744_v1  ;;  %vm731_vm6 = vweird.f32 %v6549_v2  ;;  %vm713_vm9 = vmor %vm711_vm7, %vm712_vm5  ;;  %vm750_vm15 = vweird.f32 %v744_v1 }
 0x106   :  { %v708_v3 = vsub.f32 1.0, %v707_v14  ;;  %6552 = vtanh.f32 %v686_v63  ;;  %vm732_vm11 = vmor %vm730_vm8, %vm731_vm6 }
 0x107   :  { %v727_v5 = vsub.f32 1.0, %v726_v12  ;;  %v756_v12 = vand.u32 2147483648, %v744_v1  ;;  %vm5065_vm2 = vmpackc.low %vm771_vm13, %vm771_vm13 }
 0x108   :  { %v709_v8 = vmul.f32 %v6547_v61, %v708_v3 }
 0x109   :  { %v728_v10 = vmul.f32 %v6549_v2, %v727_v5  ;;  %v757_v5 = vor.u32 1.1754944e-38, %v756_v12 }
 0x10a   :  { %v710_v17 = vadd.f32 %v6547_v61, %v709_v8 }
 0x10b   :  { %v6551_v24 = vpop.eup %6550  ;;  %v729_v28 = vadd.f32 %v6549_v2, %v728_v10  ;;  %v6289_v10 = vld [vmem:[#allocation9 + $0xec] sm:$0xf0] }
 0x10c   :  { %v714_v48 = vsel %vm713_vm9, %v6547_v61, %v710_v17  ;;  %v746_v51 = vmul.f32 %v6551_v24, %v744_v1  ;;  %v6553_v52 = vpop.eup %6552  ;;  %vm751_vm14 = vweird.f32 %v6551_v24 }
 0x10d   :  { %v719_v55 = vsel %vm716_vm10, %v718_v36, %v714_v48  ;;  %v733_v57 = vsel %vm732_vm11, %v6549_v2, %v729_v28  ;;  %v754_v2 = vand.u32 2147483647, %v744_v1  ;;  %vm752_vm0 = vmor %vm750_vm15, %vm751_vm14  ;;  %v5194_v1 = vld [vmem:[#allocation9 + $0xe0] sm:$0xf]  ;;  %v5202_v36 = vld [vmem:[#allocation9 + $0xe8] sm:$0xf] }
 0x10e   :  { %v738_v11 = vsel %vm735_vm12, %v737_v38, %v733_v57  ;;  %v761_v58 = vmul.f32 %v6553_v52, %v719_v55  ;;  %v747_v59 = vsub.f32 1.0, %v746_v51  ;;  %v5195_v17 = vor.u32 %v6289_v10, %v5194_v1  ;;  %v6290_v28 = vld [vmem:[#allocation9 + $0xf4] sm:$0xf0]  ;;  %v6288_v51 = vld [vmem:[#allocation9 + $0xec] sm:$0xf] }
 0x10f   :  { %v760_v30 = vmul.f32 0.0, %v738_v11  ;;  %vm755_vm1 = vcmp.eq.f32.partialorder %v754_v2, 8.507059e+37  ;;  %v5203_v48 = vor.u32 %v6290_v28, %v5202_v36  ;;  %v5204_v52 = vld [vmem:[#allocation9 + $0xf8] sm:$0xf0]  ;;  %v5178_v57 = vld [vmem:[#allocation9 + $0xc0] sm:$0xf] }
 0x110   :  { %v748_v49 = vmul.f32 %v6551_v24, %v747_v59  ;;  %1301 = vmatpush.bf16.msrb.mxu0 %v5195_v17  ;;  %v5207_v55 = vor.u32 %v6288_v51, %v5204_v52  ;;  %v6285_v11 = vld [vmem:[#allocation9 + $0xcc] sm:$0xf0]  ;;  %v6284_v2 = vld [vmem:[#allocation9 + $0xcc] sm:$0xf]  ;;  %v5164_v10 = vld [vmem:[#allocation9 + $0xb0] sm:$0xf0] }
 0x111   :  { %v762_v63 = vadd.f32 %v761_v58, %v760_v30  ;;  %1327 = vmatpush.bf16.msrb.mxu2 %v5203_v48  ;;  %v6283_v58 = vld [vmem:[#allocation9 + $0xc4] sm:$0xf]  ;;  %v5179_v59 = vor.u32 %v6285_v11, %v5178_v57  ;;  %v5180_v30 = vld [vmem:[#allocation9 + $0xd0] sm:$0xf0]  ;;  %v6282_v17 = vld [vmem:[#allocation9 + $0xb4] sm:$0xf0] }
 0x112   :  { %v749_v14 = vadd.f32 %v6551_v24, %v748_v49  ;;  %1340 = vmatpush.bf16.msrb.mxu3 %v5207_v55  ;;  %v5186_v49 = vld [vmem:[#allocation9 + $0xc8] sm:$0xf]  ;;  %v6280_v28 = vld [vmem:[#allocation9 + $0xac] sm:$0xf]  ;;  %v5146_v51 = vld [vmem:[#allocation9 + $0x80] sm:$0xf] }
 0x113   :  { %6554 = vtanh.f32 %v762_v63  ;;  %v7070_v61 = vsel %vm771_vm13, %v762_v63, 0.0  ;;  %v6286_v63 = vld [vmem:[#allocation9 + $0xd4] sm:$0xf0]  ;;  %v6277_v52 = vld [vmem:[#allocation9 + $0x8c] sm:$0xf0] }
 0x114   :  { %v753_v3 = vsel %vm752_vm0, %v6551_v24, %v749_v14  ;;  %v5196_v24 = vld [vmem:[#allocation9 + $0xf0] sm:$0xf0]  ;;  %v5183_v14 = vor.u32 %v6283_v58, %v5180_v30  ;;  %v5187_v12 = vor.u32 %v6286_v63, %v5186_v49  ;;  %1302 = vmatpush.bf16.msrb.mxu0 %v5179_v59  ;;  %v6275_v55 = vld [vmem:[#allocation9 + $0x84] sm:$0xf]  ;;  %v5147_v57 = vor.u32 %v6277_v52, %v5146_v51  ;;  %v5154_v58 = vld [vmem:[#allocation9 + $0x88] sm:$0xf] }
 0x115   :  { %v758_v7 = vsel %vm755_vm1, %v757_v5, %v753_v3  ;;  %v5199_v38 = vor.u32 %v6287_v13, %v5196_v24  ;;  %v5188_v3 = vld [vmem:[#allocation9 + $0xd8] sm:$0xf0]  ;;  %v5170_v13 = vld [vmem:[#allocation9 + $0xa8] sm:$0xf]  ;;  %v5148_v11 = vld [vmem:[#allocation9 + $0x90] sm:$0xf0] }
 0x116   :  { %v5191_v5 = vor.u32 %v6284_v2, %v5188_v3  ;;  %1328 = vmatpush.bf16.msrb.mxu2 %v5187_v12  ;;  %v5171_v36 = vor.u32 %v6282_v17, %v5170_v13  ;;  %v6278_v59 = vld [vmem:[#allocation9 + $0x94] sm:$0xf0]  ;;  %v5151_v30 = vor.u32 %v6275_v55, %v5148_v11  ;;  %v6276_v63 = vld [vmem:[#allocation9 + $0x8c] sm:$0xf]  ;;  %v315_v2 = vadd.f32 %v6978_v15, %v6985_v18  ;;  %v5132_v13 = vld [vmem:[#allocation9 + $0x70] sm:$0xf0] }
 0x117   :  { %1314 = vmatpush.bf16.msrb.mxu1 %v5199_v38  ;;  %v5172_v38 = vld [vmem:[#allocation9 + $0xb8] sm:$0xf0]  ;;  %v5155_v49 = vor.u32 %v6278_v59, %v5154_v58  ;;  %v344_v3 = vadd.f32 %v6980_v16, %v6989_v20  ;;  %v5138_v17 = vld [vmem:[#allocation9 + $0x68] sm:$0xf]  ;;  %v6272_v15 = vld [vmem:[#allocation9 + $0x6c] sm:$0xf] }
 0x118   :  { %1341 = vmatpush.bf16.msrb.mxu3 %v5191_v5  ;;  %v5175_v48 = vor.u32 %v6280_v28, %v5172_v38  ;;  %v5130_v5 = vld [vmem:[#allocation9 + $0x60] sm:$0xf]  ;;  %v5140_v51 = vld [vmem:[#allocation9 + $0x78] sm:$0xf0]  ;;  %v6269_v11 = vld [vmem:[#allocation9 + $0x4c] sm:$0xf0] }
 0x119   :  { %v6555_v6 = vpop.eup %6554  ;;  %v5143_v16 = vor.u32 %v6272_v15, %v5140_v51  ;;  %v6267_v58 = vld [vmem:[#allocation9 + $0x44] sm:$0xf]  ;;  %v5116_v59 = vld [vmem:[#allocation9 + $0x50] sm:$0xf0]  ;;  %v6264_v51 = vld [vmem:[#allocation9 + $0x2c] sm:$0xf] }
 0x11a   :  { %v7072_v8 = vmul.f32 %v6555_v6, %v758_v7  ;;  %v5162_v6 = vld [vmem:[#allocation9 + $0xa0] sm:$0xf]  ;;  %v6281_v7 = vld [vmem:[#allocation9 + $0xac] sm:$0xf0]  ;;  %1329 = vmatpush.bf16.msrb.mxu2 %v5171_v36 }
 0x11b   :  { %1315 = vmatpush.bf16.msrb.mxu1 %v5183_v14  ;;  %v5163_v1 = vor.u32 %v6281_v7, %v5162_v6  ;;  %v5156_v14 = vld [vmem:[#allocation9 + $0x98] sm:$0xf0]  ;;  %v6273_v6 = vld [vmem:[#allocation9 + $0x6c] sm:$0xf0]  ;;  %v6271_v7 = vld [vmem:[#allocation9 + $0x64] sm:$0xf] }
 0x11c   :  { %v5066_v9 = vpack.c.bf16 %v7072_v8, %v7072_v8  ;;  %1342 = vmatpush.bf16.msrb.mxu3 %v5175_v48  ;;  %v5159_v12 = vor.u32 %v6276_v63, %v5156_v14  ;;  %v5135_v38 = vor.u32 %v6271_v7, %v5132_v13  ;;  %v5122_v63 = vld [vmem:[#allocation9 + $0x48] sm:$0xf]  ;;  %v6270_v14 = vld [vmem:[#allocation9 + $0x54] sm:$0xf0]  ;;  %v6265_v7 = vld [vmem:[#allocation9 + $0x2c] sm:$0xf0] }
 0x11d   :  { %1303 = vmatpush.bf16.msrb.mxu0 %v5163_v1 }
 0x11e   :  { %5067 = vmatmul.msk.bf16.vlgmr.msra.gmra.mxu0 %vm5065_vm2, %v5066_v9  ;;  %5070 = vmatmul.msk.bf16.vlgmr.msra.gmra.mxu1 %vm5065_vm2, %v5066_v9 }
 0x11f   :  { %5073 = vmatmul.msk.bf16.vlgmr.msra.gmra.mxu2 %vm5065_vm2, %v5066_v9  ;;  %5076 = vmatmul.msk.bf16.vlgmr.msra.gmra.mxu3 %vm5065_vm2, %v5066_v9  ;;  %v6279_v9 = vld [vmem:[#allocation9 + $0xa4] sm:$0xf] }
 0x120   :  { %v5167_v24 = vor.u32 %v6279_v9, %v5164_v10  ;;  %1330 = vmatpush.bf16.msrb.mxu2 %v5155_v49  ;;  %1343 = vmatpush.bf16.msrb.mxu3 %v5159_v12  ;;  %v5131_v10 = vor.u32 %v6273_v6, %v5130_v5  ;;  %v5119_v49 = vor.u32 %v6267_v58, %v5116_v59  ;;  %v6268_v12 = vld [vmem:[#allocation9 + $0x4c] sm:$0xf]  ;;  %v5124_v5 = vld [vmem:[#allocation9 + $0x58] sm:$0xf0]  ;;  %v5098_v6 = vld [vmem:[#allocation9 + $0x20] sm:$0xf] }
 0x121   :  { %1304 = vmatpush.bf16.msrb.mxu0 %v5147_v57  ;;  %v5114_v57 = vld [vmem:[#allocation9 + $0x40] sm:$0xf]  ;;  %v5099_v13 = vor.u32 %v6265_v7, %v5098_v6  ;;  %v6259_v58 = vld [vmem:[#allocation9 + $0x4] sm:$0xf] }
 0x122   :  { %1316 = vmatpush.bf16.msrb.mxu1 %v5167_v24  ;;  %v6274_v24 = vld [vmem:[#allocation9 + $0x74] sm:$0xf0] }
 0x123   :  { %v5139_v48 = vor.u32 %v6274_v24, %v5138_v17  ;;  %v6263_v17 = vld [vmem:[#allocation9 + $0x24] sm:$0xf]  ;;  %v5100_v24 = vld [vmem:[#allocation9 + $0x30] sm:$0xf0] }
 0x124   :  { %1344 = vmatpush.bf16.msrb.mxu3 %v5143_v16  ;;  %v5103_v15 = vor.u32 %v6263_v17, %v5100_v24  ;;  %v5108_v16 = vld [vmem:[#allocation9 + $0x38] sm:$0xf0] }
 0x125   :  { %1305 = vmatpush.bf16.msrb.mxu0 %v5131_v10  ;;  %1331 = vmatpush.bf16.msrb.mxu2 %v5139_v48  ;;  %v5127_v10 = vor.u32 %v6268_v12, %v5124_v5  ;;  %v5092_v5 = vld [vmem:[#allocation9 + $0x18] sm:$0xf0] }
 0x126   :  { %1317 = vmatpush.bf16.msrb.mxu1 %v5151_v30  ;;  %v5115_v30 = vor.u32 %v6269_v11, %v5114_v57  ;;  %v5082_v57 = vld [vmem:[#allocation9] sm:$0xf]  ;;  %v6261_v11 = vld [vmem:[#allocation9 + $0xc] sm:$0xf0] }
 0x128   :  { %1345 = vmatpush.bf16.msrb.mxu3 %v5127_v10 }
 0x129   :  { %1306 = vmatpush.bf16.msrb.mxu0 %v5115_v30  ;;  %v5084_v30 = vld [vmem:[#allocation9 + $0x10] sm:$0xf0] }
 0x12a   :  { %1318 = vmatpush.bf16.msrb.mxu1 %v5135_v38  ;;  %v5087_v12 = vor.u32 %v6259_v58, %v5084_v30 }
 0x12d   :  { %1307 = vmatpush.bf16.msrb.mxu0 %v5099_v13  ;;  %v373_v13 = vadd.f32 %v6987_v19, %v6999_v26 }
 0x12e   :  { %1319 = vmatpush.bf16.msrb.mxu1 %v5119_v49  ;;  %v5090_v49 = vld [vmem:[#allocation9 + $0x8] sm:$0xf] }
 0x132   :  { %1320 = vmatpush.bf16.msrb.mxu1 %v5103_v15 }
 0x136   :  { %1321 = vmatpush.bf16.msrb.mxu1 %v5087_v12 }
 0x19b   :  { %v984_v9 = vpop.f32.mrf.mxu0  ;;  %v997_v1 = vpop.f32.mrf.mxu1 }
 0x19c   :  { %v985_v36 = vadd.f32 %v984_v9, %v315_v2  ;;  %v998_v28 = vadd.f32 %v997_v1, %v344_v3  ;;  %v402_v2 = vadd.f32 %v6991_v21, %v7001_v27  ;;  %v5123_v3 = vor.u32 %v6270_v14, %v5122_v63  ;;  %v6266_v21 = vld [vmem:[#allocation9 + $0x34] sm:$0xf0] }
 0x19d   :  { %v5083_v14 = vor.u32 %v6261_v11, %v5082_v57 }
 0x19e   :  { %v5077_v52 = vmul.f32 -1.442695, %v985_v36  ;;  %v5078_v55 = vmul.f32 -1.442695, %v998_v28  ;;  %v5106_v36 = vld [vmem:[#allocation9 + $0x28] sm:$0xf]  ;;  %1332 = vmatpush.bf16.msrb.mxu2 %v5123_v3 }
 0x19f   :  { %v6260_v3 = vld [vmem:[#allocation9 + $0xc] sm:$0xf]  ;;  %1308 = vmatpush.bf16.msrb.mxu0 %v5083_v14 }
 0x1a0   :  { %6556 = vpow2.f32 %v5077_v52  ;;  %v5107_v52 = vor.u32 %v6266_v21, %v5106_v36  ;;  %v5095_v17 = vor.u32 %v6260_v3, %v5092_v5 }
 0x1a1   :  { %6558 = vpow2.f32 %v5078_v55  ;;  %v5111_v55 = vor.u32 %v6264_v51, %v5108_v16 }
 0x1a2   :  { %v1010_v9 = vpop.f32.mrf.mxu2  ;;  %v1023_v1 = vpop.f32.mrf.mxu3  ;;  %1333 = vmatpush.bf16.msrb.mxu2 %v5107_v52 }
 0x1a3   :  { %v1024_v28 = vadd.f32 %v1023_v1, %v402_v2  ;;  %v986_v38 = vpop.f32.mrf.mxu0  ;;  %v999_v48 = vpop.f32.mrf.mxu1  ;;  %v6262_v2 = vld [vmem:[#allocation9 + $0x14] sm:$0xf0]  ;;  %1346 = vmatpush.bf16.msrb.mxu3 %v5111_v55 }
 0x1a4   :  { %v5091_v1 = vor.u32 %v6262_v2, %v5090_v49  ;;  %v1011_v48 = vadd.f32 %v1010_v9, %v373_v13 }
 0x1a5   :  { %v5079_v59 = vmul.f32 -1.442695, %v1024_v28  ;;  %v7090_v28 = vld [vmem:[%s7860_s1] sm:$0xff] }
 0x1a6   :  { %v6557_v63 = vpop.eup %6556  ;;  %1334 = vmatpush.bf16.msrb.mxu2 %v5091_v1  ;;  %vm1417_vm3 = vcmp.gt.s32.totalorder %v7090_v28, 2  ;;  %vm1743_vm4 = vcmp.gt.s32.totalorder %v7090_v28, 3  ;;  %vm3047_vm14 = vcmp.gt.s32.totalorder %v7090_v28, 7 }
 0x1a7   :  { %v6559_v6 = vpop.eup %6558  ;;  %v1030_v7 = vadd.f32 1.0, %v6557_v63  ;;  %6560 = vpow2.f32 %v5079_v59  ;;  %1347 = vmatpush.bf16.msrb.mxu3 %v5095_v17  ;;  %v1418_v21 = vsel %vm1417_vm3, 1, %v6906_v0  ;;  %v1744_v49 = vsel %vm1743_vm4, 1, %v6906_v0 }
 0x1a8   :  { %v1049_v10 = vadd.f32 1.0, %v6559_v6  ;;  %1420 = vperm.xlu1 %6538, %v1418_v21   ;;  %v3048_v21 = vsel %vm3047_vm14, 1, %v6906_v0  ;;  %vm3989_vm3 = vcmp.gt.s32.totalorder %v6954_v4, 2  ;;  %v7116_v4 = vld [vmem:[%s7860_s1] sm:$0xff] }
 0x1a9   :  { %6562 = vrcp.f32 %v1030_v7  ;;  %v1040_v58 = vand.u32 2147483647, %v1030_v7  ;;  %v1042_v59 = vand.u32 2147483648, %v1030_v7  ;;  %vm1036_vm7 = vweird.f32 %v1030_v7 }
 0x1aa   :  { %6564 = vrcp.f32 %v1049_v10  ;;  %v1012_v24 = vpop.f32.mrf.mxu2  ;;  %v1025_v36 = vpop.f32.mrf.mxu3  ;;  %v1061_v11 = vand.u32 2147483648, %v1049_v10  ;;  %v1059_v9 = vand.u32 2147483647, %v1049_v10  ;;  %vm1055_vm8 = vweird.f32 %v1049_v10 }
 0x1ab   :  { %v1043_v2 = vor.u32 1.1754944e-38, %v1042_v59  ;;  %vm1041_vm11 = vcmp.eq.f32.partialorder %v1040_v58, 8.507059e+37  ;;  %v3990_v59 = vsel %vm3989_vm3, 1, %v6906_v0 }
 0x1ac   :  { %v1062_v1 = vor.u32 1.1754944e-38, %v1061_v11  ;;  %vm1060_vm12 = vcmp.eq.f32.partialorder %v1059_v9, 8.507059e+37 }
 0x1ad   :  { %v6561_v38 = vpop.eup %6560 }
 0x1ae   :  { %v1069_v15 = vadd.f32 1.0, %v6561_v38 }
 0x1af   :  { %v6563_v51 = vpop.eup %6562 }
 0x1b0   :  { %v6565_v16 = vpop.eup %6564  ;;  %v1032_v52 = vmul.f32 %v6563_v51, %v1030_v7  ;;  %6566 = vrcp.f32 %v1069_v15  ;;  %vm1037_vm5 = vweird.f32 %v6563_v51  ;;  %1746 = vperm.xlu1 %6538, %v1744_v49   ;;  %vm1075_vm1 = vweird.f32 %v1069_v15 }
 0x1b1   :  { %v1051_v55 = vmul.f32 %v6565_v16, %v1049_v10  ;;  %6568 = vtanh.f32 %v1011_v48  ;;  %vm1056_vm6 = vweird.f32 %v6565_v16  ;;  %vm1038_vm9 = vmor %vm1036_vm7, %vm1037_vm5  ;;  %vm4373_vm5 = vcmp.gt.s32.totalorder %v7116_v4, 5 }
 0x1b2   :  { %v1033_v19 = vsub.f32 1.0, %v1032_v52  ;;  %vm1057_vm10 = vmor %vm1055_vm8, %vm1056_vm6  ;;  %v1095_v52 = vpop.permute.xlu0 %1094 }
 0x1b3   :  { %v1052_v57 = vsub.f32 1.0, %v1051_v55  ;;  %vm1096_vm15 = vcmp.eq.s32.totalorder %v1095_v52, 1 }
 0x1b4   :  { %v1034_v30 = vmul.f32 %v6563_v51, %v1033_v19 }
 0x1b5   :  { %v1053_v63 = vmul.f32 %v6565_v16, %v1052_v57  ;;  %v1079_v57 = vand.u32 2147483647, %v1069_v15 }
 0x1b6   :  { %v6567_v14 = vpop.eup %6566  ;;  %v1035_v12 = vadd.f32 %v6563_v51, %v1034_v30 }
 0x1b7   :  { %v1054_v3 = vadd.f32 %v6565_v16, %v1053_v63  ;;  %v1071_v5 = vmul.f32 %v6567_v14, %v1069_v15  ;;  %v6569_v6 = vpop.eup %6568  ;;  %vm1076_vm0 = vweird.f32 %v6567_v14  ;;  %vm1080_vm4 = vcmp.eq.f32.partialorder %v1079_v57, 8.507059e+37 }
 0x1b8   :  { %v1039_v17 = vsel %vm1038_vm9, %v6563_v51, %v1035_v12  ;;  %v1081_v51 = vand.u32 2147483648, %v1069_v15  ;;  %3050 = vperm.xlu1 %6538, %v3048_v21   ;;  %vm1077_vm2 = vmor %vm1075_vm1, %vm1076_vm0  ;;  %v772_v63 = vsel %vm771_vm13, %v7072_v8, 0.0  ;;  %v5325_v12 = vld [vmem:[#allocation9 + $0xe0] sm:$0xf]  ;;  %v6315_v21 = vld [vmem:[#allocation9 + $0xc4] sm:$0xf] }
 0x1b9   :  { %v1044_v24 = vsel %vm1041_vm11, %v1043_v2, %v1039_v17  ;;  %v1058_v36 = vsel %vm1057_vm10, %v6565_v16, %v1054_v3  ;;  %v1072_v13 = vsub.f32 1.0, %v1071_v5  ;;  %v6321_v2 = vld [vmem:[#allocation9 + $0xec] sm:$0xf0]  ;;  %v6319_v3 = vld [vmem:[#allocation9 + $0xe4] sm:$0xf] }
 0x1ba   :  { %v1063_v38 = vsel %vm1060_vm12, %v1062_v1, %v1058_v36  ;;  %v1086_v48 = vmul.f32 %v6569_v6, %v1044_v24  ;;  %v1082_v58 = vor.u32 1.1754944e-38, %v1081_v51  ;;  %v5326_v5 = vor.u32 %v6321_v2, %v5325_v12  ;;  %v5327_v6 = vld [vmem:[#allocation9 + $0xf0] sm:$0xf0]  ;;  %v5333_v1 = vld [vmem:[#allocation9 + $0xe8] sm:$0xf] }
 0x1bb   :  { %v1085_v7 = vmul.f32 %v1063_v38, %v7070_v61  ;;  %v1073_v10 = vmul.f32 %v6567_v14, %v1072_v13  ;;  %v6322_v17 = vld [vmem:[#allocation9 + $0xf4] sm:$0xf0]  ;;  %v5330_v24 = vor.u32 %v6319_v3, %v5327_v6  ;;  %v6320_v13 = vld [vmem:[#allocation9 + $0xec] sm:$0xf]  ;;  %v5335_v38 = vld [vmem:[#allocation9 + $0xf8] sm:$0xf0] }
 0x1bc   :  { %v5334_v36 = vor.u32 %v6322_v17, %v5333_v1  ;;  %1627 = vmatpush.bf16.msra.mxu0 %v5326_v5  ;;  %v6318_v51 = vld [vmem:[#allocation9 + $0xd4] sm:$0xf0]  ;;  %v5301_v12 = vld [vmem:[#allocation9 + $0xa8] sm:$0xf]  ;;  %v6312_v6 = vld [vmem:[#allocation9 + $0xac] sm:$0xf] }
 0x1bd   :  { %v1087_v55 = vadd.f32 %v1086_v48, %v1085_v7  ;;  %v1074_v19 = vadd.f32 %v6567_v14, %v1073_v10  ;;  %v5338_v48 = vor.u32 %v6320_v13, %v5335_v38  ;;  %1640 = vmatpush.bf16.msra.mxu1 %v5330_v24  ;;  %v5309_v7 = vld [vmem:[#allocation9 + $0xc0] sm:$0xf]  ;;  %v6317_v10 = vld [vmem:[#allocation9 + $0xcc] sm:$0xf0]  ;;  %v6314_v2 = vld [vmem:[#allocation9 + $0xb4] sm:$0xf0] }
 0x1be   :  { %1653 = vmatpush.bf16.msra.mxu2 %v5334_v36  ;;  %v5310_v52 = vor.u32 %v6317_v10, %v5309_v7  ;;  %v5302_v5 = vor.u32 %v6314_v2, %v5301_v12  ;;  %v5303_v1 = vld [vmem:[#allocation9 + $0xb8] sm:$0xf0]  ;;  %v5277_v24 = vld [vmem:[#allocation9 + $0x80] sm:$0xf]  ;;  %v6309_v36 = vld [vmem:[#allocation9 + $0x8c] sm:$0xf0] }
 0x1bf   :  { %6570 = vtanh.f32 %v1087_v55  ;;  %v7101_v16 = vsel %vm1096_vm15, %v1087_v55, %v7070_v61  ;;  %v1078_v11 = vsel %vm1077_vm2, %v6567_v14, %v1074_v19  ;;  %v4374_v14 = vsel %vm4373_vm5, 1, %v6906_v0  ;;  %1666 = vmatpush.bf16.msra.mxu3 %v5338_v48  ;;  %v5311_v55 = vld [vmem:[#allocation9 + $0xd0] sm:$0xf0]  ;;  %v5317_v19 = vld [vmem:[#allocation9 + $0xc8] sm:$0xf] }
 0x1c0   :  { %v1083_v9 = vsel %vm1080_vm4, %v1082_v58, %v1078_v11  ;;  %3992 = vperm.xlu1 %6538, %v3990_v59   ;;  %v5314_v57 = vor.u32 %v6315_v21, %v5311_v55  ;;  %v5318_v11 = vor.u32 %v6318_v51, %v5317_v19  ;;  %v6316_v58 = vld [vmem:[#allocation9 + $0xcc] sm:$0xf]  ;;  %v5319_v59 = vld [vmem:[#allocation9 + $0xd8] sm:$0xf0]  ;;  %1628 = vmatpush.bf16.msra.mxu0 %v5310_v52  ;;  %v6307_v13 = vld [vmem:[#allocation9 + $0x84] sm:$0xf] }
 0x1c1   :  { %v5306_v17 = vor.u32 %v6312_v6, %v5303_v1  ;;  %v5278_v38 = vor.u32 %v6309_v36, %v5277_v24  ;;  %v5279_v48 = vld [vmem:[#allocation9 + $0x90] sm:$0xf0]  ;;  %v5285_v7 = vld [vmem:[#allocation9 + $0x88] sm:$0xf]  ;;  %v6310_v10 = vld [vmem:[#allocation9 + $0x94] sm:$0xf0] }
 0x1c2   :  { %1641 = vmatpush.bf16.msra.mxu1 %v5314_v57  ;;  %1654 = vmatpush.bf16.msra.mxu2 %v5318_v11  ;;  %v5282_v21 = vor.u32 %v6307_v13, %v5279_v48  ;;  %v5286_v52 = vor.u32 %v6310_v10, %v5285_v7  ;;  %v6308_v55 = vld [vmem:[#allocation9 + $0x8c] sm:$0xf]  ;;  %v5287_v19 = vld [vmem:[#allocation9 + $0x98] sm:$0xf0]  ;;  %v5261_v57 = vld [vmem:[#allocation9 + $0x60] sm:$0xf] }
 0x1c3   :  { %v5290_v51 = vor.u32 %v6308_v55, %v5287_v19  ;;  %v6305_v11 = vld [vmem:[#allocation9 + $0x6c] sm:$0xf0]  ;;  %v5271_v6 = vld [vmem:[#allocation9 + $0x78] sm:$0xf0]  ;;  %v5245_v36 = vld [vmem:[#allocation9 + $0x40] sm:$0xf] }
 0x1c4   :  { %v6301_v13 = vld [vmem:[#allocation9 + $0x4c] sm:$0xf0]  ;;  %v5247_v7 = vld [vmem:[#allocation9 + $0x50] sm:$0xf0]  ;;  %v6302_v10 = vld [vmem:[#allocation9 + $0x54] sm:$0xf0] }
 0x1c5   :  { %v6571_v30 = vpop.eup %6570  ;;  %v5246_v48 = vor.u32 %v6301_v13, %v5245_v36  ;;  %v5255_v55 = vld [vmem:[#allocation9 + $0x58] sm:$0xf0]  ;;  %v5213_v36 = vld [vmem:[#allocation9] sm:$0xf]  ;;  %v6293_v13 = vld [vmem:[#allocation9 + $0xc] sm:$0xf0] }
 0x1c6   :  { %v1089_v49 = vmul.f32 %v6571_v30, %v1083_v9  ;;  %v5322_v30 = vor.u32 %v6316_v58, %v5319_v59  ;;  %v5293_v9 = vld [vmem:[#allocation9 + $0xa0] sm:$0xf]  ;;  %1655 = vmatpush.bf16.msra.mxu2 %v5302_v5  ;;  %v6303_v58 = vld [vmem:[#allocation9 + $0x64] sm:$0xf]  ;;  %v6304_v5 = vld [vmem:[#allocation9 + $0x6c] sm:$0xf] }
 0x1c7   :  { %v5274_v1 = vor.u32 %v6304_v5, %v5271_v6  ;;  %v6296_v5 = vld [vmem:[#allocation9 + $0x2c] sm:$0xf]  ;;  %v5239_v6 = vld [vmem:[#allocation9 + $0x38] sm:$0xf0]  ;;  %vm2069_vm4 = vcmp.gt.s32.totalorder %v7090_v28, 4  ;;  %vm2395_vm5 = vcmp.gt.s32.totalorder %v7090_v28, 5 }
 0x1c8   :  { %v7109_v61 = vsel %vm1096_vm15, %v1089_v49, %v772_v63  ;;  %4376 = vperm.xlu1 %6538, %v4374_v14   ;;  %v6313_v49 = vld [vmem:[#allocation9 + $0xac] sm:$0xf0]  ;;  %v6311_v63 = vld [vmem:[#allocation9 + $0xa4] sm:$0xf]  ;;  %1667 = vmatpush.bf16.msra.mxu3 %v5322_v30  ;;  %v5295_v14 = vld [vmem:[#allocation9 + $0xb0] sm:$0xf0] }
 0x1c9   :  { %v1101_v15 = vpack.c.bf16 %v7109_v61, %v7109_v61  ;;  %v5298_v3 = vor.u32 %v6311_v63, %v5295_v14  ;;  %v5269_v63 = vld [vmem:[#allocation9 + $0x68] sm:$0xf] }
 0x1ca   :  { %1656 = vmatpush.bf16.msra.mxu2 %v5286_v52  ;;  %v6300_v52 = vld [vmem:[#allocation9 + $0x4c] sm:$0xf] }
 0x1cb   :  { %1309 = vmatmul.bf16.vlgmr.msrb.gmra.mxu0 %v1101_v15  ;;  %1322 = vmatmul.bf16.vlgmr.msrb.gmra.mxu1 %v1101_v15 }
 0x1cc   :  { %1335 = vmatmul.bf16.vlgmr.msrb.gmra.mxu2 %v1101_v15  ;;  %1348 = vmatmul.bf16.vlgmr.msrb.gmra.mxu3 %v1101_v15  ;;  %v5294_v15 = vor.u32 %v6313_v49, %v5293_v9  ;;  %v5262_v9 = vor.u32 %v6305_v11, %v5261_v57  ;;  %v5263_v49 = vld [vmem:[#allocation9 + $0x70] sm:$0xf0]  ;;  %v5258_v57 = vor.u32 %v6300_v52, %v5255_v55  ;;  %v5229_v11 = vld [vmem:[#allocation9 + $0x20] sm:$0xf]  ;;  %v6292_v52 = vld [vmem:[#allocation9 + $0xc] sm:$0xf] }
 0x1cd   :  { %1642 = vmatpush.bf16.msra.mxu1 %v5298_v3  ;;  %1668 = vmatpush.bf16.msra.mxu3 %v5306_v17  ;;  %v5266_v2 = vor.u32 %v6303_v58, %v5263_v49  ;;  %v6297_v58 = vld [vmem:[#allocation9 + $0x2c] sm:$0xf0] }
 0x1ce   :  { %1629 = vmatpush.bf16.msra.mxu0 %v5294_v15  ;;  %v6306_v15 = vld [vmem:[#allocation9 + $0x74] sm:$0xf0] }
 0x1cf   :  { %v5270_v3 = vor.u32 %v6306_v15, %v5269_v63  ;;  %v5230_v63 = vor.u32 %v6297_v58, %v5229_v11  ;;  %v5231_v15 = vld [vmem:[#allocation9 + $0x30] sm:$0xf0] }
 0x1d1   :  { %1643 = vmatpush.bf16.msra.mxu1 %v5282_v21  ;;  %1669 = vmatpush.bf16.msra.mxu3 %v5290_v51 }
 0x1d2   :  { %1630 = vmatpush.bf16.msra.mxu0 %v5278_v38  ;;  %1657 = vmatpush.bf16.msra.mxu2 %v5270_v3  ;;  %v6299_v38 = vld [vmem:[#allocation9 + $0x44] sm:$0xf] }
 0x1d5   :  { %1644 = vmatpush.bf16.msra.mxu1 %v5266_v2  ;;  %1670 = vmatpush.bf16.msra.mxu3 %v5274_v1 }
 0x1d6   :  { %1631 = vmatpush.bf16.msra.mxu0 %v5262_v9 }
 0x1d9   :  { %1671 = vmatpush.bf16.msra.mxu3 %v5258_v57  ;;  %v5223_v57 = vld [vmem:[#allocation9 + $0x18] sm:$0xf0] }
 0x1da   :  { %1632 = vmatpush.bf16.msra.mxu0 %v5246_v48  ;;  %v5214_v48 = vor.u32 %v6293_v13, %v5213_v36 }
 0x1de   :  { %1633 = vmatpush.bf16.msra.mxu0 %v5230_v63 }
 0x1e2   :  { %1634 = vmatpush.bf16.msra.mxu0 %v5214_v48 }
 0x248   :  { %v1310_v59 = vpop.f32.mrf.mxu0  ;;  %v1323_v30 = vpop.f32.mrf.mxu1 }
 0x249   :  { %v1311_v14 = vadd.f32 %v1310_v59, %v6994_v23  ;;  %v1324_v12 = vadd.f32 %v1323_v30, %v6997_v25  ;;  %v5253_v23 = vld [vmem:[#allocation9 + $0x48] sm:$0xf]  ;;  %v5250_v25 = vor.u32 %v6299_v38, %v5247_v7  ;;  %v6295_v59 = vld [vmem:[#allocation9 + $0x24] sm:$0xf] }
 0x24a   :  { %v5254_v21 = vor.u32 %v6302_v10, %v5253_v23  ;;  %v5234_v2 = vor.u32 %v6295_v59, %v5231_v15  ;;  %v6291_v23 = vld [vmem:[#allocation9 + $0x4] sm:$0xf]  ;;  %v5215_v10 = vld [vmem:[#allocation9 + $0x10] sm:$0xf0]  ;;  %v5226_v59 = vor.u32 %v6292_v52, %v5223_v57 }
 0x24b   :  { %v5208_v17 = vmul.f32 -1.442695, %v1311_v14  ;;  %v5209_v24 = vmul.f32 -1.442695, %v1324_v12  ;;  %1645 = vmatpush.bf16.msra.mxu1 %v5250_v25  ;;  %v5237_v14 = vld [vmem:[#allocation9 + $0x28] sm:$0xf]  ;;  %v5218_v11 = vor.u32 %v6291_v23, %v5215_v10 }
 0x24c   :  { %1658 = vmatpush.bf16.msra.mxu2 %v5254_v21  ;;  %v6298_v12 = vld [vmem:[#allocation9 + $0x34] sm:$0xf0]  ;;  %v5221_v25 = vld [vmem:[#allocation9 + $0x8] sm:$0xf] }
 0x24d   :  { %6572 = vpow2.f32 %v5208_v17  ;;  %v5238_v3 = vor.u32 %v6298_v12, %v5237_v14  ;;  %v5242_v17 = vor.u32 %v6296_v5, %v5239_v6  ;;  %v6294_v21 = vld [vmem:[#allocation9 + $0x14] sm:$0xf0] }
 0x24e   :  { %6574 = vpow2.f32 %v5209_v24  ;;  %v5222_v58 = vor.u32 %v6294_v21, %v5221_v25 }
 0x24f   :  { %v1336_v19 = vpop.f32.mrf.mxu2  ;;  %v1349_v51 = vpop.f32.mrf.mxu3  ;;  %1646 = vmatpush.bf16.msra.mxu1 %v5234_v2  ;;  %1672 = vmatpush.bf16.msra.mxu3 %v5242_v17 }
 0x250   :  { %v1350_v30 = vadd.f32 %v1349_v51, %v7009_v32  ;;  %v1312_v9 = vpop.f32.mrf.mxu0  ;;  %v1325_v49 = vpop.f32.mrf.mxu1  ;;  %1659 = vmatpush.bf16.msra.mxu2 %v5238_v3  ;;  %v1337_v63 = vadd.f32 %v1336_v19, %v7004_v29 }
 0x252   :  { %v5210_v1 = vmul.f32 -1.442695, %v1350_v30 }
 0x253   :  { %v6573_v24 = vpop.eup %6572  ;;  %1647 = vmatpush.bf16.msra.mxu1 %v5218_v11  ;;  %1673 = vmatpush.bf16.msra.mxu3 %v5226_v59  ;;  %v1421_v11 = vpop.permute.xlu1 %1420 }
 0x254   :  { %v6575_v32 = vpop.eup %6574  ;;  %v1356_v38 = vadd.f32 1.0, %v6573_v24  ;;  %6576 = vpow2.f32 %v5210_v1  ;;  %1660 = vmatpush.bf16.msra.mxu2 %v5222_v58  ;;  %vm1422_vm15 = vcmp.eq.s32.totalorder %v1421_v11, 1 }
 0x255   :  { %v1375_v7 = vadd.f32 1.0, %v6575_v32 }
 0x256   :  { %6578 = vrcp.f32 %v1356_v38  ;;  %v1368_v5 = vand.u32 2147483648, %v1356_v38  ;;  %v1366_v1 = vand.u32 2147483647, %v1356_v38  ;;  %vm1362_vm8 = vweird.f32 %v1356_v38 }
 0x257   :  { %6580 = vrcp.f32 %v1375_v7  ;;  %v1338_v55 = vpop.f32.mrf.mxu2  ;;  %v1351_v51 = vpop.f32.mrf.mxu3  ;;  %v1387_v17 = vand.u32 2147483648, %v1375_v7  ;;  %v1385_v36 = vand.u32 2147483647, %v1375_v7  ;;  %vm1381_vm10 = vweird.f32 %v1375_v7 }
 0x258   :  { %v1369_v29 = vor.u32 1.1754944e-38, %v1368_v5  ;;  %vm1367_vm11 = vcmp.eq.f32.partialorder %v1366_v1, 8.507059e+37  ;;  %v6351_v1 = vld [vmem:[#allocation9 + $0xe4] sm:$0xf] }
 0x259   :  { %v1388_v10 = vor.u32 1.1754944e-38, %v1387_v17  ;;  %vm1386_vm14 = vcmp.eq.f32.partialorder %v1385_v36, 8.507059e+37  ;;  %v5464_v36 = vld [vmem:[#allocation9 + $0xe8] sm:$0xf] }
 0x25a   :  { %v6577_v30 = vpop.eup %6576 }
 0x25b   :  { %v1395_v9 = vadd.f32 1.0, %v6577_v30 }
 0x25c   :  { %v6579_v49 = vpop.eup %6578 }
 0x25d   :  { %v6581_v15 = vpop.eup %6580  ;;  %v1358_v14 = vmul.f32 %v6579_v49, %v1356_v38  ;;  %6582 = vrcp.f32 %v1395_v9  ;;  %vm1363_vm6 = vweird.f32 %v6579_v49  ;;  %vm1401_vm1 = vweird.f32 %v1395_v9 }
 0x25e   :  { %v1377_v12 = vmul.f32 %v6581_v15, %v1375_v7  ;;  %6584 = vtanh.f32 %v1337_v63  ;;  %vm1382_vm7 = vweird.f32 %v6581_v15  ;;  %vm1364_vm9 = vmor %vm1362_vm8, %vm1363_vm6  ;;  %v1407_v7 = vand.u32 2147483648, %v1395_v9 }
 0x25f   :  { %v1359_v2 = vsub.f32 1.0, %v1358_v14  ;;  %vm1383_vm12 = vmor %vm1381_vm10, %vm1382_vm7  ;;  %v1405_v63 = vand.u32 2147483647, %v1395_v9 }
 0x260   :  { %v1378_v3 = vsub.f32 1.0, %v1377_v12  ;;  %v1408_v14 = vor.u32 1.1754944e-38, %v1407_v7  ;;  %v5424_v7 = vld [vmem:[#allocation9 + $0xa0] sm:$0xf] }
 0x261   :  { %v1360_v6 = vmul.f32 %v6579_v49, %v1359_v2  ;;  %vm1406_vm3 = vcmp.eq.f32.partialorder %v1405_v63, 8.507059e+37  ;;  %v6345_v63 = vld [vmem:[#allocation9 + $0xac] sm:$0xf0] }
 0x262   :  { %v1379_v24 = vmul.f32 %v6581_v15, %v1378_v3 }
 0x263   :  { %v6583_v13 = vpop.eup %6582  ;;  %v1361_v32 = vadd.f32 %v6579_v49, %v1360_v6 }
 0x264   :  { %v1397_v19 = vmul.f32 %v6583_v13, %v1395_v9  ;;  %v1380_v48 = vadd.f32 %v6581_v15, %v1379_v24  ;;  %v6585_v25 = vpop.eup %6584  ;;  %vm1402_vm0 = vweird.f32 %v6583_v13  ;;  %v6353_v9 = vld [vmem:[#allocation9 + $0xec] sm:$0xf0]  ;;  %v5458_v24 = vld [vmem:[#allocation9 + $0xf0] sm:$0xf0] }
 0x265   :  { %v1365_v23 = vsel %vm1364_vm9, %v6579_v49, %v1361_v32  ;;  %vm1403_vm2 = vmor %vm1401_vm1, %vm1402_vm0  ;;  %v5461_v32 = vor.u32 %v6351_v1, %v5458_v24  ;;  %v5434_v1 = vld [vmem:[#allocation9 + $0xb8] sm:$0xf0]  ;;  %v5408_v24 = vld [vmem:[#allocation9 + $0x80] sm:$0xf] }
 0x266   :  { %v1370_v21 = vsel %vm1367_vm11, %v1369_v29, %v1365_v23  ;;  %v1398_v52 = vsub.f32 1.0, %v1397_v19  ;;  %v1384_v55 = vsel %vm1383_vm12, %v6581_v15, %v1380_v48  ;;  %v6352_v19 = vld [vmem:[#allocation9 + $0xec] sm:$0xf]  ;;  %v5466_v48 = vld [vmem:[#allocation9 + $0xf8] sm:$0xf0] }
 0x267   :  { %v1412_v51 = vmul.f32 %v6585_v25, %v1370_v21  ;;  %v1389_v57 = vsel %vm1386_vm14, %v1388_v10, %v1384_v55  ;;  %v5469_v23 = vor.u32 %v6352_v19, %v5466_v48  ;;  %1966 = vmatpush.bf16.msrb.mxu1 %v5461_v32  ;;  %v5440_v10 = vld [vmem:[#allocation9 + $0xc0] sm:$0xf]  ;;  %v6349_v25 = vld [vmem:[#allocation9 + $0xcc] sm:$0xf0]  ;;  %v6347_v21 = vld [vmem:[#allocation9 + $0xc4] sm:$0xf] }
 0x268   :  { %v1399_v58 = vmul.f32 %v6583_v13, %v1398_v52  ;;  %v1411_v38 = vmul.f32 %v1389_v57, %v7101_v16  ;;  %v5441_v52 = vor.u32 %v6349_v25, %v5440_v10  ;;  %v5442_v55 = vld [vmem:[#allocation9 + $0xd0] sm:$0xf0]  ;;  %v6350_v57 = vld [vmem:[#allocation9 + $0xd4] sm:$0xf0]  ;;  %v5416_v19 = vld [vmem:[#allocation9 + $0x88] sm:$0xf] }
 0x269   :  { %1992 = vmatpush.bf16.msrb.mxu3 %v5469_v23  ;;  %v5445_v11 = vor.u32 %v6347_v21, %v5442_v55  ;;  %v6342_v48 = vld [vmem:[#allocation9 + $0x94] sm:$0xf0]  ;;  %v6340_v25 = vld [vmem:[#allocation9 + $0x8c] sm:$0xf]  ;;  %v5418_v21 = vld [vmem:[#allocation9 + $0x98] sm:$0xf0]  ;;  %v320_v55 = vadd.f32 %v7006_v31, %v6985_v18 }
 0x26a   :  { %v1413_v59 = vadd.f32 %v1412_v51, %v1411_v38  ;;  %v1400_v30 = vadd.f32 %v6583_v13, %v1399_v58  ;;  %v5448_v51 = vld [vmem:[#allocation9 + $0xc8] sm:$0xf]  ;;  %v6348_v38 = vld [vmem:[#allocation9 + $0xcc] sm:$0xf]  ;;  %v5417_v10 = vor.u32 %v6342_v48, %v5416_v19  ;;  %v6334_v19 = vld [vmem:[#allocation9 + $0x54] sm:$0xf0] }
 0x26b   :  { %v5449_v58 = vor.u32 %v6350_v57, %v5448_v51  ;;  %1967 = vmatpush.bf16.msrb.mxu1 %v5445_v11  ;;  %v349_v51 = vadd.f32 %v7011_v33, %v6989_v20  ;;  %v5392_v57 = vld [vmem:[#allocation9 + $0x60] sm:$0xf]  ;;  %v6337_v11 = vld [vmem:[#allocation9 + $0x6c] sm:$0xf0]  ;;  %v6336_v31 = vld [vmem:[#allocation9 + $0x6c] sm:$0xf] }
 0x26c   :  { %6586 = vtanh.f32 %v1413_v59  ;;  %v7127_v49 = vsel %vm1422_vm15, %v1413_v59, %v7101_v16  ;;  %v1404_v15 = vsel %vm1403_vm2, %v6583_v13, %v1400_v30  ;;  %v5456_v16 = vld [vmem:[#allocation9 + $0xe0] sm:$0xf]  ;;  %v6354_v13 = vld [vmem:[#allocation9 + $0xf4] sm:$0xf0]  ;;  %v5450_v59 = vld [vmem:[#allocation9 + $0xd8] sm:$0xf0] }
 0x26d   :  { %v1409_v2 = vsel %vm1406_vm3, %v1408_v14, %v1404_v15  ;;  %v5457_v17 = vor.u32 %v6353_v9, %v5456_v16  ;;  %v5465_v29 = vor.u32 %v6354_v13, %v5464_v36  ;;  %v5453_v30 = vor.u32 %v6348_v38, %v5450_v59  ;;  %v6343_v15 = vld [vmem:[#allocation9 + $0xa4] sm:$0xf]  ;;  %v6344_v9 = vld [vmem:[#allocation9 + $0xac] sm:$0xf]  ;;  %v6341_v36 = vld [vmem:[#allocation9 + $0x8c] sm:$0xf0] }
 0x26e   :  { %v5425_v14 = vor.u32 %v6345_v63, %v5424_v7  ;;  %v6339_v13 = vld [vmem:[#allocation9 + $0x84] sm:$0xf]  ;;  %v5409_v32 = vor.u32 %v6341_v36, %v5408_v24  ;;  %v5394_v7 = vld [vmem:[#allocation9 + $0x70] sm:$0xf0]  ;;  %v5400_v63 = vld [vmem:[#allocation9 + $0x68] sm:$0xf] }
 0x26f   :  { %1953 = vmatpush.bf16.msrb.mxu0 %v5457_v17  ;;  %1979 = vmatpush.bf16.msrb.mxu2 %v5465_v29  ;;  %v5437_v17 = vor.u32 %v6344_v9, %v5434_v1  ;;  %v5410_v29 = vld [vmem:[#allocation9 + $0x90] sm:$0xf0]  ;;  %v5376_v1 = vld [vmem:[#allocation9 + $0x40] sm:$0xf]  ;;  %v6331_v24 = vld [vmem:[#allocation9 + $0x44] sm:$0xf] }
 0x270   :  { %1993 = vmatpush.bf16.msrb.mxu3 %v5453_v30  ;;  %v5413_v23 = vor.u32 %v6339_v13, %v5410_v29  ;;  %v5393_v30 = vor.u32 %v6337_v11, %v5392_v57  ;;  %v5378_v36 = vld [vmem:[#allocation9 + $0x50] sm:$0xf0]  ;;  %v5384_v29 = vld [vmem:[#allocation9 + $0x48] sm:$0xf]  ;;  %v6332_v48 = vld [vmem:[#allocation9 + $0x4c] sm:$0xf] }
 0x271   :  { %vm3733_vm14 = vcmp.gt.s32.totalorder %v7116_v4, 0  ;;  %vm4117_vm3 = vcmp.gt.s32.totalorder %v7116_v4, 3 }
 0x272   :  { %v6587_v12 = vpop.eup %6586 }
 0x273   :  { %v1415_v3 = vmul.f32 %v6587_v12, %v1409_v2  ;;  %1954 = vmatpush.bf16.msrb.mxu0 %v5441_v52  ;;  %1980 = vmatpush.bf16.msrb.mxu2 %v5449_v58  ;;  %v5426_v12 = vld [vmem:[#allocation9 + $0xb0] sm:$0xf0]  ;;  %v5432_v2 = vld [vmem:[#allocation9 + $0xa8] sm:$0xf]  ;;  %v5421_v52 = vor.u32 %v6340_v25, %v5418_v21  ;;  %v6335_v58 = vld [vmem:[#allocation9 + $0x64] sm:$0xf] }
 0x274   :  { %1994 = vmatpush.bf16.msrb.mxu3 %v5437_v17  ;;  %v6333_v17 = vld [vmem:[#allocation9 + $0x4c] sm:$0xf0]  ;;  %v5386_v25 = vld [vmem:[#allocation9 + $0x58] sm:$0xf0]  ;;  %v5360_v21 = vld [vmem:[#allocation9 + $0x20] sm:$0xf] }
 0x275   :  { %v7131_v5 = vsel %vm1422_vm15, %v1415_v3, %v7109_v61  ;;  %v6346_v3 = vld [vmem:[#allocation9 + $0xb4] sm:$0xf0]  ;;  %v5377_v13 = vor.u32 %v6333_v17, %v5376_v1  ;;  %v5389_v57 = vor.u32 %v6332_v48, %v5386_v25  ;;  %v5352_v1 = vld [vmem:[#allocation9 + $0x8] sm:$0xf] }
 0x276   :  { %v1427_v6 = vpack.c.bf16 %v7131_v5, %v7131_v5  ;;  %v5433_v16 = vor.u32 %v6346_v3, %v5432_v2  ;;  %v5397_v2 = vor.u32 %v6335_v58, %v5394_v7  ;;  %v6327_v58 = vld [vmem:[#allocation9 + $0x24] sm:$0xf] }
 0x277   :  { %1955 = vmatpush.bf16.msrb.mxu0 %v5425_v14 }
 0x278   :  { %1635 = vmatmul.bf16.vlgmr.msra.gmra.mxu0 %v1427_v6  ;;  %1648 = vmatmul.bf16.vlgmr.msra.gmra.mxu1 %v1427_v6 }
 0x279   :  { %1661 = vmatmul.bf16.vlgmr.msra.gmra.mxu2 %v1427_v6  ;;  %1674 = vmatmul.bf16.vlgmr.msra.gmra.mxu3 %v1427_v6  ;;  %v5429_v6 = vor.u32 %v6343_v15, %v5426_v12  ;;  %v6338_v15 = vld [vmem:[#allocation9 + $0x74] sm:$0xf0] }
 0x27a   :  { %1981 = vmatpush.bf16.msrb.mxu2 %v5433_v16  ;;  %1995 = vmatpush.bf16.msrb.mxu3 %v5421_v52  ;;  %v5401_v3 = vor.u32 %v6338_v15, %v5400_v63  ;;  %v6329_v52 = vld [vmem:[#allocation9 + $0x2c] sm:$0xf0] }
 0x27b   :  { %1968 = vmatpush.bf16.msrb.mxu1 %v5429_v6  ;;  %1956 = vmatpush.bf16.msrb.mxu0 %v5409_v32  ;;  %v5402_v6 = vld [vmem:[#allocation9 + $0x78] sm:$0xf0]  ;;  %v5381_v32 = vor.u32 %v6331_v24, %v5378_v36  ;;  %v5361_v11 = vor.u32 %v6329_v52, %v5360_v21 }
 0x27c   :  { %v5405_v33 = vor.u32 %v6336_v31, %v5402_v6  ;;  %v5344_v31 = vld [vmem:[#allocation9] sm:$0xf]  ;;  %v6325_v6 = vld [vmem:[#allocation9 + $0xc] sm:$0xf0] }
 0x27d   :  { %v5345_v24 = vor.u32 %v6325_v6, %v5344_v31 }
 0x27e   :  { %1982 = vmatpush.bf16.msrb.mxu2 %v5417_v10  ;;  %1996 = vmatpush.bf16.msrb.mxu3 %v5405_v33  ;;  %v5385_v10 = vor.u32 %v6334_v19, %v5384_v29  ;;  %v6323_v33 = vld [vmem:[#allocation9 + $0x4] sm:$0xf]  ;;  %v5354_v29 = vld [vmem:[#allocation9 + $0x18] sm:$0xf0] }
 0x27f   :  { %1969 = vmatpush.bf16.msrb.mxu1 %v5413_v23  ;;  %1957 = vmatpush.bf16.msrb.mxu0 %v5393_v30  ;;  %v407_v23 = vadd.f32 %v7015_v35, %v7001_v27  ;;  %v6330_v35 = vld [vmem:[#allocation9 + $0x34] sm:$0xf0] }
 0x282   :  { %1983 = vmatpush.bf16.msrb.mxu2 %v5401_v3  ;;  %1997 = vmatpush.bf16.msrb.mxu3 %v5389_v57  ;;  %v378_v57 = vadd.f32 %v7013_v34, %v6999_v26 }
 0x283   :  { %1970 = vmatpush.bf16.msrb.mxu1 %v5397_v2  ;;  %1958 = vmatpush.bf16.msrb.mxu0 %v5377_v13  ;;  %v6326_v13 = vld [vmem:[#allocation9 + $0x14] sm:$0xf0] }
 0x286   :  { %1984 = vmatpush.bf16.msrb.mxu2 %v5385_v10 }
 0x287   :  { %1971 = vmatpush.bf16.msrb.mxu1 %v5381_v32  ;;  %1959 = vmatpush.bf16.msrb.mxu0 %v5361_v11  ;;  %v6324_v32 = vld [vmem:[#allocation9 + $0xc] sm:$0xf]  ;;  %v2070_v11 = vsel %vm2069_vm4, 1, %v6906_v0 }
 0x288   :  { %v5357_v25 = vor.u32 %v6324_v32, %v5354_v29  ;;  %2072 = vperm.xlu2 %6539, %v2070_v11  }
 0x28b   :  { %1960 = vmatpush.bf16.msrb.mxu0 %v5345_v24 }
 0x2f5   :  { %v1636_v38 = vpop.f32.mrf.mxu0  ;;  %v1649_v59 = vpop.f32.mrf.mxu1 }
 0x2f6   :  { %v1637_v14 = vadd.f32 %v1636_v38, %v320_v55  ;;  %v1650_v12 = vadd.f32 %v1649_v59, %v349_v51  ;;  %v5362_v38 = vld [vmem:[#allocation9 + $0x30] sm:$0xf0]  ;;  %v5368_v59 = vld [vmem:[#allocation9 + $0x28] sm:$0xf] }
 0x2f7   :  { %v5365_v15 = vor.u32 %v6327_v58, %v5362_v38  ;;  %v5369_v2 = vor.u32 %v6330_v35, %v5368_v59 }
 0x2f8   :  { %v5339_v16 = vmul.f32 -1.442695, %v1637_v14  ;;  %v5340_v9 = vmul.f32 -1.442695, %v1650_v12  ;;  %v6328_v14 = vld [vmem:[#allocation9 + $0x2c] sm:$0xf] }
 0x2f9   :  { %v5370_v12 = vld [vmem:[#allocation9 + $0x38] sm:$0xf0]  ;;  %1972 = vmatpush.bf16.msrb.mxu1 %v5365_v15  ;;  %1985 = vmatpush.bf16.msrb.mxu2 %v5369_v2 }
 0x2fa   :  { %6588 = vpow2.f32 %v5339_v16  ;;  %v5373_v3 = vor.u32 %v6328_v14, %v5370_v12  ;;  %v2396_v12 = vsel %vm2395_vm5, 1, %v6906_v0 }
 0x2fb   :  { %6590 = vpow2.f32 %v5340_v9  ;;  %v5346_v9 = vld [vmem:[#allocation9 + $0x10] sm:$0xf0]  ;;  %2398 = vperm.xlu2 %6539, %v2396_v12   ;;  %v6385_v12 = vld [vmem:[#allocation9 + $0xec] sm:$0xf0] }
 0x2fc   :  { %v1662_v55 = vpop.f32.mrf.mxu2  ;;  %v1675_v51 = vpop.f32.mrf.mxu3  ;;  %v5349_v36 = vor.u32 %v6323_v33, %v5346_v9  ;;  %1998 = vmatpush.bf16.msrb.mxu3 %v5373_v3 }
 0x2fd   :  { %v1676_v30 = vadd.f32 %v1675_v51, %v407_v23  ;;  %v1638_v7 = vpop.f32.mrf.mxu0  ;;  %v1651_v63 = vpop.f32.mrf.mxu1  ;;  %v5353_v23 = vor.u32 %v6326_v13, %v5352_v1  ;;  %v1663_v59 = vadd.f32 %v1662_v55, %v378_v57 }
 0x2fe   :  { %1973 = vmatpush.bf16.msrb.mxu1 %v5349_v36 }
 0x2ff   :  { %v5341_v16 = vmul.f32 -1.442695, %v1676_v30  ;;  %1986 = vmatpush.bf16.msrb.mxu2 %v5353_v23 }
 0x300   :  { %v6589_v17 = vpop.eup %6588  ;;  %1999 = vmatpush.bf16.msrb.mxu3 %v5357_v25  ;;  %v1747_v25 = vpop.permute.xlu1 %1746 }
 0x301   :  { %v6591_v19 = vpop.eup %6590  ;;  %v1682_v48 = vadd.f32 1.0, %v6589_v17  ;;  %6592 = vpow2.f32 %v5341_v16  ;;  %vm1748_vm0 = vcmp.eq.s32.totalorder %v1747_v25, 1  ;;  %v5555_v25 = vld [vmem:[#allocation9 + $0xa0] sm:$0xf] }
 0x302   :  { %v1701_v10 = vadd.f32 1.0, %v6591_v19 }
 0x303   :  { %6594 = vrcp.f32 %v1682_v48  ;;  %v1694_v14 = vand.u32 2147483648, %v1682_v48  ;;  %v1692_v3 = vand.u32 2147483647, %v1682_v48  ;;  %vm1688_vm8 = vweird.f32 %v1682_v48 }
 0x304   :  { %6596 = vrcp.f32 %v1701_v10  ;;  %v1664_v21 = vpop.f32.mrf.mxu2  ;;  %v1677_v52 = vpop.f32.mrf.mxu3  ;;  %v1713_v2 = vand.u32 2147483648, %v1701_v10  ;;  %v1711_v6 = vand.u32 2147483647, %v1701_v10  ;;  %vm1707_vm9 = vweird.f32 %v1701_v10 }
 0x305   :  { %v1695_v28 = vor.u32 1.1754944e-38, %v1694_v14  ;;  %vm1693_vm12 = vcmp.eq.f32.partialorder %v1692_v3, 8.507059e+37  ;;  %v5587_v14 = vld [vmem:[#allocation9 + $0xe0] sm:$0xf]  ;;  %v5589_v3 = vld [vmem:[#allocation9 + $0xf0] sm:$0xf0] }
 0x306   :  { %v1714_v1 = vor.u32 1.1754944e-38, %v1713_v2  ;;  %vm1712_vm15 = vcmp.eq.f32.partialorder %v1711_v6, 8.507059e+37  ;;  %v6383_v2 = vld [vmem:[#allocation9 + $0xe4] sm:$0xf]  ;;  %v6386_v6 = vld [vmem:[#allocation9 + $0xf4] sm:$0xf0] }
 0x307   :  { %v6593_v51 = vpop.eup %6592 }
 0x308   :  { %v1721_v58 = vadd.f32 1.0, %v6593_v51 }
 0x309   :  { %v6595_v38 = vpop.eup %6594 }
 0x30a   :  { %v6597_v30 = vpop.eup %6596  ;;  %v1684_v7 = vmul.f32 %v6595_v38, %v1682_v48  ;;  %6598 = vrcp.f32 %v1721_v58  ;;  %vm1689_vm6 = vweird.f32 %v6595_v38  ;;  %v1733_v51 = vand.u32 2147483648, %v1721_v58 }
 0x30b   :  { %v1703_v63 = vmul.f32 %v6597_v30, %v1701_v10  ;;  %6600 = vtanh.f32 %v1663_v59  ;;  %vm1708_vm7 = vweird.f32 %v6597_v30  ;;  %vm1690_vm10 = vmor %vm1688_vm8, %vm1689_vm6  ;;  %v3734_v10 = vsel %vm3733_vm14, 1, %v6906_v0 }
 0x30c   :  { %v1685_v15 = vsub.f32 1.0, %v1684_v7  ;;  %vm1709_vm11 = vmor %vm1707_vm9, %vm1708_vm7  ;;  %3736 = vperm.xlu2 %6539, %v3734_v10   ;;  %vm1727_vm2 = vweird.f32 %v1721_v58  ;;  %v1731_v11 = vand.u32 2147483647, %v1721_v58  ;;  %v1734_v59 = vor.u32 1.1754944e-38, %v1733_v51 }
 0x30d   :  { %v1704_v35 = vsub.f32 1.0, %v1703_v63  ;;  %vm4501_vm6 = vcmp.gt.s32.totalorder %v7116_v4, 6  ;;  %v6384_v4 = vld [vmem:[#allocation9 + $0xec] sm:$0xf] }
 0x30e   :  { %v1686_v34 = vmul.f32 %v6595_v38, %v1685_v15  ;;  %vm1732_vm5 = vcmp.eq.f32.partialorder %v1731_v11, 8.507059e+37  ;;  %v5557_v11 = vld [vmem:[#allocation9 + $0xb0] sm:$0xf0] }
 0x30f   :  { %v1705_v31 = vmul.f32 %v6597_v30, %v1704_v35 }
 0x310   :  { %v6599_v55 = vpop.eup %6598  ;;  %v1687_v33 = vadd.f32 %v6595_v38, %v1686_v34  ;;  %v5588_v34 = vor.u32 %v6385_v12, %v5587_v14  ;;  %v6373_v14 = vld [vmem:[#allocation9 + $0x8c] sm:$0xf0]  ;;  %v6371_v12 = vld [vmem:[#allocation9 + $0x84] sm:$0xf] }
 0x311   :  { %v1706_v16 = vadd.f32 %v6597_v30, %v1705_v31  ;;  %v1723_v9 = vmul.f32 %v6599_v55, %v1721_v58  ;;  %v6601_v24 = vpop.eup %6600  ;;  %vm1728_vm1 = vweird.f32 %v6599_v55  ;;  %v4502_v58 = vsel %vm4501_vm6, 1, %v6906_v0  ;;  %v5595_v31 = vld [vmem:[#allocation9 + $0xe8] sm:$0xf] }
 0x312   :  { %v1691_v17 = vsel %vm1690_vm10, %v6595_v38, %v1687_v33  ;;  %vm1729_vm4 = vmor %vm1727_vm2, %vm1728_vm1  ;;  %v5596_v33 = vor.u32 %v6386_v6, %v5595_v31  ;;  %2279 = vmatpush.bf16.msra.mxu0 %v5588_v34  ;;  %v5541_v34 = vld [vmem:[#allocation9 + $0x90] sm:$0xf0]  ;;  %v6374_v31 = vld [vmem:[#allocation9 + $0x94] sm:$0xf0] }
 0x313   :  { %v1696_v36 = vsel %vm1693_vm12, %v1695_v28, %v1691_v17  ;;  %v1710_v13 = vsel %vm1709_vm11, %v6597_v30, %v1706_v16  ;;  %v1724_v32 = vsub.f32 1.0, %v1723_v9  ;;  %v4118_v30 = vsel %vm4117_vm3, 1, %v6906_v0  ;;  %v5597_v28 = vld [vmem:[#allocation9 + $0xf8] sm:$0xf0]  ;;  %v5571_v9 = vld [vmem:[#allocation9 + $0xc0] sm:$0xf] }
 0x314   :  { %v1715_v29 = vsel %vm1712_vm15, %v1714_v1, %v1710_v13  ;;  %v1738_v19 = vmul.f32 %v6601_v24, %v1696_v36  ;;  %4120 = vperm.xlu2 %6539, %v4118_v30   ;;  %v5600_v16 = vor.u32 %v6384_v4, %v5597_v28  ;;  %2305 = vmatpush.bf16.msra.mxu2 %v5596_v33  ;;  %v6381_v1 = vld [vmem:[#allocation9 + $0xcc] sm:$0xf0]  ;;  %v6379_v17 = vld [vmem:[#allocation9 + $0xc4] sm:$0xf]  ;;  %v5573_v36 = vld [vmem:[#allocation9 + $0xd0] sm:$0xf0] }
 0x315   :  { %v1737_v48 = vmul.f32 %v1715_v29, %v7127_v49  ;;  %v1725_v23 = vmul.f32 %v6599_v55, %v1724_v32  ;;  %v5572_v24 = vor.u32 %v6381_v1, %v5571_v9  ;;  %v5579_v13 = vld [vmem:[#allocation9 + $0xc8] sm:$0xf]  ;;  %v6382_v32 = vld [vmem:[#allocation9 + $0xd4] sm:$0xf0]  ;;  %v5576_v29 = vor.u32 %v6379_v17, %v5573_v36  ;;  %v6372_v33 = vld [vmem:[#allocation9 + $0x8c] sm:$0xf] }
 0x316   :  { %2318 = vmatpush.bf16.msra.mxu3 %v5600_v16  ;;  %v5544_v6 = vor.u32 %v6371_v12, %v5541_v34  ;;  %v5549_v4 = vld [vmem:[#allocation9 + $0x98] sm:$0xf0]  ;;  %v5523_v16 = vld [vmem:[#allocation9 + $0x60] sm:$0xf]  ;;  %v6369_v9 = vld [vmem:[#allocation9 + $0x6c] sm:$0xf0] }
 0x317   :  { %v1739_v21 = vadd.f32 %v1738_v19, %v1737_v48  ;;  %v1726_v52 = vadd.f32 %v6599_v55, %v1725_v23  ;;  %v5580_v19 = vor.u32 %v6382_v32, %v5579_v13  ;;  %v6380_v48 = vld [vmem:[#allocation9 + $0xcc] sm:$0xf]  ;;  %v5581_v23 = vld [vmem:[#allocation9 + $0xd8] sm:$0xf0]  ;;  %2280 = vmatpush.bf16.msra.mxu0 %v5572_v24  ;;  %v5552_v28 = vor.u32 %v6372_v33, %v5549_v4  ;;  %v6367_v1 = vld [vmem:[#allocation9 + $0x64] sm:$0xf] }
 0x318   :  { %v5584_v10 = vor.u32 %v6380_v48, %v5581_v23  ;;  %v5524_v36 = vor.u32 %v6369_v9, %v5523_v16  ;;  %v5525_v13 = vld [vmem:[#allocation9 + $0x70] sm:$0xf0]  ;;  %v5531_v32 = vld [vmem:[#allocation9 + $0x68] sm:$0xf] }
 0x319   :  { %6602 = vtanh.f32 %v1739_v21  ;;  %v7152_v57 = vsel %vm1748_vm0, %v1739_v21, %v7127_v49  ;;  %v1730_v38 = vsel %vm1729_vm4, %v6599_v55, %v1726_v52  ;;  %v5592_v55 = vor.u32 %v6383_v2, %v5589_v3  ;;  %2306 = vmatpush.bf16.msra.mxu2 %v5580_v19  ;;  %v6377_v21 = vld [vmem:[#allocation9 + $0xac] sm:$0xf0]  ;;  %v6375_v52 = vld [vmem:[#allocation9 + $0xa4] sm:$0xf]  ;;  %v5547_v3 = vld [vmem:[#allocation9 + $0x88] sm:$0xf] }
 0x31a   :  { %v1735_v63 = vsel %vm1732_vm5, %v1734_v59, %v1730_v38  ;;  %2319 = vmatpush.bf16.msra.mxu3 %v5584_v10  ;;  %v5556_v51 = vor.u32 %v6377_v21, %v5555_v25  ;;  %v5563_v38 = vld [vmem:[#allocation9 + $0xa8] sm:$0xf]  ;;  %v6378_v59 = vld [vmem:[#allocation9 + $0xb4] sm:$0xf0]  ;;  %v5560_v30 = vor.u32 %v6375_v52, %v5557_v11  ;;  %v5528_v23 = vor.u32 %v6367_v1, %v5525_v13  ;;  %v6368_v25 = vld [vmem:[#allocation9 + $0x6c] sm:$0xf] }
 0x31b   :  { %2292 = vmatpush.bf16.msra.mxu1 %v5592_v55  ;;  %v5548_v55 = vor.u32 %v6374_v31, %v5547_v3  ;;  %v5533_v21 = vld [vmem:[#allocation9 + $0x78] sm:$0xf0]  ;;  %v5491_v3 = vld [vmem:[#allocation9 + $0x20] sm:$0xf]  ;;  %v6361_v31 = vld [vmem:[#allocation9 + $0x2c] sm:$0xf0] }
 0x31c   :  { %4504 = vperm.xlu2 %6539, %v4502_v58   ;;  %2281 = vmatpush.bf16.msra.mxu0 %v5556_v51  ;;  %v5539_v58 = vld [vmem:[#allocation9 + $0x80] sm:$0xf]  ;;  %v5536_v52 = vor.u32 %v6368_v25, %v5533_v21  ;;  %v5493_v16 = vld [vmem:[#allocation9 + $0x30] sm:$0xf0]  ;;  %v5499_v9 = vld [vmem:[#allocation9 + $0x28] sm:$0xf] }
 0x31d   :  { %v5540_v2 = vor.u32 %v6373_v14, %v5539_v58  ;;  %v6364_v58 = vld [vmem:[#allocation9 + $0x4c] sm:$0xf]  ;;  %v5517_v14 = vld [vmem:[#allocation9 + $0x58] sm:$0xf0]  ;;  %v6362_v1 = vld [vmem:[#allocation9 + $0x34] sm:$0xf0] }
 0x31e   :  { %v5520_v34 = vor.u32 %v6364_v58, %v5517_v14  ;;  %v5501_v13 = vld [vmem:[#allocation9 + $0x38] sm:$0xf0] }
 0x31f   :  { %v6603_v7 = vpop.eup %6602  ;;  %2293 = vmatpush.bf16.msra.mxu1 %v5576_v29  ;;  %v6370_v29 = vld [vmem:[#allocation9 + $0x74] sm:$0xf0] }
 0x320   :  { %v1741_v15 = vmul.f32 %v6603_v7, %v1735_v63  ;;  %v5564_v7 = vor.u32 %v6378_v59, %v5563_v38  ;;  %v6376_v63 = vld [vmem:[#allocation9 + $0xac] sm:$0xf]  ;;  %2282 = vmatpush.bf16.msra.mxu0 %v5540_v2  ;;  %v5532_v10 = vor.u32 %v6370_v29, %v5531_v32  ;;  %v5507_v38 = vld [vmem:[#allocation9 + $0x40] sm:$0xf]  ;;  %v6365_v59 = vld [vmem:[#allocation9 + $0x4c] sm:$0xf0] }
 0x322   :  { %v7158_v35 = vsel %vm1748_vm0, %v1741_v15, %v7131_v5  ;;  %v5565_v15 = vld [vmem:[#allocation9 + $0xb8] sm:$0xf0]  ;;  %2307 = vmatpush.bf16.msra.mxu2 %v5564_v7  ;;  %v5508_v7 = vor.u32 %v6365_v59, %v5507_v38  ;;  %v6358_v38 = vld [vmem:[#allocation9 + $0x14] sm:$0xf0]  ;;  %v6356_v59 = vld [vmem:[#allocation9 + $0xc] sm:$0xf] }
 0x323   :  { %v1753_v49 = vpack.c.bf16 %v7158_v35, %v7158_v35  ;;  %2294 = vmatpush.bf16.msra.mxu1 %v5560_v30  ;;  %v6363_v30 = vld [vmem:[#allocation9 + $0x44] sm:$0xf]  ;;  %v3065_v60 = vpack.c.bf16 %v7158_v35, %v7131_v5  ;;  %v330_v5 = vadd.f32 %v7046_v47, %v6985_v18  ;;  %v6508_v47 = vld [vmem:[#allocation9 + $0x1cc] sm:$0xf] }
 0x324   :  { %2283 = vmatpush.bf16.msra.mxu0 %v5524_v36  ;;  %v6360_v36 = vld [vmem:[#allocation9 + $0x2c] sm:$0xf] }
 0x325   :  { %1961 = vmatmul.bf16.vlgmr.msrb.gmra.mxu0 %v1753_v49  ;;  %1974 = vmatmul.bf16.vlgmr.msrb.gmra.mxu1 %v1753_v49  ;;  %v5504_v29 = vor.u32 %v6360_v36, %v5501_v13 }
 0x326   :  { %1987 = vmatmul.bf16.vlgmr.msrb.gmra.mxu2 %v1753_v49  ;;  %2000 = vmatmul.bf16.vlgmr.msrb.gmra.mxu3 %v1753_v49  ;;  %v5568_v49 = vor.u32 %v6376_v63, %v5565_v15  ;;  %v5509_v63 = vld [vmem:[#allocation9 + $0x50] sm:$0xf0]  ;;  %v6366_v15 = vld [vmem:[#allocation9 + $0x54] sm:$0xf0] }
 0x327   :  { %2295 = vmatpush.bf16.msra.mxu1 %v5544_v6  ;;  %2308 = vmatpush.bf16.msra.mxu2 %v5548_v55  ;;  %v6359_v6 = vld [vmem:[#allocation9 + $0x24] sm:$0xf] }
 0x328   :  { %2320 = vmatpush.bf16.msra.mxu3 %v5568_v49  ;;  %2284 = vmatpush.bf16.msra.mxu0 %v5508_v7 }
 0x32b   :  { %2296 = vmatpush.bf16.msra.mxu1 %v5528_v23  ;;  %2309 = vmatpush.bf16.msra.mxu2 %v5532_v10  ;;  %v6357_v23 = vld [vmem:[#allocation9 + $0xc] sm:$0xf0] }
 0x32c   :  { %2321 = vmatpush.bf16.msra.mxu3 %v5552_v28  ;;  %v5492_v28 = vor.u32 %v6361_v31, %v5491_v3 }
 0x32e   :  { %2285 = vmatpush.bf16.msra.mxu0 %v5492_v28 }
 0x330   :  { %2322 = vmatpush.bf16.msra.mxu3 %v5536_v52  ;;  %v6355_v52 = vld [vmem:[#allocation9 + $0x4] sm:$0xf] }
 0x334   :  { %2323 = vmatpush.bf16.msra.mxu3 %v5520_v34 }
 0x338   :  { %2324 = vmatpush.bf16.msra.mxu3 %v5504_v29 }
 0x3a2   :  { %v1962_v17 = vpop.f32.mrf.mxu0  ;;  %v1975_v24 = vpop.f32.mrf.mxu1 }
 0x3a3   :  { %v1963_v19 = vadd.f32 %v1962_v17, %v7018_v37  ;;  %v1976_v48 = vadd.f32 %v1975_v24, %v7021_v39  ;;  %v5515_v37 = vld [vmem:[#allocation9 + $0x48] sm:$0xf]  ;;  %v5512_v39 = vor.u32 %v6363_v30, %v5509_v63  ;;  %v5496_v17 = vor.u32 %v6359_v6, %v5493_v16  ;;  %v5485_v63 = vld [vmem:[#allocation9 + $0x18] sm:$0xf0] }
 0x3a4   :  { %v5516_v49 = vor.u32 %v6366_v15, %v5515_v37  ;;  %v5500_v24 = vor.u32 %v6362_v1, %v5499_v9 }
 0x3a5   :  { %v5470_v51 = vmul.f32 -1.442695, %v1963_v19  ;;  %v5471_v11 = vmul.f32 -1.442695, %v1976_v48  ;;  %2297 = vmatpush.bf16.msra.mxu1 %v5512_v39  ;;  %v5475_v48 = vld [vmem:[#allocation9] sm:$0xf]  ;;  %v5488_v39 = vor.u32 %v6356_v59, %v5485_v63 }
 0x3a6   :  { %2310 = vmatpush.bf16.msra.mxu2 %v5516_v49  ;;  %v5476_v25 = vor.u32 %v6357_v23, %v5475_v48 }
 0x3a7   :  { %6604 = vpow2.f32 %v5470_v51  ;;  %v5477_v51 = vld [vmem:[#allocation9 + $0x10] sm:$0xf0]  ;;  %2325 = vmatpush.bf16.msra.mxu3 %v5488_v39 }
 0x3a8   :  { %6606 = vpow2.f32 %v5471_v11  ;;  %v5483_v11 = vld [vmem:[#allocation9 + $0x8] sm:$0xf]  ;;  %2286 = vmatpush.bf16.msra.mxu0 %v5476_v25  ;;  %v5480_v37 = vor.u32 %v6355_v52, %v5477_v51  ;;  %v2073_v52 = vpop.permute.xlu2 %2072 }
 0x3a9   :  { %v1988_v12 = vpop.f32.mrf.mxu2  ;;  %v2001_v2 = vpop.f32.mrf.mxu3  ;;  %2298 = vmatpush.bf16.msra.mxu1 %v5496_v17  ;;  %v5484_v15 = vor.u32 %v6358_v38, %v5483_v11  ;;  %vm2074_vm0 = vcmp.eq.s32.totalorder %v2073_v52, 1 }
 0x3aa   :  { %v2002_v55 = vadd.f32 %v2001_v2, %v7029_v44  ;;  %v1964_v33 = vpop.f32.mrf.mxu0  ;;  %v1977_v4 = vpop.f32.mrf.mxu1  ;;  %2311 = vmatpush.bf16.msra.mxu2 %v5500_v24  ;;  %v1989_v2 = vadd.f32 %v1988_v12, %v7024_v41 }
 0x3ac   :  { %v5472_v32 = vmul.f32 -1.442695, %v2002_v55 }
 0x3ad   :  { %v6605_v19 = vpop.eup %6604  ;;  %2299 = vmatpush.bf16.msra.mxu1 %v5480_v37 }
 0x3ae   :  { %v6607_v44 = vpop.eup %6606  ;;  %v2008_v10 = vadd.f32 1.0, %v6605_v19  ;;  %6608 = vpow2.f32 %v5472_v32  ;;  %2312 = vmatpush.bf16.msra.mxu2 %v5484_v15 }
 0x3af   :  { %v2027_v21 = vadd.f32 1.0, %v6607_v44 }
 0x3b0   :  { %6610 = vrcp.f32 %v2008_v10  ;;  %v2020_v33 = vand.u32 2147483648, %v2008_v10  ;;  %v2018_v28 = vand.u32 2147483647, %v2008_v10  ;;  %vm2014_vm9 = vweird.f32 %v2008_v10 }
 0x3b1   :  { %6612 = vrcp.f32 %v2027_v21  ;;  %v1990_v30 = vpop.f32.mrf.mxu2  ;;  %v2003_v7 = vpop.f32.mrf.mxu3  ;;  %v2039_v16 = vand.u32 2147483648, %v2027_v21  ;;  %v2037_v1 = vand.u32 2147483647, %v2027_v21  ;;  %vm2033_vm11 = vweird.f32 %v2027_v21 }
 0x3b2   :  { %v2021_v41 = vor.u32 1.1754944e-38, %v2020_v33  ;;  %vm2019_vm12 = vcmp.eq.f32.partialorder %v2018_v28, 8.507059e+37  ;;  %v5728_v28 = vld [vmem:[#allocation9 + $0xf8] sm:$0xf0] }
 0x3b3   :  { %v2040_v32 = vor.u32 1.1754944e-38, %v2039_v16  ;;  %vm2038_vm15 = vcmp.eq.f32.partialorder %v2037_v1, 8.507059e+37  ;;  %v6413_v1 = vld [vmem:[#allocation9 + $0xcc] sm:$0xf0] }
 0x3b4   :  { %v6609_v49 = vpop.eup %6608 }
 0x3b5   :  { %v2047_v58 = vadd.f32 1.0, %v6609_v49 }
 0x3b6   :  { %v6611_v14 = vpop.eup %6610 }
 0x3b7   :  { %v6613_v34 = vpop.eup %6612  ;;  %v2010_v3 = vmul.f32 %v6611_v14, %v2008_v10  ;;  %6614 = vrcp.f32 %v2047_v58  ;;  %vm2015_vm7 = vweird.f32 %v6611_v14  ;;  %vm2053_vm2 = vweird.f32 %v2047_v58 }
 0x3b8   :  { %v2029_v31 = vmul.f32 %v6613_v34, %v2027_v21  ;;  %6616 = vtanh.f32 %v1989_v2  ;;  %vm2034_vm8 = vweird.f32 %v6613_v34  ;;  %vm2016_vm10 = vmor %vm2014_vm9, %vm2015_vm7  ;;  %v2059_v21 = vand.u32 2147483648, %v2047_v58  ;;  %v6415_v2 = vld [vmem:[#allocation9 + $0xe4] sm:$0xf] }
 0x3b9   :  { %v2011_v6 = vsub.f32 1.0, %v2010_v3  ;;  %vm2035_vm14 = vmor %vm2033_vm11, %vm2034_vm8  ;;  %v2057_v30 = vand.u32 2147483647, %v2047_v58  ;;  %v5720_v3 = vld [vmem:[#allocation9 + $0xf0] sm:$0xf0] }
 0x3ba   :  { %v2030_v55 = vsub.f32 1.0, %v2029_v31  ;;  %v2060_v63 = vor.u32 1.1754944e-38, %v2059_v21  ;;  %v5726_v31 = vld [vmem:[#allocation9 + $0xe8] sm:$0xf] }
 0x3bb   :  { %v2012_v4 = vmul.f32 %v6611_v14, %v2011_v6  ;;  %vm2058_vm4 = vcmp.eq.f32.partialorder %v2057_v30, 8.507059e+37  ;;  %v6418_v6 = vld [vmem:[#allocation9 + $0xf4] sm:$0xf0]  ;;  %v6408_v30 = vld [vmem:[#allocation9 + $0xac] sm:$0xf] }
 0x3bc   :  { %v2031_v9 = vmul.f32 %v6613_v34, %v2030_v55  ;;  %v5723_v55 = vor.u32 %v6415_v2, %v5720_v3  ;;  %v5727_v33 = vor.u32 %v6418_v6, %v5726_v31  ;;  %v6406_v2 = vld [vmem:[#allocation9 + $0x94] sm:$0xf0]  ;;  %v6404_v31 = vld [vmem:[#allocation9 + $0x8c] sm:$0xf]  ;;  %v5680_v6 = vld [vmem:[#allocation9 + $0x98] sm:$0xf0] }
 0x3bd   :  { %v6615_v17 = vpop.eup %6614  ;;  %v2013_v24 = vadd.f32 %v6611_v14, %v2012_v4  ;;  %v6416_v4 = vld [vmem:[#allocation9 + $0xec] sm:$0xf] }
 0x3be   :  { %v2049_v12 = vmul.f32 %v6615_v17, %v2047_v58  ;;  %v2032_v36 = vadd.f32 %v6613_v34, %v2031_v9  ;;  %v6617_v29 = vpop.eup %6616  ;;  %vm2054_vm1 = vweird.f32 %v6615_v17  ;;  %v6417_v58 = vld [vmem:[#allocation9 + $0xec] sm:$0xf0]  ;;  %v5731_v16 = vor.u32 %v6416_v4, %v5728_v28  ;;  %2618 = vmatpush.bf16.msrb.mxu1 %v5723_v55  ;;  %2631 = vmatpush.bf16.msrb.mxu2 %v5727_v33  ;;  %v5702_v9 = vld [vmem:[#allocation9 + $0xc0] sm:$0xf] }
 0x3bf   :  { %v2017_v13 = vsel %vm2016_vm10, %v6611_v14, %v2013_v24  ;;  %vm2055_vm3 = vmor %vm2053_vm2, %vm2054_vm1  ;;  %v5703_v24 = vor.u32 %v6413_v1, %v5702_v9  ;;  %v5683_v55 = vor.u32 %v6404_v31, %v5680_v6  ;;  %v325_v33 = vadd.f32 %v7026_v43, %v6985_v18  ;;  %v5654_v28 = vld [vmem:[#allocation9 + $0x60] sm:$0xf]  ;;  %v6399_v9 = vld [vmem:[#allocation9 + $0x64] sm:$0xf] }
 0x3c0   :  { %v2022_v19 = vsel %vm2019_vm12, %v2021_v41, %v2017_v13  ;;  %v2050_v48 = vsub.f32 1.0, %v2049_v12  ;;  %v2036_v23 = vsel %vm2035_vm14, %v6613_v34, %v2032_v36  ;;  %2644 = vmatpush.bf16.msrb.mxu3 %v5731_v16  ;;  %v5704_v41 = vld [vmem:[#allocation9 + $0xd0] sm:$0xf0]  ;;  %v5710_v12 = vld [vmem:[#allocation9 + $0xc8] sm:$0xf]  ;;  %v354_v4 = vadd.f32 %v7031_v45, %v6989_v20 }
 0x3c1   :  { %v2064_v44 = vmul.f32 %v6617_v29, %v2022_v19  ;;  %v2041_v25 = vsel %vm2038_vm15, %v2040_v32, %v2036_v23  ;;  %v6414_v36 = vld [vmem:[#allocation9 + $0xd4] sm:$0xf0]  ;;  %v6412_v29 = vld [vmem:[#allocation9 + $0xcc] sm:$0xf]  ;;  %v5712_v19 = vld [vmem:[#allocation9 + $0xd8] sm:$0xf0] }
 0x3c2   :  { %v2051_v51 = vmul.f32 %v6615_v17, %v2050_v48  ;;  %v2063_v10 = vmul.f32 %v2041_v25, %v7152_v57  ;;  %v5711_v32 = vor.u32 %v6414_v36, %v5710_v12  ;;  %v5715_v48 = vor.u32 %v6412_v29, %v5712_v19  ;;  %v5686_v23 = vld [vmem:[#allocation9 + $0xa0] sm:$0xf]  ;;  %v6407_v25 = vld [vmem:[#allocation9 + $0xa4] sm:$0xf]  ;;  %v6401_v16 = vld [vmem:[#allocation9 + $0x6c] sm:$0xf0] }
 0x3c3   :  { %v5662_v12 = vld [vmem:[#allocation9 + $0x68] sm:$0xf]  ;;  %v6402_v36 = vld [vmem:[#allocation9 + $0x74] sm:$0xf0]  ;;  %v6400_v43 = vld [vmem:[#allocation9 + $0x6c] sm:$0xf] }
 0x3c4   :  { %v2065_v11 = vadd.f32 %v2064_v44, %v2063_v10  ;;  %v2052_v38 = vadd.f32 %v6615_v17, %v2051_v51  ;;  %2632 = vmatpush.bf16.msrb.mxu2 %v5711_v32  ;;  %v6409_v44 = vld [vmem:[#allocation9 + $0xac] sm:$0xf0]  ;;  %2645 = vmatpush.bf16.msrb.mxu3 %v5715_v48  ;;  %v5688_v51 = vld [vmem:[#allocation9 + $0xb0] sm:$0xf0]  ;;  %v5694_v10 = vld [vmem:[#allocation9 + $0xa8] sm:$0xf]  ;;  %v5663_v19 = vor.u32 %v6402_v36, %v5662_v12 }
 0x3c5   :  { %v5687_v52 = vor.u32 %v6409_v44, %v5686_v23  ;;  %v5664_v48 = vld [vmem:[#allocation9 + $0x78] sm:$0xf0]  ;;  %v5624_v31 = vld [vmem:[#allocation9 + $0x30] sm:$0xf0]  ;;  %v5630_v6 = vld [vmem:[#allocation9 + $0x28] sm:$0xf] }
 0x3c6   :  { %6618 = vtanh.f32 %v2065_v11  ;;  %v7171_v59 = vsel %vm2074_vm0, %v2065_v11, %v7152_v57  ;;  %v2056_v7 = vsel %vm2055_vm3, %v6615_v17, %v2052_v38  ;;  %v5718_v57 = vld [vmem:[#allocation9 + $0xe0] sm:$0xf]  ;;  %v6411_v17 = vld [vmem:[#allocation9 + $0xc4] sm:$0xf]  ;;  %v6410_v11 = vld [vmem:[#allocation9 + $0xb4] sm:$0xf0]  ;;  %v5691_v38 = vor.u32 %v6407_v25, %v5688_v51 }
 0x3c7   :  { %v2061_v15 = vsel %vm2058_vm4, %v2060_v63, %v2056_v7  ;;  %v5719_v34 = vor.u32 %v6417_v58, %v5718_v57  ;;  %v5707_v13 = vor.u32 %v6411_v17, %v5704_v41  ;;  %v5695_v21 = vor.u32 %v6410_v11, %v5694_v10  ;;  %v5696_v7 = vld [vmem:[#allocation9 + $0xb8] sm:$0xf0]  ;;  %v5672_v57 = vld [vmem:[#allocation9 + $0x90] sm:$0xf0]  ;;  %v5678_v58 = vld [vmem:[#allocation9 + $0x88] sm:$0xf] }
 0x3c8   :  { %v5699_v63 = vor.u32 %v6408_v30, %v5696_v7  ;;  %v5679_v3 = vor.u32 %v6406_v2, %v5678_v58  ;;  %v5656_v41 = vld [vmem:[#allocation9 + $0x70] sm:$0xf0]  ;;  %v5667_v45 = vor.u32 %v6400_v43, %v5664_v48  ;;  %v5638_v25 = vld [vmem:[#allocation9 + $0x40] sm:$0xf]  ;;  %v6395_v51 = vld [vmem:[#allocation9 + $0x44] sm:$0xf] }
 0x3c9   :  { %2605 = vmatpush.bf16.msrb.mxu0 %v5719_v34  ;;  %2619 = vmatpush.bf16.msrb.mxu1 %v5707_v13  ;;  %v5659_v29 = vor.u32 %v6399_v9, %v5656_v41  ;;  %v5640_v10 = vld [vmem:[#allocation9 + $0x50] sm:$0xf0]  ;;  %v6398_v30 = vld [vmem:[#allocation9 + $0x54] sm:$0xf0]  ;;  %v6396_v7 = vld [vmem:[#allocation9 + $0x4c] sm:$0xf] }
 0x3ca   :  { %2633 = vmatpush.bf16.msrb.mxu2 %v5695_v21  ;;  %2646 = vmatpush.bf16.msrb.mxu3 %v5699_v63  ;;  %v5646_v21 = vld [vmem:[#allocation9 + $0x48] sm:$0xf]  ;;  %v412_v63 = vadd.f32 %v7035_v50, %v7001_v27  ;;  %v6394_v50 = vld [vmem:[#allocation9 + $0x34] sm:$0xf0]  ;;  %v5632_v9 = vld [vmem:[#allocation9 + $0x38] sm:$0xf0] }
 0x3cb   :  { %v6389_v41 = vld [vmem:[#allocation9 + $0xc] sm:$0xf0]  ;;  %v6387_v12 = vld [vmem:[#allocation9 + $0x4] sm:$0xf]  ;;  %v6390_v48 = vld [vmem:[#allocation9 + $0x14] sm:$0xf0] }
 0x3cc   :  { %v6619_v37 = vpop.eup %6618 }
 0x3cd   :  { %v2067_v39 = vmul.f32 %v6619_v37, %v2061_v15  ;;  %2606 = vmatpush.bf16.msrb.mxu0 %v5703_v24  ;;  %2620 = vmatpush.bf16.msrb.mxu1 %v5691_v38  ;;  %v5670_v37 = vld [vmem:[#allocation9 + $0x80] sm:$0xf]  ;;  %v6405_v15 = vld [vmem:[#allocation9 + $0x8c] sm:$0xf0]  ;;  %v5655_v24 = vor.u32 %v6401_v16, %v5654_v28  ;;  %v5643_v38 = vor.u32 %v6395_v51, %v5640_v10  ;;  %v6392_v16 = vld [vmem:[#allocation9 + $0x2c] sm:$0xf] }
 0x3ce   :  { %2634 = vmatpush.bf16.msrb.mxu2 %v5679_v3  ;;  %2647 = vmatpush.bf16.msrb.mxu3 %v5683_v55  ;;  %v6391_v3 = vld [vmem:[#allocation9 + $0x24] sm:$0xf] }
 0x3cf   :  { %v7175_v49 = vsel %vm2074_vm0, %v2067_v39, %v7158_v35  ;;  %v6403_v39 = vld [vmem:[#allocation9 + $0x84] sm:$0xf]  ;;  %v5627_v28 = vor.u32 %v6391_v3, %v5624_v31  ;;  %v359_v35 = vadd.f32 %v7051_v54, %v6989_v20  ;;  %v6103_v54 = vld [vmem:[#allocation9 + $0x1d8] sm:$0xf0] }
 0x3d0   :  { %v2079_v14 = vpack.c.bf16 %v7175_v49, %v7175_v49  ;;  %v5675_v34 = vor.u32 %v6403_v39, %v5672_v57  ;;  %v5622_v39 = vld [vmem:[#allocation9 + $0x20] sm:$0xf] }
 0x3d1   :  { %2607 = vmatpush.bf16.msrb.mxu0 %v5687_v52  ;;  %v6397_v52 = vld [vmem:[#allocation9 + $0x4c] sm:$0xf0] }
 0x3d2   :  { %2287 = vmatmul.bf16.vlgmr.msra.gmra.mxu0 %v2079_v14  ;;  %2300 = vmatmul.bf16.vlgmr.msra.gmra.mxu1 %v2079_v14  ;;  %v5639_v11 = vor.u32 %v6397_v52, %v5638_v25 }
 0x3d3   :  { %2313 = vmatmul.bf16.vlgmr.msra.gmra.mxu2 %v2079_v14  ;;  %2326 = vmatmul.bf16.vlgmr.msra.gmra.mxu3 %v2079_v14  ;;  %v5671_v14 = vor.u32 %v6405_v15, %v5670_v37  ;;  %v5647_v37 = vor.u32 %v6398_v30, %v5646_v21  ;;  %v5648_v15 = vld [vmem:[#allocation9 + $0x58] sm:$0xf0]  ;;  %v383_v30 = vadd.f32 %v7033_v46, %v6999_v26 }
 0x3d4   :  { %2621 = vmatpush.bf16.msrb.mxu1 %v5675_v34  ;;  %2635 = vmatpush.bf16.msrb.mxu2 %v5663_v19  ;;  %v5651_v2 = vor.u32 %v6396_v7, %v5648_v15 }
 0x3d5   :  { %2608 = vmatpush.bf16.msrb.mxu0 %v5671_v14  ;;  %2648 = vmatpush.bf16.msrb.mxu3 %v5667_v45  ;;  %v6393_v14 = vld [vmem:[#allocation9 + $0x2c] sm:$0xf0]  ;;  %v6388_v45 = vld [vmem:[#allocation9 + $0xc] sm:$0xf] }
 0x3d6   :  { %v5623_v34 = vor.u32 %v6393_v14, %v5622_v39 }
 0x3d8   :  { %2622 = vmatpush.bf16.msrb.mxu1 %v5659_v29  ;;  %2636 = vmatpush.bf16.msrb.mxu2 %v5647_v37 }
 0x3d9   :  { %2609 = vmatpush.bf16.msrb.mxu0 %v5655_v24  ;;  %2649 = vmatpush.bf16.msrb.mxu3 %v5651_v2  ;;  %v5606_v24 = vld [vmem:[#allocation9] sm:$0xf] }
 0x3da   :  { %v5607_v19 = vor.u32 %v6389_v41, %v5606_v24 }
 0x3dc   :  { %2623 = vmatpush.bf16.msrb.mxu1 %v5643_v38 }
 0x3dd   :  { %2610 = vmatpush.bf16.msrb.mxu0 %v5639_v11 }
 0x3e0   :  { %2624 = vmatpush.bf16.msrb.mxu1 %v5627_v28 }
 0x3e1   :  { %2611 = vmatpush.bf16.msrb.mxu0 %v5623_v34 }
 0x3e5   :  { %2612 = vmatpush.bf16.msrb.mxu0 %v5607_v19 }
 0x44f   :  { %v2288_v1 = vpop.f32.mrf.mxu0  ;;  %v2301_v17 = vpop.f32.mrf.mxu1 }
 0x450   :  { %v2289_v13 = vadd.f32 %v2288_v1, %v325_v33  ;;  %v2302_v32 = vadd.f32 %v2301_v17, %v354_v4  ;;  %v5631_v1 = vor.u32 %v6394_v50, %v5630_v6  ;;  %v5635_v17 = vor.u32 %v6392_v16, %v5632_v9 }
 0x452   :  { %v5601_v23 = vmul.f32 -1.442695, %v2289_v13  ;;  %v5602_v44 = vmul.f32 -1.442695, %v2302_v32  ;;  %v5608_v13 = vld [vmem:[#allocation9 + $0x10] sm:$0xf0]  ;;  %2637 = vmatpush.bf16.msrb.mxu2 %v5631_v1  ;;  %2650 = vmatpush.bf16.msrb.mxu3 %v5635_v17 }
 0x453   :  { %v5614_v32 = vld [vmem:[#allocation9 + $0x8] sm:$0xf]  ;;  %v5611_v43 = vor.u32 %v6387_v12, %v5608_v13 }
 0x454   :  { %6620 = vpow2.f32 %v5601_v23  ;;  %v5616_v23 = vld [vmem:[#allocation9 + $0x18] sm:$0xf0]  ;;  %v5615_v52 = vor.u32 %v6390_v48, %v5614_v32 }
 0x455   :  { %6622 = vpow2.f32 %v5602_v44  ;;  %v5619_v10 = vor.u32 %v6388_v45, %v5616_v23  ;;  %2625 = vmatpush.bf16.msrb.mxu1 %v5611_v43 }
 0x456   :  { %v2314_v57 = vpop.f32.mrf.mxu2  ;;  %v2327_v58 = vpop.f32.mrf.mxu3  ;;  %2638 = vmatpush.bf16.msrb.mxu2 %v5615_v52 }
 0x457   :  { %v2328_v55 = vadd.f32 %v2327_v58, %v412_v63  ;;  %v2290_v33 = vpop.f32.mrf.mxu0  ;;  %v2303_v4 = vpop.f32.mrf.mxu1  ;;  %2651 = vmatpush.bf16.msrb.mxu3 %v5619_v10  ;;  %v2315_v37 = vadd.f32 %v2314_v57, %v383_v30  ;;  %v6447_v30 = vld [vmem:[#allocation9 + $0xe4] sm:$0xf] }
 0x459   :  { %v5603_v36 = vmul.f32 -1.442695, %v2328_v55 }
 0x45a   :  { %v6621_v29 = vpop.eup %6620 }
 0x45b   :  { %v6623_v44 = vpop.eup %6622  ;;  %v2334_v25 = vadd.f32 1.0, %v6621_v29  ;;  %6624 = vpow2.f32 %v5603_v36  ;;  %v2399_v29 = vpop.permute.xlu2 %2398 }
 0x45c   :  { %v2353_v51 = vadd.f32 1.0, %v6623_v44  ;;  %vm2400_vm14 = vcmp.eq.s32.totalorder %v2399_v29, 1 }
 0x45d   :  { %6626 = vrcp.f32 %v2334_v25  ;;  %v2346_v34 = vand.u32 2147483648, %v2334_v25  ;;  %v2344_v6 = vand.u32 2147483647, %v2334_v25  ;;  %vm2340_vm7 = vweird.f32 %v2334_v25 }
 0x45e   :  { %6628 = vrcp.f32 %v2353_v51  ;;  %v2316_v11 = vpop.f32.mrf.mxu2  ;;  %v2329_v38 = vpop.f32.mrf.mxu3  ;;  %v2365_v3 = vand.u32 2147483648, %v2353_v51  ;;  %v2363_v33 = vand.u32 2147483647, %v2353_v51  ;;  %vm2359_vm8 = vweird.f32 %v2353_v51 }
 0x45f   :  { %v2347_v57 = vor.u32 1.1754944e-38, %v2346_v34  ;;  %vm2345_vm11 = vcmp.eq.f32.partialorder %v2344_v6, 8.507059e+37  ;;  %v6443_v6 = vld [vmem:[#allocation9 + $0xc4] sm:$0xf] }
 0x460   :  { %v2366_v16 = vor.u32 1.1754944e-38, %v2365_v3  ;;  %vm2364_vm12 = vcmp.eq.f32.partialorder %v2363_v33, 8.507059e+37  ;;  %v5833_v3 = vld [vmem:[#allocation9 + $0xc0] sm:$0xf]  ;;  %v5835_v33 = vld [vmem:[#allocation9 + $0xd0] sm:$0xf0] }
 0x461   :  { %v6625_v21 = vpop.eup %6624 }
 0x462   :  { %v2373_v7 = vadd.f32 1.0, %v6625_v21  ;;  %v6449_v21 = vld [vmem:[#allocation9 + $0xec] sm:$0xf0] }
 0x463   :  { %v6627_v63 = vpop.eup %6626 }
 0x464   :  { %v6629_v15 = vpop.eup %6628  ;;  %v2336_v39 = vmul.f32 %v6627_v63, %v2334_v25  ;;  %6630 = vrcp.f32 %v2373_v7  ;;  %vm2341_vm5 = vweird.f32 %v6627_v63  ;;  %v2385_v48 = vand.u32 2147483648, %v2373_v7 }
 0x465   :  { %v2355_v14 = vmul.f32 %v6629_v15, %v2353_v51  ;;  %6632 = vtanh.f32 %v2315_v37  ;;  %vm2360_vm6 = vweird.f32 %v6629_v15  ;;  %vm2342_vm9 = vmor %vm2340_vm7, %vm2341_vm5  ;;  %vm2379_vm0 = vweird.f32 %v2373_v7  ;;  %v5857_v37 = vld [vmem:[#allocation9 + $0xe8] sm:$0xf] }
 0x466   :  { %v2337_v58 = vsub.f32 1.0, %v2336_v39  ;;  %vm2361_vm10 = vmor %vm2359_vm8, %vm2360_vm6  ;;  %v2383_v23 = vand.u32 2147483647, %v2373_v7  ;;  %v2386_v25 = vor.u32 1.1754944e-38, %v2385_v48 }
 0x467   :  { %v2356_v2 = vsub.f32 1.0, %v2355_v14 }
 0x468   :  { %v2338_v31 = vmul.f32 %v6627_v63, %v2337_v58  ;;  %vm2384_vm2 = vcmp.eq.f32.partialorder %v2383_v23, 8.507059e+37  ;;  %v6448_v58 = vld [vmem:[#allocation9 + $0xec] sm:$0xf]  ;;  %v5801_v23 = vld [vmem:[#allocation9 + $0x80] sm:$0xf] }
 0x469   :  { %v2357_v55 = vmul.f32 %v6629_v15, %v2356_v2  ;;  %v5859_v2 = vld [vmem:[#allocation9 + $0xf8] sm:$0xf0] }
 0x46a   :  { %v6631_v4 = vpop.eup %6630  ;;  %v2339_v46 = vadd.f32 %v6627_v63, %v2338_v31  ;;  %v5862_v34 = vor.u32 %v6448_v58, %v5859_v2  ;;  %v6445_v31 = vld [vmem:[#allocation9 + $0xcc] sm:$0xf0]  ;;  %v5787_v58 = vld [vmem:[#allocation9 + $0x70] sm:$0xf0]  ;;  %v5793_v2 = vld [vmem:[#allocation9 + $0x68] sm:$0xf] }
 0x46b   :  { %v2358_v28 = vadd.f32 %v6629_v15, %v2357_v55  ;;  %v2375_v50 = vmul.f32 %v6631_v4, %v2373_v7  ;;  %v6633_v1 = vpop.eup %6632  ;;  %vm2380_vm15 = vweird.f32 %v6631_v4  ;;  %v5834_v55 = vor.u32 %v6445_v31, %v5833_v3 }
 0x46c   :  { %v2343_v9 = vsel %vm2342_vm9, %v6627_v63, %v2339_v46  ;;  %vm2381_vm1 = vmor %vm2379_vm0, %vm2380_vm15  ;;  %v5851_v63 = vld [vmem:[#allocation9 + $0xf0] sm:$0xf0]  ;;  %2970 = vmatpush.bf16.msra.mxu3 %v5862_v34  ;;  %v6446_v46 = vld [vmem:[#allocation9 + $0xd4] sm:$0xf0] }
 0x46d   :  { %v2348_v17 = vsel %vm2345_vm11, %v2347_v57, %v2343_v9  ;;  %v2362_v24 = vsel %vm2361_vm10, %v6629_v15, %v2358_v28  ;;  %v2376_v41 = vsub.f32 1.0, %v2375_v50  ;;  %v6450_v15 = vld [vmem:[#allocation9 + $0xf4] sm:$0xf0]  ;;  %v5854_v39 = vor.u32 %v6447_v30, %v5851_v63  ;;  %v6444_v50 = vld [vmem:[#allocation9 + $0xcc] sm:$0xf] }
 0x46e   :  { %v2367_v12 = vsel %vm2364_vm12, %v2366_v16, %v2362_v24  ;;  %v2390_v36 = vmul.f32 %v6633_v1, %v2348_v17  ;;  %v5858_v14 = vor.u32 %v6450_v15, %v5857_v37  ;;  %v5838_v57 = vor.u32 %v6443_v6, %v5835_v33  ;;  %v5843_v16 = vld [vmem:[#allocation9 + $0xd8] sm:$0xf0]  ;;  %v5817_v1 = vld [vmem:[#allocation9 + $0xa0] sm:$0xf]  ;;  %v6441_v17 = vld [vmem:[#allocation9 + $0xac] sm:$0xf0] }
 0x46f   :  { %v2389_v13 = vmul.f32 %v2367_v12, %v7171_v59  ;;  %v2377_v32 = vmul.f32 %v6631_v4, %v2376_v41  ;;  %2944 = vmatpush.bf16.msra.mxu1 %v5854_v39  ;;  %v5846_v9 = vor.u32 %v6444_v50, %v5843_v16  ;;  %v6439_v24 = vld [vmem:[#allocation9 + $0xa4] sm:$0xf]  ;;  %v5818_v41 = vor.u32 %v6441_v17, %v5817_v1  ;;  %v5819_v12 = vld [vmem:[#allocation9 + $0xb0] sm:$0xf0]  ;;  %v6436_v30 = vld [vmem:[#allocation9 + $0x8c] sm:$0xf] }
 0x470   :  { %2957 = vmatpush.bf16.msra.mxu2 %v5858_v14  ;;  %v5785_v37 = vld [vmem:[#allocation9 + $0x60] sm:$0xf]  ;;  %v6433_v15 = vld [vmem:[#allocation9 + $0x6c] sm:$0xf0]  ;;  %v6431_v39 = vld [vmem:[#allocation9 + $0x64] sm:$0xf] }
 0x471   :  { %v2391_v19 = vadd.f32 %v2390_v36, %v2389_v13  ;;  %v2378_v43 = vadd.f32 %v6631_v4, %v2377_v32  ;;  %2971 = vmatpush.bf16.msra.mxu3 %v5846_v9  ;;  %v5825_v36 = vld [vmem:[#allocation9 + $0xa8] sm:$0xf]  ;;  %v6442_v13 = vld [vmem:[#allocation9 + $0xb4] sm:$0xf0]  ;;  %v5822_v32 = vor.u32 %v6439_v24, %v5819_v12  ;;  %v5786_v14 = vor.u32 %v6433_v15, %v5785_v37  ;;  %v6432_v6 = vld [vmem:[#allocation9 + $0x6c] sm:$0xf] }
 0x472   :  { %v5826_v29 = vor.u32 %v6442_v13, %v5825_v36  ;;  %v6434_v34 = vld [vmem:[#allocation9 + $0x74] sm:$0xf0]  ;;  %v5790_v3 = vor.u32 %v6431_v39, %v5787_v58  ;;  %v5771_v50 = vld [vmem:[#allocation9 + $0x50] sm:$0xf0]  ;;  %v5777_v16 = vld [vmem:[#allocation9 + $0x48] sm:$0xf] }
 0x473   :  { %6634 = vtanh.f32 %v2391_v19  ;;  %v7189_v45 = vsel %vm2400_vm14, %v2391_v19, %v7171_v59  ;;  %v2382_v44 = vsel %vm2381_vm1, %v6631_v4, %v2378_v43  ;;  %v5849_v59 = vld [vmem:[#allocation9 + $0xe0] sm:$0xf]  ;;  %v5841_v4 = vld [vmem:[#allocation9 + $0xc8] sm:$0xf]  ;;  %2945 = vmatpush.bf16.msra.mxu1 %v5838_v57  ;;  %v6440_v19 = vld [vmem:[#allocation9 + $0xac] sm:$0xf]  ;;  %v5794_v31 = vor.u32 %v6434_v34, %v5793_v2 }
 0x474   :  { %v2387_v51 = vsel %vm2384_vm2, %v2386_v25, %v2382_v44  ;;  %v5850_v7 = vor.u32 %v6449_v21, %v5849_v59  ;;  %v5842_v28 = vor.u32 %v6446_v46, %v5841_v4  ;;  %v5827_v43 = vld [vmem:[#allocation9 + $0xb8] sm:$0xf0]  ;;  %v6437_v44 = vld [vmem:[#allocation9 + $0x8c] sm:$0xf0]  ;;  %v6435_v25 = vld [vmem:[#allocation9 + $0x84] sm:$0xf] }
 0x475   :  { %v5830_v48 = vor.u32 %v6440_v19, %v5827_v43  ;;  %v5769_v4 = vld [vmem:[#allocation9 + $0x40] sm:$0xf]  ;;  %v6429_v46 = vld [vmem:[#allocation9 + $0x4c] sm:$0xf0]  ;;  %v6427_v57 = vld [vmem:[#allocation9 + $0x44] sm:$0xf] }
 0x476   :  { %2931 = vmatpush.bf16.msra.mxu0 %v5850_v7  ;;  %2958 = vmatpush.bf16.msra.mxu2 %v5842_v28  ;;  %v5811_v7 = vld [vmem:[#allocation9 + $0x98] sm:$0xf0]  ;;  %v5770_v28 = vor.u32 %v6429_v46, %v5769_v4  ;;  %v6430_v9 = vld [vmem:[#allocation9 + $0x54] sm:$0xf0]  ;;  %v5774_v1 = vor.u32 %v6427_v57, %v5771_v50  ;;  %v6428_v24 = vld [vmem:[#allocation9 + $0x4c] sm:$0xf] }
 0x477   :  { %2946 = vmatpush.bf16.msra.mxu1 %v5822_v32  ;;  %2972 = vmatpush.bf16.msra.mxu3 %v5830_v48  ;;  %v5814_v63 = vor.u32 %v6436_v30, %v5811_v7  ;;  %v5778_v17 = vor.u32 %v6430_v9, %v5777_v16  ;;  %v5753_v36 = vld [vmem:[#allocation9 + $0x20] sm:$0xf]  ;;  %v6425_v13 = vld [vmem:[#allocation9 + $0x2c] sm:$0xf0]  ;;  %v6423_v32 = vld [vmem:[#allocation9 + $0x24] sm:$0xf] }
 0x478   :  { %v5755_v19 = vld [vmem:[#allocation9 + $0x30] sm:$0xf0]  ;;  %v5761_v43 = vld [vmem:[#allocation9 + $0x28] sm:$0xf]  ;;  %v6426_v48 = vld [vmem:[#allocation9 + $0x34] sm:$0xf0] }
 0x479   :  { %v6635_v52 = vpop.eup %6634  ;;  %v5739_v30 = vld [vmem:[#allocation9 + $0x10] sm:$0xf0]  ;;  %v5745_v7 = vld [vmem:[#allocation9 + $0x8] sm:$0xf]  ;;  %v6420_v58 = vld [vmem:[#allocation9 + $0xc] sm:$0xf] }
 0x47a   :  { %v2393_v10 = vmul.f32 %v6635_v52, %v2387_v51  ;;  %2932 = vmatpush.bf16.msra.mxu0 %v5834_v55  ;;  %2959 = vmatpush.bf16.msra.mxu2 %v5826_v29  ;;  %v5802_v52 = vor.u32 %v6437_v44, %v5801_v23  ;;  %v5803_v51 = vld [vmem:[#allocation9 + $0x90] sm:$0xf0]  ;;  %v5795_v55 = vld [vmem:[#allocation9 + $0x78] sm:$0xf0]  ;;  %v5754_v29 = vor.u32 %v6425_v13, %v5753_v36  ;;  %v5981_v34 = vld [vmem:[#allocation7 + $0x1e0] sm:$0xf] }
 0x47b   :  { %v5806_v59 = vor.u32 %v6435_v25, %v5803_v51  ;;  %2973 = vmatpush.bf16.msra.mxu3 %v5814_v63  ;;  %v5798_v33 = vor.u32 %v6432_v6, %v5795_v55  ;;  %v5758_v23 = vor.u32 %v6423_v32, %v5755_v19  ;;  %v5762_v44 = vor.u32 %v6426_v48, %v5761_v43  ;;  %v6424_v25 = vld [vmem:[#allocation9 + $0x2c] sm:$0xf]  ;;  %v6422_v63 = vld [vmem:[#allocation9 + $0x14] sm:$0xf0]  ;;  %v5747_v2 = vld [vmem:[#allocation9 + $0x18] sm:$0xf0] }
 0x47c   :  { %v7192_v11 = vsel %vm2400_vm14, %v2393_v10, %v7175_v49  ;;  %v5809_v10 = vld [vmem:[#allocation9 + $0x88] sm:$0xf]  ;;  %v5750_v6 = vor.u32 %v6420_v58, %v5747_v2  ;;  %v6481_v55 = vld [vmem:[#allocation7 + $0x1ec] sm:$0xf0]  ;;  %v5983_v4 = vld [vmem:[#allocation7 + $0x1f0] sm:$0xf0] }
 0x47d   :  { %v2405_v38 = vpack.c.bf16 %v7192_v11, %v7192_v11  ;;  %2947 = vmatpush.bf16.msra.mxu1 %v5806_v59  ;;  %v6419_v59 = vld [vmem:[#allocation9 + $0x4] sm:$0xf]  ;;  %v5982_v46 = vor.u32 %v6481_v55, %v5981_v34  ;;  %v6482_v50 = vld [vmem:[#allocation7 + $0x1f4] sm:$0xf0]  ;;  %v6480_v16 = vld [vmem:[#allocation7 + $0x1ec] sm:$0xf] }
 0x47e   :  { %2933 = vmatpush.bf16.msra.mxu0 %v5818_v41  ;;  %v5779_v41 = vld [vmem:[#allocation9 + $0x58] sm:$0xf0]  ;;  %v5742_v39 = vor.u32 %v6419_v59, %v5739_v30  ;;  %v5967_v13 = vld [vmem:[#allocation7 + $0x1d0] sm:$0xf0]  ;;  %v5973_v32 = vld [vmem:[#allocation7 + $0x1c8] sm:$0xf] }
 0x47f   :  { %2613 = vmatmul.bf16.vlgmr.msrb.gmra.mxu0 %v2405_v38  ;;  %2626 = vmatmul.bf16.vlgmr.msrb.gmra.mxu1 %v2405_v38  ;;  %v5782_v12 = vor.u32 %v6428_v24, %v5779_v41  ;;  %v5991_v24 = vld [vmem:[#allocation7 + $0x1f8] sm:$0xf0]  ;;  %v6477_v41 = vld [vmem:[#allocation7 + $0x1cc] sm:$0xf0]  ;;  %v6476_v48 = vld [vmem:[#allocation7 + $0x1cc] sm:$0xf] }
 0x480   :  { %2639 = vmatmul.bf16.vlgmr.msrb.gmra.mxu2 %v2405_v38  ;;  %2652 = vmatmul.bf16.vlgmr.msrb.gmra.mxu3 %v2405_v38  ;;  %v6438_v38 = vld [vmem:[#allocation9 + $0x94] sm:$0xf0]  ;;  %v5951_v59 = vld [vmem:[#allocation7 + $0x1b0] sm:$0xf0]  ;;  %v5959_v2 = vld [vmem:[#allocation7 + $0x1b8] sm:$0xf0] }
 0x481   :  { %v5810_v21 = vor.u32 %v6438_v38, %v5809_v10  ;;  %2948 = vmatpush.bf16.msra.mxu1 %v5790_v3  ;;  %2974 = vmatpush.bf16.msra.mxu3 %v5798_v33  ;;  %v5737_v10 = vld [vmem:[#allocation9] sm:$0xf]  ;;  %v6421_v38 = vld [vmem:[#allocation9 + $0xc] sm:$0xf0]  ;;  %v6479_v33 = vld [vmem:[#allocation7 + $0x1e4] sm:$0xf] }
 0x482   :  { %2934 = vmatpush.bf16.msra.mxu0 %v5802_v52  ;;  %v5763_v52 = vld [vmem:[#allocation9 + $0x38] sm:$0xf0]  ;;  %v5986_v57 = vor.u32 %v6479_v33, %v5983_v4  ;;  %v5933_v34 = vld [vmem:[#allocation7 + $0x180] sm:$0xf]  ;;  %v6467_v55 = vld [vmem:[#allocation7 + $0x184] sm:$0xf] }
 0x483   :  { %2960 = vmatpush.bf16.msra.mxu2 %v5810_v21  ;;  %v5766_v51 = vor.u32 %v6424_v25, %v5763_v52  ;;  %v5738_v21 = vor.u32 %v6421_v38, %v5737_v10  ;;  %v6473_v10 = vld [vmem:[#allocation7 + $0x1ac] sm:$0xf0]  ;;  %v6471_v38 = vld [vmem:[#allocation7 + $0x1a4] sm:$0xf]  ;;  %v5935_v33 = vld [vmem:[#allocation7 + $0x190] sm:$0xf0] }
 0x484   :  { %v5941_v4 = vld [vmem:[#allocation7 + $0x188] sm:$0xf]  ;;  %vm6907_vm1 = vmmov 1  }
 0x485   :  { %2949 = vmatpush.bf16.msra.mxu1 %v5774_v1  ;;  %2975 = vmatpush.bf16.msra.mxu3 %v5782_v12  ;;  %v6475_v12 = vld [vmem:[#allocation7 + $0x1c4] sm:$0xf]  ;;  %vm6515_vm2 = vmpackc.low %vm6907_vm1, %vm771_vm13 }
 0x486   :  { %2935 = vmatpush.bf16.msra.mxu0 %v5786_v14  ;;  %v5746_v14 = vor.u32 %v6422_v63, %v5745_v7  ;;  %v5970_v19 = vor.u32 %v6475_v12, %v5967_v13  ;;  %v5917_v12 = vld [vmem:[#allocation7 + $0x160] sm:$0xf] }
 0x487   :  { %2961 = vmatpush.bf16.msra.mxu2 %v5794_v31 }
 0x489   :  { %2950 = vmatpush.bf16.msra.mxu1 %v5758_v23  ;;  %2976 = vmatpush.bf16.msra.mxu3 %v5766_v51  ;;  %v5975_v23 = vld [vmem:[#allocation7 + $0x1d8] sm:$0xf0] }
 0x48a   :  { %2936 = vmatpush.bf16.msra.mxu0 %v5770_v28  ;;  %v5989_v28 = vld [vmem:[#allocation7 + $0x1e8] sm:$0xf]  ;;  %v5978_v51 = vor.u32 %v6476_v48, %v5975_v23  ;;  %v5919_v48 = vld [vmem:[#allocation7 + $0x170] sm:$0xf0] }
 0x48b   :  { %2962 = vmatpush.bf16.msra.mxu2 %v5778_v17  ;;  %v5990_v17 = vor.u32 %v6482_v50, %v5989_v28  ;;  %v5925_v23 = vld [vmem:[#allocation7 + $0x168] sm:$0xf] }
 0x48d   :  { %2951 = vmatpush.bf16.msra.mxu1 %v5742_v39  ;;  %2977 = vmatpush.bf16.msra.mxu3 %v5750_v6  ;;  %v6472_v39 = vld [vmem:[#allocation7 + $0x1ac] sm:$0xf] }
 0x48e   :  { %2937 = vmatpush.bf16.msra.mxu0 %v5754_v29  ;;  %v6478_v29 = vld [vmem:[#allocation7 + $0x1d4] sm:$0xf0]  ;;  %v5962_v6 = vor.u32 %v6472_v39, %v5959_v2  ;;  %v5903_v39 = vld [vmem:[#allocation7 + $0x150] sm:$0xf0] }
 0x48f   :  { %2963 = vmatpush.bf16.msra.mxu2 %v5762_v44  ;;  %v5974_v43 = vor.u32 %v6478_v29, %v5973_v32  ;;  %v5949_v44 = vld [vmem:[#allocation7 + $0x1a0] sm:$0xf]  ;;  %v6465_v32 = vld [vmem:[#allocation7 + $0x16c] sm:$0xf0]  ;;  %v6463_v29 = vld [vmem:[#allocation7 + $0x164] sm:$0xf] }
 0x490   :  { %v5950_v63 = vor.u32 %v6473_v10, %v5949_v44  ;;  %v6464_v10 = vld [vmem:[#allocation7 + $0x16c] sm:$0xf] }
 0x491   :  { %3301 = vmatpush.bf16.msrb.mxu1 %v5986_v57  ;;  %v6468_v57 = vld [vmem:[#allocation7 + $0x18c] sm:$0xf] }
 0x492   :  { %2938 = vmatpush.bf16.msra.mxu0 %v5738_v21 }
 0x493   :  { %2964 = vmatpush.bf16.msra.mxu2 %v5746_v14  ;;  %v5954_v14 = vor.u32 %v6471_v38, %v5951_v59  ;;  %v5927_v38 = vld [vmem:[#allocation7 + $0x178] sm:$0xf0] }
 0x495   :  { %3302 = vmatpush.bf16.msrb.mxu1 %v5970_v19 }
 0x496   :  { %3272 = vmatpush.bf16.msrb.mxu0 %v5982_v46  ;;  %v6470_v46 = vld [vmem:[#allocation7 + $0x194] sm:$0xf0] }
 0x497   :  { %3330 = vmatpush.bf16.msrb.mxu2 %v5990_v17 }
 0x499   :  { %3303 = vmatpush.bf16.msrb.mxu1 %v5954_v14  ;;  %v5909_v14 = vld [vmem:[#allocation7 + $0x148] sm:$0xf] }
 0x49b   :  { %3331 = vmatpush.bf16.msrb.mxu2 %v5974_v43  ;;  %v5918_v43 = vor.u32 %v6465_v32, %v5917_v12  ;;  %v6458_v32 = vld [vmem:[#allocation7 + $0x134] sm:$0xf0] }
 0x4fc   :  { %v2614_v37 = vpop.f32.mrf.mxu0  ;;  %v2627_v15 = vpop.f32.mrf.mxu1 }
 0x4fd   :  { %v2615_v3 = vadd.f32 %v2614_v37, %v7038_v56  ;;  %v2628_v31 = vadd.f32 %v2627_v15, %v7041_v62  ;;  %v5994_v56 = vor.u32 %v6480_v16, %v5991_v24  ;;  %v5965_v62 = vld [vmem:[#allocation7 + $0x1c0] sm:$0xf]  ;;  %v5957_v37 = vld [vmem:[#allocation7 + $0x1a8] sm:$0xf]  ;;  %v6474_v15 = vld [vmem:[#allocation7 + $0x1b4] sm:$0xf0]  ;;  %v5942_v24 = vor.u32 %v6470_v46, %v5941_v4 }
 0x4fe   :  { %v5966_v36 = vor.u32 %v6477_v41, %v5965_v62  ;;  %v5958_v58 = vor.u32 %v6474_v15, %v5957_v37  ;;  %v6459_v15 = vld [vmem:[#allocation7 + $0x144] sm:$0xf] }
 0x4ff   :  { %v5732_v9 = vmul.f32 -1.442695, %v2615_v3  ;;  %v5733_v1 = vmul.f32 -1.442695, %v2628_v31  ;;  %3359 = vmatpush.bf16.msrb.mxu3 %v5994_v56  ;;  %v6469_v3 = vld [vmem:[#allocation7 + $0x18c] sm:$0xf0]  ;;  %v5906_v46 = vor.u32 %v6459_v15, %v5903_v39 }
 0x500   :  { %3273 = vmatpush.bf16.msrb.mxu0 %v5966_v36  ;;  %v5934_v16 = vor.u32 %v6469_v3, %v5933_v34  ;;  %3332 = vmatpush.bf16.msrb.mxu2 %v5958_v58  ;;  %v6462_v34 = vld [vmem:[#allocation7 + $0x154] sm:$0xf0]  ;;  %v6460_v3 = vld [vmem:[#allocation7 + $0x14c] sm:$0xf] }
 0x501   :  { %6636 = vpow2.f32 %v5732_v9  ;;  %v5938_v9 = vor.u32 %v6467_v55, %v5935_v33  ;;  %v6454_v15 = vld [vmem:[#allocation7 + $0x114] sm:$0xf0]  ;;  %v6452_v39 = vld [vmem:[#allocation7 + $0x10c] sm:$0xf] }
 0x502   :  { %6638 = vpow2.f32 %v5733_v1  ;;  %v5943_v1 = vld [vmem:[#allocation7 + $0x198] sm:$0xf0] }
 0x503   :  { %v2640_v25 = vpop.f32.mrf.mxu2  ;;  %v2653_v52 = vpop.f32.mrf.mxu3  ;;  %3360 = vmatpush.bf16.msrb.mxu3 %v5978_v51  ;;  %v5946_v56 = vor.u32 %v6468_v57, %v5943_v1  ;;  %3304 = vmatpush.bf16.msrb.mxu1 %v5938_v9  ;;  %v6466_v51 = vld [vmem:[#allocation7 + $0x174] sm:$0xf0]  ;;  %v5910_v57 = vor.u32 %v6462_v34, %v5909_v14  ;;  %v6455_v9 = vld [vmem:[#allocation7 + $0x124] sm:$0xf]  ;;  %v5879_v14 = vld [vmem:[#allocation7 + $0x118] sm:$0xf0] }
 0x504   :  { %v2654_v21 = vadd.f32 %v2653_v52, %v7049_v53  ;;  %v2616_v30 = vpop.f32.mrf.mxu0  ;;  %v2629_v7 = vpop.f32.mrf.mxu1  ;;  %3274 = vmatpush.bf16.msrb.mxu0 %v5950_v63  ;;  %v2641_v36 = vadd.f32 %v2640_v25, %v7044_v40  ;;  %3333 = vmatpush.bf16.msrb.mxu2 %v5942_v24  ;;  %v5922_v52 = vor.u32 %v6463_v29, %v5919_v48  ;;  %v6456_v29 = vld [vmem:[#allocation7 + $0x12c] sm:$0xf] }
 0x505   :  { %v5926_v59 = vor.u32 %v6466_v51, %v5925_v23  ;;  %v5901_v30 = vld [vmem:[#allocation7 + $0x140] sm:$0xf]  ;;  %v6461_v7 = vld [vmem:[#allocation7 + $0x14c] sm:$0xf0] }
 0x506   :  { %v5734_v31 = vmul.f32 -1.442695, %v2654_v21  ;;  %v5930_v21 = vor.u32 %v6464_v10, %v5927_v38  ;;  %v5902_v37 = vor.u32 %v6461_v7, %v5901_v30 }
 0x507   :  { %v6637_v53 = vpop.eup %6636  ;;  %3361 = vmatpush.bf16.msrb.mxu3 %v5962_v6  ;;  %3305 = vmatpush.bf16.msrb.mxu1 %v5922_v52  ;;  %v6453_v52 = vld [vmem:[#allocation7 + $0x10c] sm:$0xf0] }
 0x508   :  { %v6639_v28 = vpop.eup %6638  ;;  %v7199_v50 = vadd.f32 1.0, %v6637_v53  ;;  %6640 = vpow2.f32 %v5734_v31  ;;  %3275 = vmatpush.bf16.msrb.mxu0 %v5934_v16  ;;  %3334 = vmatpush.bf16.msrb.mxu2 %v5926_v59  ;;  %v5911_v31 = vld [vmem:[#allocation7 + $0x158] sm:$0xf0]  ;;  %v5885_v53 = vld [vmem:[#allocation7 + $0x120] sm:$0xf] }
 0x509   :  { %v7201_v17 = vadd.f32 1.0, %v6639_v28  ;;  %v5914_v28 = vor.u32 %v6460_v3, %v5911_v31  ;;  %v6457_v16 = vld [vmem:[#allocation7 + $0x12c] sm:$0xf0]  ;;  %v5871_v59 = vld [vmem:[#allocation7 + $0x110] sm:$0xf0] }
 0x50a   :  { %6642 = vrcp.f32 %v7199_v50  ;;  %v2670_v13 = vand.u32 2147483647, %v7199_v50  ;;  %v2672_v19 = vand.u32 2147483648, %v7199_v50  ;;  %vm2666_vm4 = vweird.f32 %v7199_v50 }
 0x50b   :  { %6644 = vrcp.f32 %v7201_v17  ;;  %v2642_v62 = vpop.f32.mrf.mxu2  ;;  %v2655_v41 = vpop.f32.mrf.mxu3  ;;  %3362 = vmatpush.bf16.msrb.mxu3 %v5946_v56  ;;  %v2691_v40 = vand.u32 2147483648, %v7201_v17  ;;  %v2689_v33 = vand.u32 2147483647, %v7201_v17  ;;  %3306 = vmatpush.bf16.msrb.mxu1 %v5906_v46  ;;  %vm2685_vm8 = vweird.f32 %v7201_v17 }
 0x50c   :  { %6646 = vtanh.f32 %v2641_v36  ;;  %3276 = vmatpush.bf16.msrb.mxu0 %v5918_v43  ;;  %vm7222_vm5 = vcmp.eq.f32.partialorder %v2670_v13, 8.507059e+37  ;;  %v2673_v56 = vor.u32 1.1754944e-38, %v2672_v19  ;;  %v5886_v62 = vor.u32 %v6457_v16, %v5885_v53  ;;  %v5887_v41 = vld [vmem:[#allocation7 + $0x130] sm:$0xf0]  ;;  %3335 = vmatpush.bf16.msrb.mxu2 %v5910_v57  ;;  %v5893_v13 = vld [vmem:[#allocation7 + $0x128] sm:$0xf] }
 0x50d   :  { %v2692_v24 = vor.u32 1.1754944e-38, %v2691_v40  ;;  %v5890_v36 = vor.u32 %v6455_v9, %v5887_v41  ;;  %v5894_v23 = vor.u32 %v6458_v32, %v5893_v13  ;;  %v5869_v19 = vld [vmem:[#allocation7 + $0x100] sm:$0xf]  ;;  %v6451_v40 = vld [vmem:[#allocation7 + $0x104] sm:$0xf]  ;;  %vm2690_vm10 = vcmp.eq.f32.partialorder %v2689_v33, 8.507059e+37 }
 0x50e   :  { %v6641_v44 = vpop.eup %6640  ;;  %v5882_v53 = vor.u32 %v6452_v39, %v5879_v14  ;;  %v6511_v13 = vld [vmem:[#allocation9 + $0x1e4] sm:$0xf]  ;;  %v7290_v39 = vor.u32 %v6508_v47, %v6103_v54  ;;  %v6505_v14 = vld [vmem:[#allocation9 + $0x1ac] sm:$0xf0] }
 0x50f   :  { %v7209_v25 = vadd.f32 1.0, %v6641_v44  ;;  %3363 = vmatpush.bf16.msrb.mxu3 %v5930_v21  ;;  %v5895_v44 = vld [vmem:[#allocation7 + $0x138] sm:$0xf0]  ;;  %v5877_v21 = vld [vmem:[#allocation7 + $0x108] sm:$0xf]  ;;  %3307 = vmatpush.bf16.msrb.mxu1 %v5890_v36 }
 0x510   :  { %v7211_v63 = vpop.eup %6642  ;;  %3277 = vmatpush.bf16.msrb.mxu0 %v5902_v37  ;;  %v5898_v38 = vor.u32 %v6456_v29, %v5895_v44  ;;  %v5870_v37 = vor.u32 %v6453_v52, %v5869_v19  ;;  %3336 = vmatpush.bf16.msrb.mxu2 %v5894_v23  ;;  %v5878_v34 = vor.u32 %v6454_v15, %v5877_v21  ;;  %v6513_v36 = vld [vmem:[#allocation9 + $0x1ec] sm:$0xf0]  ;;  %v6111_v29 = vld [vmem:[#allocation9 + $0x1f0] sm:$0xf0]  ;;  %v6117_v44 = vld [vmem:[#allocation9 + $0x1e8] sm:$0xf] }
 0x511   :  { %v7213_v58 = vpop.eup %6644  ;;  %v2662_v2 = vmul.f32 %v7211_v63, %v7199_v50  ;;  %vm2667_vm3 = vweird.f32 %v7211_v63  ;;  %6648 = vrcp.f32 %v7209_v25  ;;  %vm2705_vm14 = vweird.f32 %v7209_v25  ;;  %v6514_v19 = vld [vmem:[#allocation9 + $0x1f4] sm:$0xf0]  ;;  %v6509_v21 = vld [vmem:[#allocation9 + $0x1cc] sm:$0xf0]  ;;  %v6491_v54 = vld [vmem:[#allocation9 + $0x144] sm:$0xf] }
 0x512   :  { %v2681_v6 = vmul.f32 %v7213_v58, %v7201_v17  ;;  %vm7229_vm6 = vmor %vm2666_vm4, %vm2667_vm3  ;;  %v6647_v43 = vpop.eup %6646  ;;  %vm2686_vm7 = vweird.f32 %v7213_v58  ;;  %v5874_v17 = vor.u32 %v6451_v40, %v5871_v59  ;;  %v2709_v9 = vand.u32 2147483647, %v7209_v25  ;;  %v6093_v59 = vld [vmem:[#allocation9 + $0x1c0] sm:$0xf]  ;;  %v6493_v47 = vld [vmem:[#allocation9 + $0x14c] sm:$0xf0] }
 0x513   :  { %v2663_v4 = vsub.f32 1.0, %v2662_v2  ;;  %3364 = vmatpush.bf16.msrb.mxu3 %v5914_v28  ;;  %vm2687_vm9 = vmor %vm2685_vm8, %vm2686_vm7  ;;  %v7284_v18 = vor.u32 %v6509_v21, %v6093_v59  ;;  %v417_v15 = vadd.f32 %v7059_v42, %v7001_v27  ;;  %v6101_v27 = vld [vmem:[#allocation9 + $0x1c8] sm:$0xf]  ;;  %v6502_v59 = vld [vmem:[#allocation9 + $0x194] sm:$0xf0] }
 0x514   :  { %v2682_v1 = vsub.f32 1.0, %v2681_v6  ;;  %3278 = vmatpush.bf16.msrb.mxu0 %v5886_v62  ;;  %3308 = vmatpush.bf16.msrb.mxu1 %v5874_v17  ;;  %vm2710_vm0 = vcmp.eq.f32.partialorder %v2709_v9, 8.507059e+37  ;;  %v6079_v17 = vld [vmem:[#allocation9 + $0x1b0] sm:$0xf0]  ;;  %v6499_v9 = vld [vmem:[#allocation9 + $0x184] sm:$0xf] }
 0x515   :  { %v2664_v12 = vmul.f32 %v7211_v63, %v2663_v4  ;;  %3337 = vmatpush.bf16.msrb.mxu2 %v5878_v34 }
 0x516   :  { %v2683_v48 = vmul.f32 %v7213_v58, %v2682_v1 }
 0x517   :  { %v6649_v51 = vpop.eup %6648  ;;  %v2665_v10 = vadd.f32 %v7211_v63, %v2664_v12  ;;  %3365 = vmatpush.bf16.msrb.mxu3 %v5898_v38 }
 0x518   :  { %v2684_v30 = vadd.f32 %v7213_v58, %v2683_v48  ;;  %v2701_v7 = vmul.f32 %v6649_v51, %v7209_v25  ;;  %3279 = vmatpush.bf16.msrb.mxu0 %v5870_v37  ;;  %vm2706_vm12 = vweird.f32 %v6649_v51  ;;  %v6119_v48 = vld [vmem:[#allocation9 + $0x1f8] sm:$0xf0]  ;;  %v6077_v37 = vld [vmem:[#allocation9 + $0x1a0] sm:$0xf] }
 0x519   :  { %v2669_v2 = vsel %vm7229_vm6, %v7211_v63, %v2665_v10  ;;  %v2725_v63 = vpop.permute.xlu0 %2724  ;;  %vm2707_vm15 = vmor %vm2705_vm14, %vm2706_vm12 }
 0x51a   :  { %v2674_v3 = vsel %vm7222_vm5, %v2673_v56, %v2669_v2  ;;  %v2688_v31 = vsel %vm2687_vm9, %v7213_v58, %v2684_v30  ;;  %v2702_v6 = vsub.f32 1.0, %v2701_v7  ;;  %vm2726_vm11 = vcmp.eq.s32.totalorder %v2725_v63, 1  ;;  %v6507_v30 = vld [vmem:[#allocation9 + $0x1c4] sm:$0xf]  ;;  %v6095_v7 = vld [vmem:[#allocation9 + $0x1d0] sm:$0xf0] }
 0x51b   :  { %v2693_v4 = vsel %vm2690_vm10, %v2692_v24, %v2688_v31  ;;  %v2716_v46 = vmul.f32 %v6647_v43, %v2674_v3  ;;  %3366 = vmatpush.bf16.msrb.mxu3 %v5882_v53  ;;  %v2711_v58 = vand.u32 2147483648, %v7209_v25  ;;  %v6109_v25 = vld [vmem:[#allocation9 + $0x1e0] sm:$0xf]  ;;  %v7266_v43 = vor.u32 %v6511_v13, %v6111_v29  ;;  %v6503_v2 = vld [vmem:[#allocation9 + $0x1a4] sm:$0xf] }
 0x51c   :  { %v2715_v57 = vmul.f32 %v2693_v4, %v7189_v45  ;;  %v2703_v28 = vmul.f32 %v6649_v51, %v2702_v6  ;;  %v7264_v32 = vor.u32 %v6513_v36, %v6109_v25  ;;  %v7286_v20 = vor.u32 %v6507_v30, %v6095_v7  ;;  %v6504_v53 = vld [vmem:[#allocation9 + $0x1ac] sm:$0xf]  ;;  %v6087_v4 = vld [vmem:[#allocation9 + $0x1b8] sm:$0xf0]  ;;  %v6510_v63 = vld [vmem:[#allocation9 + $0x1d4] sm:$0xf0] }
 0x51d   :  { %v2712_v24 = vor.u32 1.1754944e-38, %v2711_v58  ;;  %v7296_v31 = vor.u32 %v6505_v14, %v6077_v37  ;;  %v7298_v6 = vor.u32 %v6503_v2, %v6079_v17  ;;  %v7303_v58 = vor.u32 %v6510_v63, %v6101_v27  ;;  %v6506_v36 = vld [vmem:[#allocation9 + $0x1b4] sm:$0xf0]  ;;  %v6045_v13 = vld [vmem:[#allocation9 + $0x160] sm:$0xf] }
 0x51e   :  { %v2717_v33 = vadd.f32 %v2716_v46, %v2715_v57  ;;  %v2704_v16 = vadd.f32 %v6649_v51, %v2703_v28  ;;  %v7301_v28 = vor.u32 %v6504_v53, %v6087_v4  ;;  %v6497_v29 = vld [vmem:[#allocation9 + $0x16c] sm:$0xf0]  ;;  %v6029_v7 = vld [vmem:[#allocation9 + $0x140] sm:$0xf]  ;;  %v6031_v37 = vld [vmem:[#allocation9 + $0x150] sm:$0xf0]  ;;  %v388_v14 = vadd.f32 %v7055_v22, %v6999_v26 }
 0x51f   :  { %v6492_v2 = vld [vmem:[#allocation9 + $0x14c] sm:$0xf]  ;;  %v6039_v17 = vld [vmem:[#allocation9 + $0x158] sm:$0xf0]  ;;  %v7341_v4 = vor.u32 %v6493_v47, %v6029_v7  ;;  %v7343_v27 = vor.u32 %v6491_v54, %v6031_v37  ;;  %v5999_v7 = vld [vmem:[#allocation9 + $0x110] sm:$0xf0] }
 0x520   :  { %6650 = vtanh.f32 %v2717_v33  ;;  %v7251_v55 = vsel %vm2726_vm11, %v2717_v33, %v7189_v45  ;;  %v2708_v1 = vsel %vm2707_vm15, %v6649_v51, %v2704_v16  ;;  %v6516_v45 = vpack.c.bf16 %v7109_v61, %v7072_v8  ;;  %v6512_v61 = vld [vmem:[#allocation9 + $0x1ec] sm:$0xf]  ;;  %v6061_v33 = vld [vmem:[#allocation9 + $0x180] sm:$0xf]  ;;  %v6501_v16 = vld [vmem:[#allocation9 + $0x18c] sm:$0xf0] }
 0x521   :  { %v2713_v56 = vsel %vm2710_vm0, %v2712_v24, %v2708_v1  ;;  %v3066_v8 = vpack.c.bf16 %v7192_v11, %v7175_v49  ;;  %v7274_v23 = vor.u32 %v6512_v61, %v6119_v48  ;;  %v6063_v1 = vld [vmem:[#allocation9 + $0x190] sm:$0xf0]  ;;  %v6500_v24 = vld [vmem:[#allocation9 + $0x18c] sm:$0xf]  ;;  %v7350_v26 = vor.u32 %v6492_v2, %v6039_v17 }
 0x522   :  { %v7309_v25 = vor.u32 %v6499_v9, %v6063_v1  ;;  %v6015_v9 = vld [vmem:[#allocation9 + $0x130] sm:$0xf0] }
 0x526   :  { %v6651_v50 = vpop.eup %6650 }
 0x527   :  { %v2719_v62 = vmul.f32 %v6651_v50, %v2713_v56  ;;  %v6071_v56 = vld [vmem:[#allocation9 + $0x198] sm:$0xf0] }
 0x528   :  { %v7315_v61 = vor.u32 %v6500_v24, %v6071_v56 }
 0x529   :  { %v7256_v41 = vsel %vm2726_vm11, %v2719_v62, %v7192_v11  ;;  %v7281_v11 = vor.u32 %v6514_v19, %v6117_v44  ;;  %v6085_v62 = vld [vmem:[#allocation9 + $0x1a8] sm:$0xf]  ;;  %v6496_v19 = vld [vmem:[#allocation9 + $0x16c] sm:$0xf] }
 0x52a   :  { %v2731_v12 = vpack.c.bf16 %v7256_v41, %v7256_v41  ;;  %v7317_v48 = vor.u32 %v6506_v36, %v6085_v62 }
 0x52c   :  { %2939 = vmatmul.bf16.vlgmr.msra.gmra.mxu0 %v2731_v12  ;;  %2952 = vmatmul.bf16.vlgmr.msra.gmra.mxu1 %v2731_v12 }
 0x52d   :  { %2965 = vmatmul.bf16.vlgmr.msra.gmra.mxu2 %v2731_v12  ;;  %2978 = vmatmul.bf16.vlgmr.msra.gmra.mxu3 %v2731_v12 }
 0x52e   :  { %3617 = vmatpush.bf16.msra.mxu0 %v7264_v32  ;;  %3630 = vmatpush.bf16.msra.mxu1 %v7266_v43 }
 0x52f   :  { %3656 = vmatpush.bf16.msra.mxu3 %v7274_v23  ;;  %3643 = vmatpush.bf16.msra.mxu2 %v7281_v11 }
 0x532   :  { %3618 = vmatpush.bf16.msra.mxu0 %v7284_v18  ;;  %3631 = vmatpush.bf16.msra.mxu1 %v7286_v20 }
 0x533   :  { %3657 = vmatpush.bf16.msra.mxu3 %v7290_v39  ;;  %3644 = vmatpush.bf16.msra.mxu2 %v7303_v58 }
 0x536   :  { %3619 = vmatpush.bf16.msra.mxu0 %v7296_v31  ;;  %3632 = vmatpush.bf16.msra.mxu1 %v7298_v6 }
 0x537   :  { %3658 = vmatpush.bf16.msra.mxu3 %v7301_v28  ;;  %3645 = vmatpush.bf16.msra.mxu2 %v7317_v48 }
 0x53a   :  { %3633 = vmatpush.bf16.msra.mxu1 %v7309_v25 }
 0x53b   :  { %3659 = vmatpush.bf16.msra.mxu3 %v7315_v61 }
 0x53c   :  { %6517 = vmatmul.msk.bf16.vlgmr.msrb.gmra.mxu0 %vm6515_vm2, %v6516_v45  ;;  %6520 = vmatmul.msk.bf16.vlgmr.msrb.gmra.mxu1 %vm6515_vm2, %v6516_v45 }
 0x53d   :  { %6523 = vmatmul.msk.bf16.vlgmr.msrb.gmra.mxu2 %vm6515_vm2, %v6516_v45  ;;  %6526 = vmatmul.msk.bf16.vlgmr.msrb.gmra.mxu3 %vm6515_vm2, %v6516_v45  ;;  %v7307_v45 = vor.u32 %v6501_v16, %v6061_v33  ;;  %v6489_v33 = vld [vmem:[#allocation9 + $0x12c] sm:$0xf0]  ;;  %v6487_v16 = vld [vmem:[#allocation9 + $0x124] sm:$0xf] }
 0x53f   :  { %3620 = vmatpush.bf16.msra.mxu0 %v7307_v45 }
 0x54c   :  { %3285 = vmatmul.bf16.gmra.mxu0 %v3065_v60  ;;  %3314 = vmatmul.bf16.gmra.mxu1 %v3065_v60 }
 0x54d   :  { %3343 = vmatmul.bf16.gmra.mxu2 %v3065_v60  ;;  %3372 = vmatmul.bf16.gmra.mxu3 %v3065_v60 }
 0x55c   :  { %3290 = vmatmul.bf16.gmra.mxu0 %v3066_v8  ;;  %3319 = vmatmul.bf16.gmra.mxu1 %v3066_v8 }
 0x55d   :  { %3348 = vmatmul.bf16.gmra.mxu2 %v3066_v8  ;;  %3377 = vmatmul.bf16.gmra.mxu3 %v3066_v8 }
 0x5a9   :  { %v2940_v52 = vpop.f32.mrf.mxu0  ;;  %v2953_v49 = vpop.f32.mrf.mxu1 }
 0x5aa   :  { %v2941_v51 = vadd.f32 %v2940_v52, %v330_v5  ;;  %v2954_v10 = vadd.f32 %v2953_v49, %v359_v35  ;;  %v6495_v5 = vld [vmem:[#allocation9 + $0x164] sm:$0xf]  ;;  %v6047_v35 = vld [vmem:[#allocation9 + $0x170] sm:$0xf0]  ;;  %v6055_v52 = vld [vmem:[#allocation9 + $0x178] sm:$0xf0] }
 0x5ab   :  { %v6069_v49 = vld [vmem:[#allocation9 + $0x188] sm:$0xf]  ;;  %v7331_v21 = vor.u32 %v6496_v19, %v6055_v52  ;;  %v5997_v52 = vld [vmem:[#allocation9 + $0x100] sm:$0xf] }
 0x5ac   :  { %v5863_v38 = vmul.f32 -1.442695, %v2941_v51  ;;  %v5864_v40 = vmul.f32 -1.442695, %v2954_v10  ;;  %v7333_v30 = vor.u32 %v6502_v59, %v6069_v49  ;;  %v6485_v49 = vld [vmem:[#allocation9 + $0x10c] sm:$0xf0] }
 0x5ad   :  { %3660 = vmatpush.bf16.msra.mxu3 %v7331_v21  ;;  %v6483_v59 = vld [vmem:[#allocation9 + $0x104] sm:$0xf] }
 0x5ae   :  { %6652 = vpow2.f32 %v5863_v38  ;;  %v7325_v38 = vor.u32 %v6497_v29, %v6045_v13  ;;  %3646 = vmatpush.bf16.msra.mxu2 %v7333_v30  ;;  %v7366_v13 = vor.u32 %v6487_v16, %v6015_v9  ;;  %v6488_v29 = vld [vmem:[#allocation9 + $0x12c] sm:$0xf] }
 0x5af   :  { %6654 = vpow2.f32 %v5864_v40  ;;  %v7327_v40 = vor.u32 %v6495_v5, %v6047_v35 }
 0x5b0   :  { %v7292_v34 = vpop.f32.mrf.mxu2  ;;  %v2979_v3 = vpop.f32.mrf.mxu3  ;;  %3621 = vmatpush.bf16.msra.mxu0 %v7325_v38 }
 0x5b1   :  { %v2980_v42 = vadd.f32 %v2979_v3, %v417_v15  ;;  %v2942_v46 = vpop.f32.mrf.mxu0  ;;  %v2955_v57 = vpop.f32.mrf.mxu1  ;;  %v6053_v3 = vld [vmem:[#allocation9 + $0x168] sm:$0xf]  ;;  %3634 = vmatpush.bf16.msra.mxu1 %v7327_v40  ;;  %v2967_v63 = vadd.f32 %v7292_v34, %v388_v14  ;;  %v6494_v34 = vld [vmem:[#allocation9 + $0x154] sm:$0xf0]  ;;  %3661 = vmatpush.bf16.msra.mxu3 %v7350_v26 }
 0x5b2   :  { %v6013_v46 = vld [vmem:[#allocation9 + $0x120] sm:$0xf]  ;;  %v6490_v14 = vld [vmem:[#allocation9 + $0x134] sm:$0xf0] }
 0x5b3   :  { %v5865_v50 = vmul.f32 -1.442695, %v2980_v42  ;;  %v6498_v42 = vld [vmem:[#allocation9 + $0x174] sm:$0xf0]  ;;  %v7364_v36 = vor.u32 %v6489_v33, %v6013_v46  ;;  %v6484_v46 = vld [vmem:[#allocation9 + $0x10c] sm:$0xf] }
 0x5b4   :  { %v6653_v12 = vpop.eup %6652  ;;  %v7352_v22 = vor.u32 %v6498_v42, %v6053_v3  ;;  %3622 = vmatpush.bf16.msra.mxu0 %v7341_v4  ;;  %v7386_v3 = vor.u32 %v6485_v49, %v5997_v52  ;;  %v7388_v42 = vor.u32 %v6483_v59, %v5999_v7 }
 0x5b5   :  { %v6655_v60 = vpop.eup %6654  ;;  %v7311_v8 = vadd.f32 1.0, %v6653_v12  ;;  %6656 = vpow2.f32 %v5865_v50  ;;  %v6037_v50 = vld [vmem:[#allocation9 + $0x148] sm:$0xf]  ;;  %3635 = vmatpush.bf16.msra.mxu1 %v7343_v27 }
 0x5b6   :  { %v7319_v44 = vadd.f32 1.0, %v6655_v60  ;;  %v6023_v60 = vld [vmem:[#allocation9 + $0x138] sm:$0xf0]  ;;  %3647 = vmatpush.bf16.msra.mxu2 %v7352_v22  ;;  %v7371_v19 = vor.u32 %v6494_v34, %v6037_v50 }
 0x5b7   :  { %6658 = vrcp.f32 %v7311_v8  ;;  %v2996_v62 = vand.u32 2147483647, %v7311_v8  ;;  %v2998_v35 = vand.u32 2147483648, %v7311_v8  ;;  %vm2992_vm13 = vweird.f32 %v7311_v8 }
 0x5b8   :  { %6660 = vrcp.f32 %v7319_v44  ;;  %v2968_v51 = vpop.f32.mrf.mxu2  ;;  %v2981_v10 = vpop.f32.mrf.mxu3  ;;  %v3015_v54 = vand.u32 2147483647, %v7319_v44  ;;  %v7380_v37 = vor.u32 %v6488_v29, %v6023_v60  ;;  %vm3011_vm5 = vweird.f32 %v7319_v44  ;;  %3623 = vmatpush.bf16.msra.mxu0 %v7364_v36 }
 0x5b9   :  { %v3017_v51 = vand.u32 2147483648, %v7319_v44  ;;  %3636 = vmatpush.bf16.msra.mxu1 %v7366_v13  ;;  %v2999_v16 = vor.u32 1.1754944e-38, %v2998_v35  ;;  %vm2997_vm8 = vcmp.eq.f32.partialorder %v2996_v62, 8.507059e+37 }
 0x5ba   :  { %3648 = vmatpush.bf16.msra.mxu2 %v7371_v19  ;;  %3662 = vmatpush.bf16.msra.mxu3 %v7380_v37  ;;  %vm3016_vm9 = vcmp.eq.f32.partialorder %v3015_v54, 8.507059e+37 }
 0x5bb   :  { %v6657_v15 = vpop.eup %6656 }
 0x5bc   :  { %v7337_v53 = vadd.f32 1.0, %v6657_v15  ;;  %v6021_v15 = vld [vmem:[#allocation9 + $0x128] sm:$0xf]  ;;  %3624 = vmatpush.bf16.msra.mxu0 %v7386_v3 }
 0x5bd   :  { %v7345_v57 = vpop.eup %6658  ;;  %v7402_v50 = vor.u32 %v6490_v14, %v6021_v15  ;;  %3637 = vmatpush.bf16.msra.mxu1 %v7388_v42 }
 0x5be   :  { %v7354_v1 = vpop.eup %6660  ;;  %v2988_v24 = vmul.f32 %v7345_v57, %v7311_v8  ;;  %6662 = vrcp.f32 %v7337_v53  ;;  %vm2993_vm3 = vweird.f32 %v7345_v57  ;;  %v3018_v8 = vor.u32 1.1754944e-38, %v3017_v51 }
 0x5bf   :  { %v3007_v56 = vmul.f32 %v7354_v1, %v7319_v44  ;;  %6664 = vtanh.f32 %v2967_v63  ;;  %vm3012_vm4 = vweird.f32 %v7354_v1  ;;  %v6007_v63 = vld [vmem:[#allocation9 + $0x118] sm:$0xf0]  ;;  %vm7394_vm6 = vmor %vm2992_vm13, %vm2993_vm3  ;;  %3649 = vmatpush.bf16.msra.mxu2 %v7402_v50  ;;  %v3037_v59 = vand.u32 2147483648, %v7337_v53 }
 0x5c0   :  { %v2989_v12 = vsub.f32 1.0, %v2988_v24  ;;  %vm3013_vm7 = vmor %vm3011_vm5, %vm3012_vm4  ;;  %v7411_v29 = vor.u32 %v6484_v46, %v6007_v63  ;;  %3746 = vmatpush.bf16.msrb.mxu0 %v7264_v32  ;;  %vm3031_vm11 = vweird.f32 %v7337_v53  ;;  %v3339_v46 = vpop.f32.mrf.mxu2  ;;  %v3368_v63 = vpop.f32.mrf.mxu3 }
 0x5c1   :  { %v3008_v5 = vsub.f32 1.0, %v3007_v56  ;;  %v6005_v56 = vld [vmem:[#allocation9 + $0x108] sm:$0xf]  ;;  %3759 = vmatpush.bf16.msrb.mxu1 %v7266_v43 }
 0x5c2   :  { %v2990_v10 = vmul.f32 %v7345_v57, %v2989_v12  ;;  %v6486_v12 = vld [vmem:[#allocation9 + $0x114] sm:$0xf0]  ;;  %3663 = vmatpush.bf16.msra.mxu3 %v7411_v29 }
 0x5c3   :  { %v3009_v47 = vmul.f32 %v7354_v1, %v3008_v5  ;;  %v7418_v62 = vor.u32 %v6486_v12, %v6005_v56 }
 0x5c4   :  { %v6663_v2 = vpop.eup %6662  ;;  %v2991_v17 = vadd.f32 %v7345_v57, %v2990_v10  ;;  %3747 = vmatpush.bf16.msrb.mxu0 %v7284_v18 }
 0x5c5   :  { %v3010_v9 = vadd.f32 %v7354_v1, %v3009_v47  ;;  %v3027_v24 = vmul.f32 %v6663_v2, %v7337_v53  ;;  %v6665_v60 = vpop.eup %6664  ;;  %vm3032_vm10 = vweird.f32 %v6663_v2  ;;  %3650 = vmatpush.bf16.msra.mxu2 %v7418_v62  ;;  %3760 = vmatpush.bf16.msrb.mxu1 %v7286_v20  ;;  %v3038_v47 = vor.u32 1.1754944e-38, %v3037_v59 }
 0x5c6   :  { %v2995_v34 = vsel %vm7394_vm6, %v7345_v57, %v2991_v17  ;;  %3785 = vmatpush.bf16.msrb.mxu3 %v7274_v23  ;;  %vm3033_vm12 = vmor %vm3031_vm11, %vm3032_vm10 }
 0x5c7   :  { %v3000_v5 = vsel %vm2997_vm8, %v2999_v16, %v2995_v34  ;;  %v3014_v35 = vsel %vm3013_vm7, %v7354_v1, %v3010_v9  ;;  %v3028_v52 = vsub.f32 1.0, %v3027_v24 }
 0x5c8   :  { %v3019_v49 = vsel %vm3016_vm9, %v3018_v8, %v3014_v35  ;;  %v3042_v10 = vmul.f32 %v6665_v60, %v3000_v5  ;;  %3748 = vmatpush.bf16.msrb.mxu0 %v7296_v31  ;;  %v7499_v9 = vpop.f32.mrf.mxu2  ;;  %v7501_v24 = vpop.f32.mrf.mxu3 }
 0x5c9   :  { %v3041_v44 = vmul.f32 %v3019_v49, %v7251_v55  ;;  %v3029_v57 = vmul.f32 %v6663_v2, %v3028_v52  ;;  %v3035_v55 = vand.u32 2147483647, %v7337_v53  ;;  %3772 = vmatpush.bf16.msrb.mxu2 %v7281_v11  ;;  %3761 = vmatpush.bf16.msrb.mxu1 %v7298_v6  ;;  %v3051_v53 = vpop.permute.xlu1 %3050  ;;  %7873 = vst [vmem:[#allocation14_spill] sm:$0xff] %v7499_v9 }
 0x5ca   :  { %3786 = vmatpush.bf16.msrb.mxu3 %v7290_v39  ;;  %vm3052_vm15 = vcmp.eq.s32.totalorder %v3051_v53, 1  ;;  %v5866_v53 = vld [vmem:[%s7863_s4 + $0x4] sm:$0xf]  ;;  %s6908_s4 = smov [#allocation10]  }
 0x5cb   :  { %v3043_v1 = vadd.f32 %v3042_v10, %v3041_v44  ;;  %v3030_v51 = vadd.f32 %v6663_v2, %v3029_v57  ;;  %vm3036_vm14 = vcmp.eq.f32.partialorder %v3035_v55, 8.507059e+37  ;;  %s4642_s18 = sshll.u32 %s6908_s4, 4  ;;  %s4643_s18 = int_to_ptr.vmem [resolvable:$true] %s4642_s18 }
 0x5cc   :  { %3749 = vmatpush.bf16.msrb.mxu0 %v7307_v45 }
 0x5cd   :  { %6666 = vtanh.f32 %v3043_v1  ;;  %v3034_v7 = vsel %vm3033_vm12, %v6663_v2, %v3030_v51  ;;  %3773 = vmatpush.bf16.msrb.mxu2 %v7303_v58  ;;  %3762 = vmatpush.bf16.msrb.mxu1 %v7309_v25 }
 0x5ce   :  { %v3039_v15 = vsel %vm3036_vm14, %v3038_v47, %v3034_v7  ;;  %3787 = vmatpush.bf16.msrb.mxu3 %v7301_v28 }
 0x5d0   :  { %3750 = vmatpush.bf16.msrb.mxu0 %v7325_v38  ;;  %v7507_v56 = vpop.f32.mrf.mxu2  ;;  %v7509_v12 = vpop.f32.mrf.mxu3 }
 0x5d1   :  { %3774 = vmatpush.bf16.msrb.mxu2 %v7317_v48  ;;  %3763 = vmatpush.bf16.msrb.mxu1 %v7327_v40  ;;  %7876 = vst [vmem:[#allocation17_spill] sm:$0xff] %v7507_v56 }
 0x5d2   :  { %3788 = vmatpush.bf16.msrb.mxu3 %v7315_v61  ;;  %7877 = vst [vmem:[#allocation18_spill] sm:$0xff] %v7509_v12 }
 0x5d3   :  { %v6667_v54 = vpop.eup %6666 }
 0x5d4   :  { %v3045_v14 = vmul.f32 %v6667_v54, %v3039_v15  ;;  %3751 = vmatpush.bf16.msrb.mxu0 %v7341_v4 }
 0x5d5   :  { %3775 = vmatpush.bf16.msrb.mxu2 %v7333_v30  ;;  %3764 = vmatpush.bf16.msrb.mxu1 %v7343_v27 }
 0x5d6   :  { %v3053_v17 = vsel %vm3052_vm15, %v3045_v14, %v7256_v41  ;;  %3789 = vmatpush.bf16.msrb.mxu3 %v7331_v21 }
 0x5d7   :  { %v3067_v2 = vpack.c.bf16 %v3053_v17, %v7256_v41  ;;  %v3310_v41 = vpop.f32.mrf.mxu1 }
 0x5d8   :  { %3752 = vmatpush.bf16.msrb.mxu0 %v7364_v36  ;;  %v7515_v35 = vpop.f32.mrf.mxu2  ;;  %v7517_v52 = vpop.f32.mrf.mxu3 }
 0x5d9   :  { %3295 = vmatmul.bf16.gmra.mxu0 %v3067_v2  ;;  %3324 = vmatmul.bf16.gmra.mxu1 %v3067_v2  ;;  %7880 = vst [vmem:[#allocation21_spill] sm:$0xff] %v7515_v35 }
 0x5da   :  { %3353 = vmatmul.bf16.gmra.mxu2 %v3067_v2  ;;  %3382 = vmatmul.bf16.gmra.mxu3 %v3067_v2  ;;  %7881 = vst [vmem:[#allocation22_spill] sm:$0xff] %v7517_v52  ;;  %v7550_v2 = vperm.slane %v5866_v53, 0 }
 0x5db   :  { %3776 = vmatpush.bf16.msrb.mxu2 %v7352_v22  ;;  %3790 = vmatpush.bf16.msrb.mxu3 %v7350_v26 }
 0x5dc   :  { %3765 = vmatpush.bf16.msrb.mxu1 %v7366_v13  ;;  %3753 = vmatpush.bf16.msrb.mxu0 %v7386_v3 }
 0x5df   :  { %3777 = vmatpush.bf16.msrb.mxu2 %v7371_v19  ;;  %3791 = vmatpush.bf16.msrb.mxu3 %v7380_v37  ;;  %v7497_v16 = vpop.f32.mrf.mxu1 }
 0x5e0   :  { %3766 = vmatpush.bf16.msrb.mxu1 %v7388_v42  ;;  %v7523_v44 = vpop.f32.mrf.mxu2  ;;  %v7525_v57 = vpop.f32.mrf.mxu3 }
 0x5e1   :  { %7884 = vst [vmem:[#allocation25_spill] sm:$0xff] %v7523_v44 }
 0x5e2   :  { %7885 = vst [vmem:[#allocation26_spill] sm:$0xff] %v7525_v57  ;;  %v7560_v57 = vperm.slane %v5866_v53, 3 }
 0x5e3   :  { %3778 = vmatpush.bf16.msrb.mxu2 %v7402_v50  ;;  %3792 = vmatpush.bf16.msrb.mxu3 %v7411_v29 }
 0x5e7   :  { %3779 = vmatpush.bf16.msrb.mxu2 %v7418_v62  ;;  %v7505_v34 = vpop.f32.mrf.mxu1 }
 0x5e8   :  { %7875 = vst [vmem:[#allocation16_spill] sm:$0xff] %v7505_v34  ;;  %v7531_v59 = vpop.f32.mrf.mxu2  ;;  %v7533_v55 = vpop.f32.mrf.mxu3 }
 0x5e9   :  { %3625 = vmatmul.bf16.vlgmr.msra.gmra.mxu0 %v6906_v0  ;;  %3638 = vmatmul.bf16.vlgmr.msra.gmra.mxu1 %v6906_v0  ;;  %7888 = vst [vmem:[#allocation29_spill] sm:$0xff] %v7531_v59  ;;  %v7552_v59 = vperm.slane %v5866_v53, 1 }
 0x5ea   :  { %3651 = vmatmul.bf16.vlgmr.msra.gmra.mxu2 %v6906_v0  ;;  %3664 = vmatmul.bf16.vlgmr.msra.gmra.mxu3 %v6906_v0  ;;  %v3281_v0 = vpop.f32.mrf.mxu0  ;;  %7889 = vst [vmem:[#allocation30_spill] sm:$0xff] %v7533_v55 }
 0x5eb   :  { %3874 = vmatpush.bf16.msra.mxu0 %v7264_v32  ;;  %3887 = vmatpush.bf16.msra.mxu1 %v7266_v43 }
 0x5ec   :  { %3900 = vmatpush.bf16.msra.mxu2 %v7281_v11  ;;  %3913 = vmatpush.bf16.msra.mxu3 %v7274_v23 }
 0x5ef   :  { %3875 = vmatpush.bf16.msra.mxu0 %v7284_v18  ;;  %3888 = vmatpush.bf16.msra.mxu1 %v7286_v20  ;;  %v7513_v5 = vpop.f32.mrf.mxu1 }
 0x5f0   :  { %3901 = vmatpush.bf16.msra.mxu2 %v7303_v58  ;;  %3914 = vmatpush.bf16.msra.mxu3 %v7290_v39  ;;  %7879 = vst [vmem:[#allocation20_spill] sm:$0xff] %v7513_v5 }
 0x5f2   :  { %v7495_v33 = vpop.f32.mrf.mxu0 }
 0x5f3   :  { %3876 = vmatpush.bf16.msra.mxu0 %v7296_v31  ;;  %3889 = vmatpush.bf16.msra.mxu1 %v7298_v6 }
 0x5f4   :  { %3902 = vmatpush.bf16.msra.mxu2 %v7317_v48  ;;  %3915 = vmatpush.bf16.msra.mxu3 %v7301_v28 }
 0x5f7   :  { %3877 = vmatpush.bf16.msra.mxu0 %v7307_v45  ;;  %3890 = vmatpush.bf16.msra.mxu1 %v7309_v25  ;;  %v7521_v10 = vpop.f32.mrf.mxu1 }
 0x5f8   :  { %3903 = vmatpush.bf16.msra.mxu2 %v7333_v30  ;;  %3916 = vmatpush.bf16.msra.mxu3 %v7315_v61  ;;  %7883 = vst [vmem:[#allocation24_spill] sm:$0xff] %v7521_v10  ;;  %v3369_v10 = vadd.f32 %v3368_v63, %v7560_v57 }
 0x5fa   :  { %v7503_v8 = vpop.f32.mrf.mxu0 }
 0x5fb   :  { %3878 = vmatpush.bf16.msra.mxu0 %v7325_v38  ;;  %3891 = vmatpush.bf16.msra.mxu1 %v7327_v40  ;;  %7874 = vst [vmem:[#allocation15_spill] sm:$0xff] %v7503_v8 }
 0x5fc   :  { %3904 = vmatpush.bf16.msra.mxu2 %v7352_v22  ;;  %3917 = vmatpush.bf16.msra.mxu3 %v7331_v21 }
 0x5ff   :  { %3879 = vmatpush.bf16.msra.mxu0 %v7341_v4  ;;  %3892 = vmatpush.bf16.msra.mxu1 %v7343_v27  ;;  %v7529_v51 = vpop.f32.mrf.mxu1 }
 0x600   :  { %3905 = vmatpush.bf16.msra.mxu2 %v7371_v19  ;;  %3918 = vmatpush.bf16.msra.mxu3 %v7350_v26  ;;  %7887 = vst [vmem:[#allocation28_spill] sm:$0xff] %v7529_v51 }
 0x602   :  { %v7511_v60 = vpop.f32.mrf.mxu0 }
 0x603   :  { %3880 = vmatpush.bf16.msra.mxu0 %v7364_v36  ;;  %3893 = vmatpush.bf16.msra.mxu1 %v7366_v13  ;;  %7878 = vst [vmem:[#allocation19_spill] sm:$0xff] %v7511_v60 }
 0x604   :  { %3906 = vmatpush.bf16.msra.mxu2 %v7402_v50  ;;  %3919 = vmatpush.bf16.msra.mxu3 %v7380_v37 }
 0x607   :  { %3881 = vmatpush.bf16.msra.mxu0 %v7386_v3  ;;  %3894 = vmatpush.bf16.msra.mxu1 %v7388_v42 }
 0x608   :  { %3907 = vmatpush.bf16.msra.mxu2 %v7418_v62  ;;  %3920 = vmatpush.bf16.msra.mxu3 %v7411_v29 }
 0x60a   :  { %v7519_v49 = vpop.f32.mrf.mxu0 }
 0x60b   :  { %7882 = vst [vmem:[#allocation23_spill] sm:$0xff] %v7519_v49 }
 0x612   :  { %v7527_v1 = vpop.f32.mrf.mxu0 }
 0x613   :  { %7886 = vst [vmem:[#allocation27_spill] sm:$0xff] %v7527_v1 }
 0x656   :  { %v7535_v7 = vpop.f32.mrf.mxu0  ;;  %v7537_v47 = vpop.f32.mrf.mxu1 }
 0x657   :  { %7890 = vst [vmem:[#allocation31_spill] sm:$0xff] %v7535_v7  ;;  %v3282_v7 = vadd.f32 %v3281_v0, %v7550_v2 }
 0x658   :  { %7891 = vst [vmem:[#allocation32_spill] sm:$0xff] %v7537_v47  ;;  %v3311_v47 = vadd.f32 %v3310_v41, %v7552_v59 }
 0x65d   :  { %v7539_v54 = vpop.f32.mrf.mxu2  ;;  %v7541_v15 = vpop.f32.mrf.mxu3 }
 0x65e   :  { %7892 = vst [vmem:[#allocation33_spill] sm:$0xff] %v7539_v54  ;;  %v7546_v14 = vpop.f32.mrf.mxu0  ;;  %v7548_v17 = vpop.f32.mrf.mxu1 }
 0x65f   :  { %7893 = vst [vmem:[#allocation34_spill] sm:$0xff] %v7541_v15 }
 0x660   :  { %7894 = vst [vmem:[#allocation35_spill] sm:$0xff] %v7546_v14 }
 0x661   :  { %7895 = vst [vmem:[#allocation36_spill] sm:$0xff] %v7548_v17 }
 0x665   :  { %v7556_v55 = vpop.f32.mrf.mxu2  ;;  %v7558_v54 = vpop.f32.mrf.mxu3 }
 0x666   :  { %7896 = vst [vmem:[#allocation37_spill] sm:$0xff] %v7556_v55  ;;  %v3626_v15 = vpop.f32.mrf.mxu0  ;;  %v3639_v51 = vpop.f32.mrf.mxu1 }
 0x667   :  { %7897 = vst [vmem:[#allocation38_spill] sm:$0xff] %v7558_v54  ;;  %v3627_v1 = vadd.f32 %v3626_v15, %v3282_v7  ;;  %v3640_v44 = vadd.f32 %v3639_v51, %v3311_v47  ;;  %v7563_v51 = vperm.slane %v5866_v53, 2 }
 0x669   :  { %v6123_v14 = vmul.f32 -1.442695, %v3627_v1  ;;  %v6124_v17 = vmul.f32 -1.442695, %v3640_v44  ;;  %7898 = vst [vmem:[#allocation39_spill] sm:$0xff] %v7563_v51  ;;  %v3340_v63 = vadd.f32 %v3339_v46, %v7563_v51 }
 0x66b   :  { %6668 = vpow2.f32 %v6123_v14 }
 0x66c   :  { %6670 = vpow2.f32 %v6124_v17 }
 0x66d   :  { %v3652_v49 = vpop.f32.mrf.mxu2  ;;  %v3665_v0 = vpop.f32.mrf.mxu3 }
 0x66e   :  { %v3666_v35 = vadd.f32 %v3665_v0, %v3369_v10  ;;  %v3628_v41 = vpop.f32.mrf.mxu0  ;;  %v3641_v52 = vpop.f32.mrf.mxu1  ;;  %v3653_v10 = vadd.f32 %v3652_v49, %v3340_v63 }
 0x670   :  { %v6125_v55 = vmul.f32 -1.442695, %v3666_v35 }
 0x671   :  { %v6669_v5 = vpop.eup %6668 }
 0x672   :  { %v6671_v54 = vpop.eup %6670  ;;  %v3672_v60 = vadd.f32 1.0, %v6669_v5  ;;  %6672 = vpow2.f32 %v6125_v55 }
 0x673   :  { %v3691_v7 = vadd.f32 1.0, %v6671_v54 }
 0x674   :  { %6674 = vrcp.f32 %v3672_v60  ;;  %v3684_v55 = vand.u32 2147483648, %v3672_v60  ;;  %v3682_v41 = vand.u32 2147483647, %v3672_v60  ;;  %vm3678_vm2 = vweird.f32 %v3672_v60 }
 0x675   :  { %6676 = vrcp.f32 %v3691_v7  ;;  %v3667_v44 = vpop.f32.mrf.mxu3  ;;  %v3654_v1 = vpop.f32.mrf.mxu2  ;;  %v3703_v54 = vand.u32 2147483648, %v3691_v7  ;;  %vm3697_vm13 = vweird.f32 %v3691_v7 }
 0x676   :  { %v3701_v1 = vand.u32 2147483647, %v3691_v7  ;;  %v3685_v49 = vor.u32 1.1754944e-38, %v3684_v55  ;;  %vm3683_vm4 = vcmp.eq.f32.partialorder %v3682_v41, 8.507059e+37  ;;  %v7569_v41 = vpop.permute.xlu2 %3736 }
 0x677   :  { %v3704_v12 = vor.u32 1.1754944e-38, %v3703_v54  ;;  %vm3738_vm11 = vcmp.eq.s32.totalorder %v7569_v41, 1  ;;  %v7901_v41 = vld [vmem:[#allocation15_spill] sm:$0xff] }
 0x678   :  { %v6673_v47 = vpop.eup %6672  ;;  %vm3702_vm6 = vcmp.eq.f32.partialorder %v3701_v1, 8.507059e+37  ;;  %vm6126_vm12 = vmpackc.low %vm3738_vm11, %vm3738_vm11 }
 0x679   :  { %v3711_v15 = vadd.f32 1.0, %v6673_v47 }
 0x67a   :  { %v6675_v14 = vpop.eup %6674 }
 0x67b   :  { %v6677_v17 = vpop.eup %6676  ;;  %v3674_v52 = vmul.f32 %v6675_v14, %v3672_v60  ;;  %6678 = vrcp.f32 %v3711_v15  ;;  %vm3679_vm0 = vweird.f32 %v6675_v14  ;;  %vm3717_vm8 = vweird.f32 %v3711_v15 }
 0x67c   :  { %v3693_v35 = vmul.f32 %v6677_v17, %v3691_v7  ;;  %6680 = vtanh.f32 %v3653_v10  ;;  %vm3698_vm1 = vweird.f32 %v6677_v17  ;;  %vm3680_vm3 = vmor %vm3678_vm2, %vm3679_vm0  ;;  %v3723_v7 = vand.u32 2147483648, %v3711_v15 }
 0x67d   :  { %v3675_v0 = vsub.f32 1.0, %v3674_v52  ;;  %vm3699_vm5 = vmor %vm3697_vm13, %vm3698_vm1 }
 0x67e   :  { %v3694_v5 = vsub.f32 1.0, %v3693_v35  ;;  %v3724_v54 = vor.u32 1.1754944e-38, %v3723_v7 }
 0x67f   :  { %v3676_v53 = vmul.f32 %v6675_v14, %v3675_v0 }
 0x680   :  { %v3695_v44 = vmul.f32 %v6677_v17, %v3694_v5 }
 0x681   :  { %v6679_v56 = vpop.eup %6678  ;;  %v3677_v46 = vadd.f32 %v6675_v14, %v3676_v53 }
 0x682   :  { %v3696_v47 = vadd.f32 %v6677_v17, %v3695_v44  ;;  %v3713_v63 = vmul.f32 %v6679_v56, %v3711_v15  ;;  %v6681_v10 = vpop.eup %6680  ;;  %vm3718_vm7 = vweird.f32 %v6679_v56 }
 0x683   :  { %v3681_v52 = vsel %vm3680_vm3, %v6675_v14, %v3677_v46  ;;  %v3721_v14 = vand.u32 2147483647, %v3711_v15  ;;  %vm3719_vm9 = vmor %vm3717_vm8, %vm3718_vm7 }
 0x684   :  { %v3686_v35 = vsel %vm3683_vm4, %v3685_v49, %v3681_v52  ;;  %v3700_v0 = vsel %vm3699_vm5, %v6677_v17, %v3696_v47  ;;  %v3714_v34 = vsub.f32 1.0, %v3713_v63  ;;  %v3371_v47 = vadd.f32 %v7501_v24, %v7560_v57 }
 0x685   :  { %v3705_v5 = vsel %vm3702_vm6, %v3704_v12, %v3700_v0  ;;  %v3728_v8 = vmul.f32 %v6681_v10, %v3686_v35  ;;  %vm3722_vm10 = vcmp.eq.f32.partialorder %v3721_v14, 8.507059e+37 }
 0x686   :  { %v3727_v9 = vmul.f32 0.0, %v3705_v5  ;;  %v3715_v51 = vmul.f32 %v6679_v56, %v3714_v34 }
 0x688   :  { %v7566_v53 = vadd.f32 %v3728_v8, %v3727_v9  ;;  %v3716_v60 = vadd.f32 %v6679_v56, %v3715_v51  ;;  %v3284_v8 = vadd.f32 %v7495_v33, %v7550_v2 }
 0x68a   :  { %6682 = vtanh.f32 %v7566_v53  ;;  %v3720_v55 = vsel %vm3719_vm9, %v6679_v56, %v3716_v60  ;;  %v3313_v56 = vadd.f32 %v7497_v16, %v7552_v59 }
 0x68b   :  { %v3725_v12 = vsel %vm3722_vm10, %v3724_v54, %v3720_v55 }
 0x690   :  { %v6683_v17 = vpop.eup %6682 }
 0x691   :  { %v7572_v34 = vmul.f32 %v6683_v17, %v3725_v12  ;;  %v7899_v17 = vld [vmem:[#allocation39_spill] sm:$0xff]  ;;  %v7900_v12 = vld [vmem:[#allocation14_spill] sm:$0xff] }
 0x692   :  { %v3342_v24 = vadd.f32 %v7900_v12, %v7899_v17 }
 0x693   :  { %v6127_v9 = vpack.c.bf16 %v7572_v34, %v7572_v34 }
 0x695   :  { %6128 = vmatmul.msk.bf16.vlgmr.msrb.gmra.mxu0 %vm6126_vm12, %v6127_v9  ;;  %6131 = vmatmul.msk.bf16.vlgmr.msrb.gmra.mxu1 %vm6126_vm12, %v6127_v9 }
 0x696   :  { %6134 = vmatmul.msk.bf16.vlgmr.msrb.gmra.mxu2 %vm6126_vm12, %v6127_v9  ;;  %6137 = vmatmul.msk.bf16.vlgmr.msrb.gmra.mxu3 %vm6126_vm12, %v6127_v9 }
 0x697   :  { %4002 = vmatpush.bf16.msrb.mxu0 %v7264_v32  ;;  %4015 = vmatpush.bf16.msrb.mxu1 %v7266_v43 }
 0x698   :  { %4028 = vmatpush.bf16.msrb.mxu2 %v7281_v11  ;;  %4041 = vmatpush.bf16.msrb.mxu3 %v7274_v23 }
 0x69b   :  { %4003 = vmatpush.bf16.msrb.mxu0 %v7284_v18  ;;  %4016 = vmatpush.bf16.msrb.mxu1 %v7286_v20 }
 0x69c   :  { %4029 = vmatpush.bf16.msrb.mxu2 %v7303_v58  ;;  %4042 = vmatpush.bf16.msrb.mxu3 %v7290_v39 }
 0x69f   :  { %4004 = vmatpush.bf16.msrb.mxu0 %v7296_v31  ;;  %4017 = vmatpush.bf16.msrb.mxu1 %v7298_v6 }
 0x6a0   :  { %4030 = vmatpush.bf16.msrb.mxu2 %v7317_v48  ;;  %4043 = vmatpush.bf16.msrb.mxu3 %v7301_v28 }
 0x6a3   :  { %4005 = vmatpush.bf16.msrb.mxu0 %v7307_v45  ;;  %4018 = vmatpush.bf16.msrb.mxu1 %v7309_v25 }
 0x6a4   :  { %4031 = vmatpush.bf16.msrb.mxu2 %v7333_v30  ;;  %4044 = vmatpush.bf16.msrb.mxu3 %v7315_v61 }
 0x6a7   :  { %4006 = vmatpush.bf16.msrb.mxu0 %v7325_v38  ;;  %4019 = vmatpush.bf16.msrb.mxu1 %v7327_v40 }
 0x6a8   :  { %4032 = vmatpush.bf16.msrb.mxu2 %v7352_v22  ;;  %4045 = vmatpush.bf16.msrb.mxu3 %v7331_v21 }
 0x6ab   :  { %4007 = vmatpush.bf16.msrb.mxu0 %v7341_v4  ;;  %4020 = vmatpush.bf16.msrb.mxu1 %v7343_v27 }
 0x6ac   :  { %4033 = vmatpush.bf16.msrb.mxu2 %v7371_v19  ;;  %4046 = vmatpush.bf16.msrb.mxu3 %v7350_v26 }
 0x6af   :  { %4008 = vmatpush.bf16.msrb.mxu0 %v7364_v36  ;;  %4021 = vmatpush.bf16.msrb.mxu1 %v7366_v13 }
 0x6b0   :  { %4034 = vmatpush.bf16.msrb.mxu2 %v7402_v50  ;;  %4047 = vmatpush.bf16.msrb.mxu3 %v7380_v37 }
 0x6b3   :  { %4009 = vmatpush.bf16.msrb.mxu0 %v7386_v3  ;;  %4022 = vmatpush.bf16.msrb.mxu1 %v7388_v42 }
 0x6b4   :  { %4035 = vmatpush.bf16.msrb.mxu2 %v7418_v62  ;;  %4048 = vmatpush.bf16.msrb.mxu3 %v7411_v29 }
 0x712   :  { %v3755_v51 = vpop.f32.mrf.mxu0  ;;  %v3768_v15 = vpop.f32.mrf.mxu1 }
 0x713   :  { %v3756_v44 = vadd.f32 %v3755_v51, %v3284_v8  ;;  %v3769_v1 = vadd.f32 %v3768_v15, %v3313_v56 }
 0x715   :  { %v6138_v46 = vmul.f32 -1.442695, %v3756_v44  ;;  %v6139_v49 = vmul.f32 -1.442695, %v3769_v1 }
 0x717   :  { %6684 = vpow2.f32 %v6138_v46 }
 0x718   :  { %6686 = vpow2.f32 %v6139_v49 }
 0x719   :  { %v3781_v63 = vpop.f32.mrf.mxu2  ;;  %v3794_v52 = vpop.f32.mrf.mxu3 }
 0x71a   :  { %v3795_v10 = vadd.f32 %v3794_v52, %v3371_v47  ;;  %v3757_v35 = vpop.f32.mrf.mxu0  ;;  %v3770_v0 = vpop.f32.mrf.mxu1  ;;  %v3782_v56 = vadd.f32 %v3781_v63, %v3342_v24 }
 0x71c   :  { %v6140_v33 = vmul.f32 -1.442695, %v3795_v10 }
 0x71d   :  { %v6685_v5 = vpop.eup %6684 }
 0x71e   :  { %v6687_v60 = vpop.eup %6686  ;;  %v3801_v16 = vadd.f32 1.0, %v6685_v5  ;;  %6688 = vpow2.f32 %v6140_v33 }
 0x71f   :  { %v3820_v7 = vadd.f32 1.0, %v6687_v60 }
 0x720   :  { %6690 = vrcp.f32 %v3801_v16  ;;  %v3813_v49 = vand.u32 2147483648, %v3801_v16  ;;  %v3811_v10 = vand.u32 2147483647, %v3801_v16  ;;  %vm3807_vm0 = vweird.f32 %v3801_v16 }
 0x721   :  { %6692 = vrcp.f32 %v3820_v7  ;;  %v3783_v14 = vpop.f32.mrf.mxu2  ;;  %v3796_v55 = vpop.f32.mrf.mxu3  ;;  %v3832_v47 = vand.u32 2147483648, %v3820_v7  ;;  %v3830_v0 = vand.u32 2147483647, %v3820_v7  ;;  %vm3826_vm1 = vweird.f32 %v3820_v7 }
 0x722   :  { %v3814_v63 = vor.u32 1.1754944e-38, %v3813_v49  ;;  %vm3812_vm3 = vcmp.eq.f32.partialorder %v3811_v10, 8.507059e+37  ;;  %v3865_v49 = vpop.permute.xlu0 %3864 }
 0x723   :  { %v3833_v55 = vor.u32 1.1754944e-38, %v3832_v47  ;;  %vm3831_vm4 = vcmp.eq.f32.partialorder %v3830_v0, 8.507059e+37  ;;  %vm3866_vm5 = vcmp.eq.s32.totalorder %v3865_v49, 1 }
 0x724   :  { %v6689_v54 = vpop.eup %6688 }
 0x725   :  { %v3840_v9 = vadd.f32 1.0, %v6689_v54 }
 0x726   :  { %v6691_v8 = vpop.eup %6690 }
 0x727   :  { %v6693_v51 = vpop.eup %6692  ;;  %v3803_v15 = vmul.f32 %v6691_v8, %v3801_v16  ;;  %6694 = vrcp.f32 %v3840_v9  ;;  %vm3808_vm14 = vweird.f32 %v6691_v8  ;;  %vm3846_vm7 = vweird.f32 %v3840_v9 }
 0x728   :  { %v3822_v44 = vmul.f32 %v6693_v51, %v3820_v7  ;;  %6696 = vtanh.f32 %v3782_v56  ;;  %vm3827_vm15 = vweird.f32 %v6693_v51  ;;  %vm3809_vm2 = vmor %vm3807_vm0, %vm3808_vm14 }
 0x729   :  { %v3804_v1 = vsub.f32 1.0, %v3803_v15  ;;  %vm3828_vm13 = vmor %vm3826_vm1, %vm3827_vm15 }
 0x72a   :  { %v3823_v46 = vsub.f32 1.0, %v3822_v44  ;;  %v3740_v44 = vsel %vm3738_vm11, %v7566_v53, 0.0 }
 0x72b   :  { %v3805_v52 = vmul.f32 %v6691_v8, %v3804_v1 }
 0x72c   :  { %v3824_v35 = vmul.f32 %v6693_v51, %v3823_v46 }
 0x72d   :  { %v6695_v33 = vpop.eup %6694  ;;  %v3806_v5 = vadd.f32 %v6691_v8, %v3805_v52 }
 0x72e   :  { %v3825_v60 = vadd.f32 %v6693_v51, %v3824_v35  ;;  %v3842_v14 = vmul.f32 %v6695_v33, %v3840_v9  ;;  %v6697_v12 = vpop.eup %6696  ;;  %vm3847_vm6 = vweird.f32 %v6695_v33 }
 0x72f   :  { %v3810_v54 = vsel %vm3809_vm2, %v6691_v8, %v3806_v5  ;;  %v3852_v8 = vand.u32 2147483648, %v3840_v9  ;;  %vm3848_vm8 = vmor %vm3846_vm7, %vm3847_vm6 }
 0x730   :  { %v3815_v24 = vsel %vm3812_vm3, %v3814_v63, %v3810_v54  ;;  %v3829_v56 = vsel %vm3828_vm13, %v6693_v51, %v3825_v60  ;;  %v3843_v15 = vsub.f32 1.0, %v3842_v14  ;;  %v3850_v51 = vand.u32 2147483647, %v3840_v9  ;;  %v7902_v9 = vld [vmem:[#allocation16_spill] sm:$0xff] }
 0x731   :  { %v3834_v1 = vsel %vm3831_vm4, %v3833_v55, %v3829_v56  ;;  %v3857_v16 = vmul.f32 %v6697_v12, %v3815_v24  ;;  %v3853_v0 = vor.u32 1.1754944e-38, %v3852_v8  ;;  %v3739_v60 = vsel %vm3738_vm11, %v7572_v34, 0.0 }
 0x732   :  { %v3856_v7 = vmul.f32 %v3834_v1, %v3740_v44  ;;  %v3844_v46 = vmul.f32 %v6695_v33, %v3843_v15  ;;  %vm3851_vm9 = vcmp.eq.f32.partialorder %v3850_v51, 8.507059e+37  ;;  %v3287_v34 = vadd.f32 %v7901_v41, %v7550_v2  ;;  %v7903_v1 = vld [vmem:[#allocation18_spill] sm:$0xff] }
 0x734   :  { %v3858_v52 = vadd.f32 %v3857_v16, %v3856_v7  ;;  %v3845_v35 = vadd.f32 %v6695_v33, %v3844_v46  ;;  %v3374_v16 = vadd.f32 %v7903_v1, %v7560_v57 }
 0x736   :  { %6698 = vtanh.f32 %v3858_v52  ;;  %v7623_v47 = vsel %vm3866_vm5, %v3858_v52, %v3740_v44  ;;  %v3849_v10 = vsel %vm3848_vm8, %v6695_v33, %v3845_v35  ;;  %v3316_v33 = vadd.f32 %v7902_v9, %v7552_v59 }
 0x737   :  { %v3854_v5 = vsel %vm3851_vm9, %v3853_v0, %v3849_v10 }
 0x73c   :  { %v6699_v53 = vpop.eup %6698 }
 0x73d   :  { %v3860_v63 = vmul.f32 %v6699_v53, %v3854_v5 }
 0x73f   :  { %v7629_v14 = vsel %vm3866_vm5, %v3860_v63, %v3739_v60 }
 0x740   :  { %v3869_v55 = vpack.c.bf16 %v7629_v14, %v7629_v14 }
 0x742   :  { %3882 = vmatmul.bf16.vlgmr.msra.gmra.mxu0 %v3869_v55  ;;  %3895 = vmatmul.bf16.vlgmr.msra.gmra.mxu1 %v3869_v55 }
 0x743   :  { %3908 = vmatmul.bf16.vlgmr.msra.gmra.mxu2 %v3869_v55  ;;  %3921 = vmatmul.bf16.vlgmr.msra.gmra.mxu3 %v3869_v55  ;;  %v7904_v55 = vld [vmem:[#allocation17_spill] sm:$0xff] }
 0x744   :  { %4130 = vmatpush.bf16.msra.mxu0 %v7264_v32  ;;  %4143 = vmatpush.bf16.msra.mxu1 %v7266_v43  ;;  %v3345_v41 = vadd.f32 %v7904_v55, %v7899_v17 }
 0x745   :  { %4156 = vmatpush.bf16.msra.mxu2 %v7281_v11  ;;  %4169 = vmatpush.bf16.msra.mxu3 %v7274_v23 }
 0x748   :  { %4131 = vmatpush.bf16.msra.mxu0 %v7284_v18  ;;  %4144 = vmatpush.bf16.msra.mxu1 %v7286_v20 }
 0x749   :  { %4157 = vmatpush.bf16.msra.mxu2 %v7303_v58  ;;  %4170 = vmatpush.bf16.msra.mxu3 %v7290_v39 }
 0x74c   :  { %4132 = vmatpush.bf16.msra.mxu0 %v7296_v31  ;;  %4145 = vmatpush.bf16.msra.mxu1 %v7298_v6 }
 0x74d   :  { %4158 = vmatpush.bf16.msra.mxu2 %v7317_v48  ;;  %4171 = vmatpush.bf16.msra.mxu3 %v7301_v28 }
 0x750   :  { %4133 = vmatpush.bf16.msra.mxu0 %v7307_v45  ;;  %4146 = vmatpush.bf16.msra.mxu1 %v7309_v25 }
 0x751   :  { %4159 = vmatpush.bf16.msra.mxu2 %v7333_v30  ;;  %4172 = vmatpush.bf16.msra.mxu3 %v7315_v61 }
 0x754   :  { %4134 = vmatpush.bf16.msra.mxu0 %v7325_v38  ;;  %4147 = vmatpush.bf16.msra.mxu1 %v7327_v40 }
 0x755   :  { %4160 = vmatpush.bf16.msra.mxu2 %v7352_v22  ;;  %4173 = vmatpush.bf16.msra.mxu3 %v7331_v21 }
 0x758   :  { %4135 = vmatpush.bf16.msra.mxu0 %v7341_v4  ;;  %4148 = vmatpush.bf16.msra.mxu1 %v7343_v27 }
 0x759   :  { %4161 = vmatpush.bf16.msra.mxu2 %v7371_v19  ;;  %4174 = vmatpush.bf16.msra.mxu3 %v7350_v26 }
 0x75c   :  { %4136 = vmatpush.bf16.msra.mxu0 %v7364_v36  ;;  %4149 = vmatpush.bf16.msra.mxu1 %v7366_v13 }
 0x75d   :  { %4162 = vmatpush.bf16.msra.mxu2 %v7402_v50  ;;  %4175 = vmatpush.bf16.msra.mxu3 %v7380_v37 }
 0x760   :  { %4137 = vmatpush.bf16.msra.mxu0 %v7386_v3  ;;  %4150 = vmatpush.bf16.msra.mxu1 %v7388_v42 }
 0x761   :  { %4163 = vmatpush.bf16.msra.mxu2 %v7418_v62  ;;  %4176 = vmatpush.bf16.msra.mxu3 %v7411_v29 }
 0x7bf   :  { %v3883_v54 = vpop.f32.mrf.mxu0  ;;  %v3896_v12 = vpop.f32.mrf.mxu1 }
 0x7c0   :  { %v3884_v24 = vadd.f32 %v3883_v54, %v3287_v34  ;;  %v3897_v56 = vadd.f32 %v3896_v12, %v3316_v33 }
 0x7c2   :  { %v6141_v15 = vmul.f32 -1.442695, %v3884_v24  ;;  %v6142_v44 = vmul.f32 -1.442695, %v3897_v56 }
 0x7c4   :  { %6700 = vpow2.f32 %v6141_v15 }
 0x7c5   :  { %6702 = vpow2.f32 %v6142_v44 }
 0x7c6   :  { %v3909_v7 = vpop.f32.mrf.mxu2  ;;  %v3922_v46 = vpop.f32.mrf.mxu3 }
 0x7c7   :  { %v3923_v49 = vadd.f32 %v3922_v46, %v3374_v16  ;;  %v3885_v52 = vpop.f32.mrf.mxu0  ;;  %v3898_v35 = vpop.f32.mrf.mxu1  ;;  %v3910_v33 = vadd.f32 %v3909_v7, %v3345_v41 }
 0x7c9   :  { %v6143_v8 = vmul.f32 -1.442695, %v3923_v49 }
 0x7ca   :  { %v6701_v51 = vpop.eup %6700 }
 0x7cb   :  { %v6703_v10 = vpop.eup %6702  ;;  %v3929_v0 = vadd.f32 1.0, %v6701_v51  ;;  %6704 = vpow2.f32 %v6143_v8 }
 0x7cc   :  { %v3948_v53 = vadd.f32 1.0, %v6703_v10 }
 0x7cd   :  { %6706 = vrcp.f32 %v3929_v0  ;;  %v3941_v44 = vand.u32 2147483648, %v3929_v0  ;;  %v3939_v46 = vand.u32 2147483647, %v3929_v0  ;;  %vm3935_vm12 = vweird.f32 %v3929_v0 }
 0x7ce   :  { %6708 = vrcp.f32 %v3948_v53  ;;  %v3911_v5 = vpop.f32.mrf.mxu2  ;;  %v3924_v63 = vpop.f32.mrf.mxu3  ;;  %v3960_v1 = vand.u32 2147483648, %v3948_v53  ;;  %v3958_v52 = vand.u32 2147483647, %v3948_v53  ;;  %vm3954_vm14 = vweird.f32 %v3948_v53 }
 0x7cf   :  { %v3942_v7 = vor.u32 1.1754944e-38, %v3941_v44  ;;  %vm3940_vm1 = vcmp.eq.f32.partialorder %v3939_v46, 8.507059e+37 }
 0x7d0   :  { %v3961_v5 = vor.u32 1.1754944e-38, %v3960_v1  ;;  %vm3959_vm2 = vcmp.eq.f32.partialorder %v3958_v52, 8.507059e+37 }
 0x7d1   :  { %v6705_v60 = vpop.eup %6704 }
 0x7d2   :  { %v3968_v34 = vadd.f32 1.0, %v6705_v60 }
 0x7d3   :  { %v6707_v9 = vpop.eup %6706 }
 0x7d4   :  { %v6709_v54 = vpop.eup %6708  ;;  %v3931_v12 = vmul.f32 %v6707_v9, %v3929_v0  ;;  %6710 = vrcp.f32 %v3968_v34  ;;  %vm3936_vm10 = vweird.f32 %v6707_v9  ;;  %v3993_v0 = vpop.permute.xlu1 %3992  ;;  %vm3974_vm4 = vweird.f32 %v3968_v34 }
 0x7d5   :  { %v3950_v24 = vmul.f32 %v6709_v54, %v3948_v53  ;;  %6712 = vtanh.f32 %v3910_v33  ;;  %vm3955_vm11 = vweird.f32 %v6709_v54  ;;  %vm3937_vm15 = vmor %vm3935_vm12, %vm3936_vm10  ;;  %vm3994_vm13 = vcmp.eq.s32.totalorder %v3993_v0, 1 }
 0x7d6   :  { %v3932_v56 = vsub.f32 1.0, %v3931_v12  ;;  %vm3956_vm0 = vmor %vm3954_vm14, %vm3955_vm11  ;;  %v3978_v1 = vand.u32 2147483647, %v3968_v34 }
 0x7d7   :  { %v3951_v15 = vsub.f32 1.0, %v3950_v24 }
 0x7d8   :  { %v3933_v16 = vmul.f32 %v6707_v9, %v3932_v56  ;;  %vm3979_vm6 = vcmp.eq.f32.partialorder %v3978_v1, 8.507059e+37 }
 0x7d9   :  { %v3952_v49 = vmul.f32 %v6709_v54, %v3951_v15 }
 0x7da   :  { %v6711_v35 = vpop.eup %6710  ;;  %v3934_v8 = vadd.f32 %v6707_v9, %v3933_v16  ;;  %v3980_v16 = vand.u32 2147483648, %v3968_v34 }
 0x7db   :  { %v3953_v51 = vadd.f32 %v6709_v54, %v3952_v49  ;;  %v3970_v10 = vmul.f32 %v6711_v35, %v3968_v34  ;;  %v6713_v60 = vpop.eup %6712  ;;  %vm3975_vm3 = vweird.f32 %v6711_v35  ;;  %v7906_v34 = vld [vmem:[#allocation20_spill] sm:$0xff] }
 0x7dc   :  { %v3938_v63 = vsel %vm3937_vm15, %v6707_v9, %v3934_v8  ;;  %vm3976_vm5 = vmor %vm3974_vm4, %vm3975_vm3  ;;  %v3981_v46 = vor.u32 1.1754944e-38, %v3980_v16 }
 0x7dd   :  { %v3943_v55 = vsel %vm3940_vm1, %v3942_v7, %v3938_v63  ;;  %v3957_v41 = vsel %vm3956_vm0, %v6709_v54, %v3953_v51  ;;  %v3971_v33 = vsub.f32 1.0, %v3970_v10 }
 0x7de   :  { %v3962_v12 = vsel %vm3959_vm2, %v3961_v5, %v3957_v41  ;;  %v3985_v24 = vmul.f32 %v6713_v60, %v3943_v55 }
 0x7df   :  { %v3984_v56 = vmul.f32 %v3962_v12, %v7623_v47  ;;  %v3972_v15 = vmul.f32 %v6711_v35, %v3971_v33  ;;  %v7907_v33 = vld [vmem:[#allocation22_spill] sm:$0xff] }
 0x7e0   :  { %v3376_v12 = vadd.f32 %v7907_v33, %v7560_v57 }
 0x7e1   :  { %v3986_v53 = vadd.f32 %v3985_v24, %v3984_v56  ;;  %v3973_v44 = vadd.f32 %v6711_v35, %v3972_v15 }
 0x7e3   :  { %6714 = vtanh.f32 %v3986_v53  ;;  %v7675_v9 = vsel %vm3994_vm13, %v3986_v53, %v7623_v47  ;;  %v3977_v54 = vsel %vm3976_vm5, %v6711_v35, %v3973_v44  ;;  %v7905_v47 = vld [vmem:[#allocation19_spill] sm:$0xff]  ;;  %v3318_v35 = vadd.f32 %v7906_v34, %v7552_v59 }
 0x7e4   :  { %v3982_v52 = vsel %vm3979_vm6, %v3981_v46, %v3977_v54 }
 0x7e9   :  { %v6715_v49 = vpop.eup %6714 }
 0x7ea   :  { %v3988_v8 = vmul.f32 %v6715_v49, %v3982_v52 }
 0x7ec   :  { %v7678_v7 = vsel %vm3994_vm13, %v3988_v8, %v7629_v14  ;;  %v3289_v14 = vadd.f32 %v7905_v47, %v7550_v2 }
 0x7ed   :  { %v3997_v51 = vpack.c.bf16 %v7678_v7, %v7678_v7 }
 0x7ef   :  { %4010 = vmatmul.bf16.vlgmr.msrb.gmra.mxu0 %v3997_v51  ;;  %4023 = vmatmul.bf16.vlgmr.msrb.gmra.mxu1 %v3997_v51 }
 0x7f0   :  { %4036 = vmatmul.bf16.vlgmr.msrb.gmra.mxu2 %v3997_v51  ;;  %4049 = vmatmul.bf16.vlgmr.msrb.gmra.mxu3 %v3997_v51  ;;  %v7908_v51 = vld [vmem:[#allocation21_spill] sm:$0xff] }
 0x7f1   :  { %4258 = vmatpush.bf16.msrb.mxu0 %v7264_v32  ;;  %4271 = vmatpush.bf16.msrb.mxu1 %v7266_v43  ;;  %v3347_v47 = vadd.f32 %v7908_v51, %v7899_v17 }
 0x7f2   :  { %4284 = vmatpush.bf16.msrb.mxu2 %v7281_v11  ;;  %4297 = vmatpush.bf16.msrb.mxu3 %v7274_v23 }
 0x7f5   :  { %4259 = vmatpush.bf16.msrb.mxu0 %v7284_v18  ;;  %4272 = vmatpush.bf16.msrb.mxu1 %v7286_v20 }
 0x7f6   :  { %4285 = vmatpush.bf16.msrb.mxu2 %v7303_v58  ;;  %4298 = vmatpush.bf16.msrb.mxu3 %v7290_v39 }
 0x7f9   :  { %4260 = vmatpush.bf16.msrb.mxu0 %v7296_v31  ;;  %4273 = vmatpush.bf16.msrb.mxu1 %v7298_v6 }
 0x7fa   :  { %4286 = vmatpush.bf16.msrb.mxu2 %v7317_v48  ;;  %4299 = vmatpush.bf16.msrb.mxu3 %v7301_v28 }
 0x7fd   :  { %4261 = vmatpush.bf16.msrb.mxu0 %v7307_v45  ;;  %4274 = vmatpush.bf16.msrb.mxu1 %v7309_v25 }
 0x7fe   :  { %4287 = vmatpush.bf16.msrb.mxu2 %v7333_v30  ;;  %4300 = vmatpush.bf16.msrb.mxu3 %v7315_v61 }
 0x801   :  { %4262 = vmatpush.bf16.msrb.mxu0 %v7325_v38  ;;  %4275 = vmatpush.bf16.msrb.mxu1 %v7327_v40 }
 0x802   :  { %4288 = vmatpush.bf16.msrb.mxu2 %v7352_v22  ;;  %4301 = vmatpush.bf16.msrb.mxu3 %v7331_v21 }
 0x805   :  { %4263 = vmatpush.bf16.msrb.mxu0 %v7341_v4  ;;  %4276 = vmatpush.bf16.msrb.mxu1 %v7343_v27 }
 0x806   :  { %4289 = vmatpush.bf16.msrb.mxu2 %v7371_v19  ;;  %4302 = vmatpush.bf16.msrb.mxu3 %v7350_v26 }
 0x809   :  { %4264 = vmatpush.bf16.msrb.mxu0 %v7364_v36  ;;  %4277 = vmatpush.bf16.msrb.mxu1 %v7366_v13 }
 0x80a   :  { %4290 = vmatpush.bf16.msrb.mxu2 %v7402_v50  ;;  %4303 = vmatpush.bf16.msrb.mxu3 %v7380_v37 }
 0x80d   :  { %4265 = vmatpush.bf16.msrb.mxu0 %v7386_v3  ;;  %4278 = vmatpush.bf16.msrb.mxu1 %v7388_v42 }
 0x80e   :  { %4291 = vmatpush.bf16.msrb.mxu2 %v7418_v62  ;;  %4304 = vmatpush.bf16.msrb.mxu3 %v7411_v29 }
 0x86c   :  { %v4011_v10 = vpop.f32.mrf.mxu0  ;;  %v4024_v5 = vpop.f32.mrf.mxu1 }
 0x86d   :  { %v4012_v63 = vadd.f32 %v4011_v10, %v3289_v14  ;;  %v4025_v60 = vadd.f32 %v4024_v5, %v3318_v35 }
 0x86f   :  { %v6144_v55 = vmul.f32 -1.442695, %v4012_v63  ;;  %v6145_v41 = vmul.f32 -1.442695, %v4025_v60 }
 0x871   :  { %6716 = vpow2.f32 %v6144_v55 }
 0x872   :  { %6718 = vpow2.f32 %v6145_v41 }
 0x873   :  { %v4037_v24 = vpop.f32.mrf.mxu2  ;;  %v4050_v56 = vpop.f32.mrf.mxu3 }
 0x874   :  { %v4051_v15 = vadd.f32 %v4050_v56, %v3376_v12  ;;  %v4013_v0 = vpop.f32.mrf.mxu0  ;;  %v4026_v53 = vpop.f32.mrf.mxu1  ;;  %v4038_v35 = vadd.f32 %v4037_v24, %v3347_v47 }
 0x876   :  { %v6146_v44 = vmul.f32 -1.442695, %v4051_v15 }
 0x877   :  { %v6717_v16 = vpop.eup %6716 }
 0x878   :  { %v6719_v1 = vpop.eup %6718  ;;  %v4057_v54 = vadd.f32 1.0, %v6717_v16  ;;  %6720 = vpow2.f32 %v6146_v44 }
 0x879   :  { %v4076_v46 = vadd.f32 1.0, %v6719_v1 }
 0x87a   :  { %6722 = vrcp.f32 %v4057_v54  ;;  %v4069_v41 = vand.u32 2147483648, %v4057_v54  ;;  %v4067_v56 = vand.u32 2147483647, %v4057_v54  ;;  %vm4063_vm9 = vweird.f32 %v4057_v54 }
 0x87b   :  { %6724 = vrcp.f32 %v4076_v46  ;;  %v4039_v49 = vpop.f32.mrf.mxu2  ;;  %v4052_v52 = vpop.f32.mrf.mxu3  ;;  %v4088_v33 = vand.u32 2147483648, %v4076_v46  ;;  %v4086_v0 = vand.u32 2147483647, %v4076_v46  ;;  %vm4082_vm10 = vweird.f32 %v4076_v46 }
 0x87c   :  { %v4070_v24 = vor.u32 1.1754944e-38, %v4069_v41  ;;  %vm4068_vm14 = vcmp.eq.f32.partialorder %v4067_v56, 8.507059e+37 }
 0x87d   :  { %v4089_v49 = vor.u32 1.1754944e-38, %v4088_v33  ;;  %vm4087_vm15 = vcmp.eq.f32.partialorder %v4086_v0, 8.507059e+37 }
 0x87e   :  { %v6721_v8 = vpop.eup %6720 }
 0x87f   :  { %v4096_v14 = vadd.f32 1.0, %v6721_v8 }
 0x880   :  { %v6723_v34 = vpop.eup %6722 }
 0x881   :  { %v6725_v10 = vpop.eup %6724  ;;  %v4059_v5 = vmul.f32 %v6723_v34, %v4057_v54  ;;  %6726 = vrcp.f32 %v4096_v14  ;;  %vm4064_vm7 = vweird.f32 %v6723_v34  ;;  %v4121_v54 = vpop.permute.xlu2 %4120  ;;  %vm4102_vm2 = vweird.f32 %v4096_v14 }
 0x882   :  { %v4078_v63 = vmul.f32 %v6725_v10, %v4076_v46  ;;  %6728 = vtanh.f32 %v4038_v35  ;;  %vm4083_vm8 = vweird.f32 %v6725_v10  ;;  %vm4065_vm11 = vmor %vm4063_vm9, %vm4064_vm7  ;;  %vm4122_vm0 = vcmp.eq.s32.totalorder %v4121_v54, 1 }
 0x883   :  { %v4060_v60 = vsub.f32 1.0, %v4059_v5  ;;  %vm4084_vm12 = vmor %vm4082_vm10, %vm4083_vm8  ;;  %v4106_v33 = vand.u32 2147483647, %v4096_v14 }
 0x884   :  { %v4079_v55 = vsub.f32 1.0, %v4078_v63 }
 0x885   :  { %v4061_v12 = vmul.f32 %v6723_v34, %v4060_v60  ;;  %vm4107_vm3 = vcmp.eq.f32.partialorder %v4106_v33, 8.507059e+37 }
 0x886   :  { %v4080_v15 = vmul.f32 %v6725_v10, %v4079_v55 }
 0x887   :  { %v6727_v53 = vpop.eup %6726  ;;  %v4062_v44 = vadd.f32 %v6723_v34, %v4061_v12  ;;  %v4108_v12 = vand.u32 2147483648, %v4096_v14 }
 0x888   :  { %v4081_v16 = vadd.f32 %v6725_v10, %v4080_v15  ;;  %v4098_v1 = vmul.f32 %v6727_v53, %v4096_v14  ;;  %v6729_v8 = vpop.eup %6728  ;;  %vm4103_vm1 = vweird.f32 %v6727_v53  ;;  %v7910_v14 = vld [vmem:[#allocation24_spill] sm:$0xff] }
 0x889   :  { %v4066_v52 = vsel %vm4065_vm11, %v6723_v34, %v4062_v44  ;;  %vm4104_vm13 = vmor %vm4102_vm2, %vm4103_vm1  ;;  %v4109_v56 = vor.u32 1.1754944e-38, %v4108_v12 }
 0x88a   :  { %v4071_v51 = vsel %vm4068_vm14, %v4070_v24, %v4066_v52  ;;  %v4085_v47 = vsel %vm4084_vm12, %v6725_v10, %v4081_v16  ;;  %v4099_v35 = vsub.f32 1.0, %v4098_v1 }
 0x88b   :  { %v4090_v5 = vsel %vm4087_vm15, %v4089_v49, %v4085_v47  ;;  %v4113_v63 = vmul.f32 %v6729_v8, %v4071_v51 }
 0x88c   :  { %v4112_v60 = vmul.f32 %v4090_v5, %v7675_v9  ;;  %v4100_v55 = vmul.f32 %v6727_v53, %v4099_v35  ;;  %v7911_v35 = vld [vmem:[#allocation26_spill] sm:$0xff] }
 0x88d   :  { %v3379_v5 = vadd.f32 %v7911_v35, %v7560_v57 }
 0x88e   :  { %v4114_v46 = vadd.f32 %v4113_v63, %v4112_v60  ;;  %v4101_v41 = vadd.f32 %v6727_v53, %v4100_v55 }
 0x890   :  { %6730 = vtanh.f32 %v4114_v46  ;;  %v7724_v34 = vsel %vm4122_vm0, %v4114_v46, %v7675_v9  ;;  %v4105_v10 = vsel %vm4104_vm13, %v6727_v53, %v4101_v41  ;;  %v7909_v9 = vld [vmem:[#allocation23_spill] sm:$0xff]  ;;  %v3321_v53 = vadd.f32 %v7910_v14, %v7552_v59 }
 0x891   :  { %v4110_v0 = vsel %vm4107_vm3, %v4109_v56, %v4105_v10 }
 0x896   :  { %v6731_v15 = vpop.eup %6730 }
 0x897   :  { %v4116_v44 = vmul.f32 %v6731_v15, %v4110_v0 }
 0x899   :  { %v7727_v24 = vsel %vm4122_vm0, %v4116_v44, %v7678_v7  ;;  %v3292_v7 = vadd.f32 %v7909_v9, %v7550_v2 }
 0x89a   :  { %v4125_v16 = vpack.c.bf16 %v7727_v24, %v7727_v24 }
 0x89c   :  { %4138 = vmatmul.bf16.vlgmr.msra.gmra.mxu0 %v4125_v16  ;;  %4151 = vmatmul.bf16.vlgmr.msra.gmra.mxu1 %v4125_v16 }
 0x89d   :  { %4164 = vmatmul.bf16.vlgmr.msra.gmra.mxu2 %v4125_v16  ;;  %4177 = vmatmul.bf16.vlgmr.msra.gmra.mxu3 %v4125_v16  ;;  %v7912_v16 = vld [vmem:[#allocation25_spill] sm:$0xff] }
 0x89e   :  { %4386 = vmatpush.bf16.msra.mxu0 %v7264_v32  ;;  %4399 = vmatpush.bf16.msra.mxu1 %v7266_v43  ;;  %v3350_v9 = vadd.f32 %v7912_v16, %v7899_v17 }
 0x89f   :  { %4412 = vmatpush.bf16.msra.mxu2 %v7281_v11  ;;  %4425 = vmatpush.bf16.msra.mxu3 %v7274_v23 }
 0x8a2   :  { %4387 = vmatpush.bf16.msra.mxu0 %v7284_v18  ;;  %4400 = vmatpush.bf16.msra.mxu1 %v7286_v20 }
 0x8a3   :  { %4413 = vmatpush.bf16.msra.mxu2 %v7303_v58  ;;  %4426 = vmatpush.bf16.msra.mxu3 %v7290_v39 }
 0x8a6   :  { %4388 = vmatpush.bf16.msra.mxu0 %v7296_v31  ;;  %4401 = vmatpush.bf16.msra.mxu1 %v7298_v6 }
 0x8a7   :  { %4414 = vmatpush.bf16.msra.mxu2 %v7317_v48  ;;  %4427 = vmatpush.bf16.msra.mxu3 %v7301_v28 }
 0x8aa   :  { %4389 = vmatpush.bf16.msra.mxu0 %v7307_v45  ;;  %4402 = vmatpush.bf16.msra.mxu1 %v7309_v25 }
 0x8ab   :  { %4415 = vmatpush.bf16.msra.mxu2 %v7333_v30  ;;  %4428 = vmatpush.bf16.msra.mxu3 %v7315_v61 }
 0x8ae   :  { %4390 = vmatpush.bf16.msra.mxu0 %v7325_v38  ;;  %4403 = vmatpush.bf16.msra.mxu1 %v7327_v40 }
 0x8af   :  { %4416 = vmatpush.bf16.msra.mxu2 %v7352_v22  ;;  %4429 = vmatpush.bf16.msra.mxu3 %v7331_v21 }
 0x8b2   :  { %4391 = vmatpush.bf16.msra.mxu0 %v7341_v4  ;;  %4404 = vmatpush.bf16.msra.mxu1 %v7343_v27 }
 0x8b3   :  { %4417 = vmatpush.bf16.msra.mxu2 %v7371_v19  ;;  %4430 = vmatpush.bf16.msra.mxu3 %v7350_v26 }
 0x8b6   :  { %4392 = vmatpush.bf16.msra.mxu0 %v7364_v36  ;;  %4405 = vmatpush.bf16.msra.mxu1 %v7366_v13 }
 0x8b7   :  { %4418 = vmatpush.bf16.msra.mxu2 %v7402_v50  ;;  %4431 = vmatpush.bf16.msra.mxu3 %v7380_v37 }
 0x8ba   :  { %4393 = vmatpush.bf16.msra.mxu0 %v7386_v3  ;;  %4406 = vmatpush.bf16.msra.mxu1 %v7388_v42 }
 0x8bb   :  { %4419 = vmatpush.bf16.msra.mxu2 %v7418_v62  ;;  %4432 = vmatpush.bf16.msra.mxu3 %v7411_v29 }
 0x919   :  { %v4139_v1 = vpop.f32.mrf.mxu0  ;;  %v4152_v49 = vpop.f32.mrf.mxu1 }
 0x91a   :  { %v4140_v52 = vadd.f32 %v4139_v1, %v3292_v7  ;;  %v4153_v8 = vadd.f32 %v4152_v49, %v3321_v53 }
 0x91c   :  { %v6147_v51 = vmul.f32 -1.442695, %v4140_v52  ;;  %v6148_v47 = vmul.f32 -1.442695, %v4153_v8 }
 0x91e   :  { %6732 = vpow2.f32 %v6147_v51 }
 0x91f   :  { %6734 = vpow2.f32 %v6148_v47 }
 0x920   :  { %v4165_v63 = vpop.f32.mrf.mxu2  ;;  %v4178_v60 = vpop.f32.mrf.mxu3 }
 0x921   :  { %v4179_v55 = vadd.f32 %v4178_v60, %v3379_v5  ;;  %v4141_v54 = vpop.f32.mrf.mxu0  ;;  %v4154_v46 = vpop.f32.mrf.mxu1  ;;  %v4166_v53 = vadd.f32 %v4165_v63, %v3350_v9 }
 0x923   :  { %v6149_v41 = vmul.f32 -1.442695, %v4179_v55 }
 0x924   :  { %v6733_v12 = vpop.eup %6732 }
 0x925   :  { %v6735_v33 = vpop.eup %6734  ;;  %v4185_v10 = vadd.f32 1.0, %v6733_v12  ;;  %6736 = vpow2.f32 %v6149_v41 }
 0x926   :  { %v4204_v56 = vadd.f32 1.0, %v6735_v33 }
 0x927   :  { %6738 = vrcp.f32 %v4185_v10  ;;  %v4197_v47 = vand.u32 2147483648, %v4185_v10  ;;  %v4195_v60 = vand.u32 2147483647, %v4185_v10  ;;  %vm4191_vm6 = vweird.f32 %v4185_v10 }
 0x928   :  { %6740 = vrcp.f32 %v4204_v56  ;;  %v4167_v15 = vpop.f32.mrf.mxu2  ;;  %v4180_v0 = vpop.f32.mrf.mxu3  ;;  %v4216_v35 = vand.u32 2147483648, %v4204_v56  ;;  %v4214_v54 = vand.u32 2147483647, %v4204_v56  ;;  %vm4210_vm7 = vweird.f32 %v4204_v56 }
 0x929   :  { %v4198_v63 = vor.u32 1.1754944e-38, %v4197_v47  ;;  %vm4196_vm10 = vcmp.eq.f32.partialorder %v4195_v60, 8.507059e+37 }
 0x92a   :  { %v4217_v15 = vor.u32 1.1754944e-38, %v4216_v35  ;;  %vm4215_vm11 = vcmp.eq.f32.partialorder %v4214_v54, 8.507059e+37 }
 0x92b   :  { %v6737_v44 = vpop.eup %6736 }
 0x92c   :  { %v4224_v7 = vadd.f32 1.0, %v6737_v44 }
 0x92d   :  { %v6739_v14 = vpop.eup %6738 }
 0x92e   :  { %v6741_v1 = vpop.eup %6740  ;;  %v4187_v49 = vmul.f32 %v6739_v14, %v4185_v10  ;;  %6742 = vrcp.f32 %v4224_v7  ;;  %vm4192_vm4 = vweird.f32 %v6739_v14  ;;  %v4249_v10 = vpop.permute.xlu0 %4248  ;;  %vm4230_vm15 = vweird.f32 %v4224_v7 }
 0x92f   :  { %v4206_v52 = vmul.f32 %v6741_v1, %v4204_v56  ;;  %6744 = vtanh.f32 %v4166_v53  ;;  %vm4211_vm5 = vweird.f32 %v6741_v1  ;;  %vm4193_vm8 = vmor %vm4191_vm6, %vm4192_vm4  ;;  %vm4250_vm12 = vcmp.eq.s32.totalorder %v4249_v10, 1 }
 0x930   :  { %v4188_v8 = vsub.f32 1.0, %v4187_v49  ;;  %vm4212_vm9 = vmor %vm4210_vm7, %vm4211_vm5  ;;  %v4234_v35 = vand.u32 2147483647, %v4224_v7 }
 0x931   :  { %v4207_v51 = vsub.f32 1.0, %v4206_v52 }
 0x932   :  { %v4189_v5 = vmul.f32 %v6739_v14, %v4188_v8  ;;  %vm4235_vm1 = vcmp.eq.f32.partialorder %v4234_v35, 8.507059e+37 }
 0x933   :  { %v4208_v55 = vmul.f32 %v6741_v1, %v4207_v51 }
 0x934   :  { %v6743_v46 = vpop.eup %6742  ;;  %v4190_v41 = vadd.f32 %v6739_v14, %v4189_v5  ;;  %v4236_v5 = vand.u32 2147483648, %v4224_v7 }
 0x935   :  { %v4209_v12 = vadd.f32 %v6741_v1, %v4208_v55  ;;  %v4226_v33 = vmul.f32 %v6743_v46, %v4224_v7  ;;  %v6745_v44 = vpop.eup %6744  ;;  %vm4231_vm14 = vweird.f32 %v6743_v46 }
 0x936   :  { %v4194_v0 = vsel %vm4193_vm8, %v6739_v14, %v4190_v41  ;;  %vm4232_vm0 = vmor %vm4230_vm15, %vm4231_vm14  ;;  %v4237_v60 = vor.u32 1.1754944e-38, %v4236_v5 }
 0x937   :  { %v4199_v16 = vsel %vm4196_vm10, %v4198_v63, %v4194_v0  ;;  %v4213_v9 = vsel %vm4212_vm9, %v6741_v1, %v4209_v12  ;;  %v4227_v53 = vsub.f32 1.0, %v4226_v33 }
 0x938   :  { %v4218_v49 = vsel %vm4215_vm11, %v4217_v15, %v4213_v9  ;;  %v4241_v52 = vmul.f32 %v6745_v44, %v4199_v16 }
 0x939   :  { %v4240_v8 = vmul.f32 %v4218_v49, %v7724_v34  ;;  %v4228_v51 = vmul.f32 %v6743_v46, %v4227_v53 }
 0x93b   :  { %v4242_v56 = vadd.f32 %v4241_v52, %v4240_v8  ;;  %v4229_v47 = vadd.f32 %v6743_v46, %v4228_v51 }
 0x93d   :  { %6746 = vtanh.f32 %v4242_v56  ;;  %v7773_v14 = vsel %vm4250_vm12, %v4242_v56, %v7724_v34  ;;  %v4233_v1 = vsel %vm4232_vm0, %v6743_v46, %v4229_v47 }
 0x93e   :  { %v4238_v54 = vsel %vm4235_vm1, %v4237_v60, %v4233_v1 }
 0x943   :  { %v6747_v55 = vpop.eup %6746 }
 0x944   :  { %v4244_v41 = vmul.f32 %v6747_v55, %v4238_v54  ;;  %v4377_v55 = vpop.permute.xlu1 %4376 }
 0x945   :  { %vm4378_vm9 = vcmp.eq.s32.totalorder %v4377_v55, 1 }
 0x946   :  { %v7776_v63 = vsel %vm4250_vm12, %v4244_v41, %v7727_v24 }
 0x947   :  { %v4253_v12 = vpack.c.bf16 %v7776_v63, %v7776_v63 }
 0x949   :  { %4266 = vmatmul.bf16.vlgmr.msrb.gmra.mxu0 %v4253_v12  ;;  %4279 = vmatmul.bf16.vlgmr.msrb.gmra.mxu1 %v4253_v12 }
 0x94a   :  { %4292 = vmatmul.bf16.vlgmr.msrb.gmra.mxu2 %v4253_v12  ;;  %4305 = vmatmul.bf16.vlgmr.msrb.gmra.mxu3 %v4253_v12 }
 0x94b   :  { %4514 = vmatpush.bf16.msrb.mxu0 %v7264_v32  ;;  %4527 = vmatpush.bf16.msrb.mxu1 %v7266_v43  ;;  %v7913_v32 = vld [vmem:[#allocation27_spill] sm:$0xff] }
 0x94c   :  { %4540 = vmatpush.bf16.msrb.mxu2 %v7281_v11  ;;  %4553 = vmatpush.bf16.msrb.mxu3 %v7274_v23  ;;  %v3294_v43 = vadd.f32 %v7913_v32, %v7550_v2  ;;  %v7914_v23 = vld [vmem:[#allocation28_spill] sm:$0xff] }
 0x94d   :  { %v3323_v11 = vadd.f32 %v7914_v23, %v7552_v59 }
 0x94f   :  { %4515 = vmatpush.bf16.msrb.mxu0 %v7284_v18  ;;  %4528 = vmatpush.bf16.msrb.mxu1 %v7286_v20 }
 0x950   :  { %4541 = vmatpush.bf16.msrb.mxu2 %v7303_v58  ;;  %4554 = vmatpush.bf16.msrb.mxu3 %v7290_v39  ;;  %v7915_v58 = vld [vmem:[#allocation30_spill] sm:$0xff] }
 0x953   :  { %4516 = vmatpush.bf16.msrb.mxu0 %v7296_v31  ;;  %4529 = vmatpush.bf16.msrb.mxu1 %v7298_v6 }
 0x954   :  { %4542 = vmatpush.bf16.msrb.mxu2 %v7317_v48  ;;  %4555 = vmatpush.bf16.msrb.mxu3 %v7301_v28 }
 0x957   :  { %4517 = vmatpush.bf16.msrb.mxu0 %v7307_v45  ;;  %4530 = vmatpush.bf16.msrb.mxu1 %v7309_v25  ;;  %v3381_v45 = vadd.f32 %v7915_v58, %v7560_v57 }
 0x958   :  { %4543 = vmatpush.bf16.msrb.mxu2 %v7333_v30  ;;  %4556 = vmatpush.bf16.msrb.mxu3 %v7315_v61 }
 0x95b   :  { %4518 = vmatpush.bf16.msrb.mxu0 %v7325_v38  ;;  %4531 = vmatpush.bf16.msrb.mxu1 %v7327_v40 }
 0x95c   :  { %4544 = vmatpush.bf16.msrb.mxu2 %v7352_v22  ;;  %4557 = vmatpush.bf16.msrb.mxu3 %v7331_v21 }
 0x95f   :  { %4519 = vmatpush.bf16.msrb.mxu0 %v7341_v4  ;;  %4532 = vmatpush.bf16.msrb.mxu1 %v7343_v27 }
 0x960   :  { %4545 = vmatpush.bf16.msrb.mxu2 %v7371_v19  ;;  %4558 = vmatpush.bf16.msrb.mxu3 %v7350_v26  ;;  %v7916_v19 = vld [vmem:[#allocation29_spill] sm:$0xff] }
 0x963   :  { %4520 = vmatpush.bf16.msrb.mxu0 %v7364_v36  ;;  %4533 = vmatpush.bf16.msrb.mxu1 %v7366_v13 }
 0x964   :  { %4546 = vmatpush.bf16.msrb.mxu2 %v7402_v50  ;;  %4559 = vmatpush.bf16.msrb.mxu3 %v7380_v37  ;;  %v3352_v37 = vadd.f32 %v7916_v19, %v7899_v17 }
 0x967   :  { %4521 = vmatpush.bf16.msrb.mxu0 %v7386_v3  ;;  %4534 = vmatpush.bf16.msrb.mxu1 %v7388_v42 }
 0x968   :  { %4547 = vmatpush.bf16.msrb.mxu2 %v7418_v62  ;;  %4560 = vmatpush.bf16.msrb.mxu3 %v7411_v29 }
 0x9c6   :  { %v4267_v18 = vpop.f32.mrf.mxu0  ;;  %v4280_v20 = vpop.f32.mrf.mxu1 }
 0x9c7   :  { %v4268_v39 = vadd.f32 %v4267_v18, %v3294_v43  ;;  %v4281_v31 = vadd.f32 %v4280_v20, %v3323_v11 }
 0x9c9   :  { %v6150_v6 = vmul.f32 -1.442695, %v4268_v39  ;;  %v6151_v28 = vmul.f32 -1.442695, %v4281_v31 }
 0x9cb   :  { %6748 = vpow2.f32 %v6150_v6 }
 0x9cc   :  { %6750 = vpow2.f32 %v6151_v28 }
 0x9cd   :  { %v4293_v25 = vpop.f32.mrf.mxu2  ;;  %v4306_v61 = vpop.f32.mrf.mxu3 }
 0x9ce   :  { %v4307_v48 = vadd.f32 %v4306_v61, %v3381_v45  ;;  %v4269_v38 = vpop.f32.mrf.mxu0  ;;  %v4282_v40 = vpop.f32.mrf.mxu1  ;;  %v4294_v50 = vadd.f32 %v4293_v25, %v3352_v37  ;;  %v7918_v25 = vld [vmem:[#allocation32_spill] sm:$0xff] }
 0x9cf   :  { %v3326_v61 = vadd.f32 %v7918_v25, %v7552_v59 }
 0x9d0   :  { %v6152_v21 = vmul.f32 -1.442695, %v4307_v48 }
 0x9d1   :  { %v6749_v30 = vpop.eup %6748 }
 0x9d2   :  { %v6751_v4 = vpop.eup %6750  ;;  %v4313_v27 = vadd.f32 1.0, %v6749_v30  ;;  %6752 = vpow2.f32 %v6152_v21 }
 0x9d3   :  { %v4332_v26 = vadd.f32 1.0, %v6751_v4  ;;  %v7919_v4 = vld [vmem:[#allocation34_spill] sm:$0xff] }
 0x9d4   :  { %6754 = vrcp.f32 %v4313_v27  ;;  %v4325_v46 = vand.u32 2147483648, %v4313_v27  ;;  %v4323_v0 = vand.u32 2147483647, %v4313_v27  ;;  %vm4319_vm3 = vweird.f32 %v4313_v27 }
 0x9d5   :  { %6756 = vrcp.f32 %v4332_v26  ;;  %v4295_v22 = vpop.f32.mrf.mxu2  ;;  %v4308_v36 = vpop.f32.mrf.mxu3  ;;  %v4344_v33 = vand.u32 2147483648, %v4332_v26  ;;  %v4342_v16 = vand.u32 2147483647, %v4332_v26  ;;  %vm4338_vm4 = vweird.f32 %v4332_v26 }
 0x9d6   :  { %v4326_v49 = vor.u32 1.1754944e-38, %v4325_v46  ;;  %vm4324_vm7 = vcmp.eq.f32.partialorder %v4323_v0, 8.507059e+37 }
 0x9d7   :  { %v4345_v51 = vor.u32 1.1754944e-38, %v4344_v33  ;;  %vm4343_vm8 = vcmp.eq.f32.partialorder %v4342_v16, 8.507059e+37 }
 0x9d8   :  { %v6753_v13 = vpop.eup %6752 }
 0x9d9   :  { %v4352_v3 = vadd.f32 1.0, %v6753_v13 }
 0x9da   :  { %v6755_v42 = vpop.eup %6754 }
 0x9db   :  { %v6757_v29 = vpop.eup %6756  ;;  %v4315_v62 = vmul.f32 %v6755_v42, %v4313_v27  ;;  %6758 = vrcp.f32 %v4352_v3  ;;  %vm4320_vm2 = vweird.f32 %v6755_v42  ;;  %v4364_v43 = vand.u32 2147483648, %v4352_v3 }
 0x9dc   :  { %v4334_v34 = vmul.f32 %v6757_v29, %v4332_v26  ;;  %6760 = vtanh.f32 %v4294_v50  ;;  %vm4339_vm13 = vweird.f32 %v6757_v29  ;;  %vm4321_vm5 = vmor %vm4319_vm3, %vm4320_vm2  ;;  %vm4358_vm11 = vweird.f32 %v4352_v3 }
 0x9dd   :  { %v4316_v24 = vsub.f32 1.0, %v4315_v62  ;;  %vm4340_vm6 = vmor %vm4338_vm4, %vm4339_vm13  ;;  %v4362_v11 = vand.u32 2147483647, %v4352_v3  ;;  %v4365_v20 = vor.u32 1.1754944e-38, %v4364_v43  ;;  %v3384_v27 = vadd.f32 %v7919_v4, %v7560_v57 }
 0x9de   :  { %v4335_v7 = vsub.f32 1.0, %v4334_v34 }
 0x9df   :  { %v4317_v15 = vmul.f32 %v6755_v42, %v4316_v24  ;;  %vm4363_vm14 = vcmp.eq.f32.partialorder %v4362_v11, 8.507059e+37 }
 0x9e0   :  { %v4336_v44 = vmul.f32 %v6757_v29, %v4335_v7  ;;  %v7920_v7 = vld [vmem:[#allocation33_spill] sm:$0xff] }
 0x9e1   :  { %v6759_v9 = vpop.eup %6758  ;;  %v4318_v53 = vadd.f32 %v6755_v42, %v4317_v15  ;;  %v3355_v46 = vadd.f32 %v7920_v7, %v7899_v17 }
 0x9e2   :  { %v4337_v52 = vadd.f32 %v6757_v29, %v4336_v44  ;;  %v4354_v8 = vmul.f32 %v6759_v9, %v4352_v3  ;;  %v6761_v56 = vpop.eup %6760  ;;  %vm4359_vm10 = vweird.f32 %v6759_v9 }
 0x9e3   :  { %v4322_v10 = vsel %vm4321_vm5, %v6755_v42, %v4318_v53  ;;  %vm4360_vm12 = vmor %vm4358_vm11, %vm4359_vm10 }
 0x9e4   :  { %v4327_v47 = vsel %vm4324_vm7, %v4326_v49, %v4322_v10  ;;  %v4341_v5 = vsel %vm4340_vm6, %v6757_v29, %v4337_v52  ;;  %v4355_v35 = vsub.f32 1.0, %v4354_v8 }
 0x9e5   :  { %v4346_v1 = vsel %vm4343_vm8, %v4345_v51, %v4341_v5  ;;  %v4369_v60 = vmul.f32 %v6761_v56, %v4327_v47 }
 0x9e6   :  { %v4368_v54 = vmul.f32 %v4346_v1, %v7773_v14  ;;  %v4356_v41 = vmul.f32 %v6759_v9, %v4355_v35 }
 0x9e8   :  { %v4370_v12 = vadd.f32 %v4369_v60, %v4368_v54  ;;  %v4357_v32 = vadd.f32 %v6759_v9, %v4356_v41 }
 0x9ea   :  { %6762 = vtanh.f32 %v4370_v12  ;;  %v7822_v23 = vsel %vm4378_vm9, %v4370_v12, %v7773_v14  ;;  %v4361_v18 = vsel %vm4360_vm12, %v6759_v9, %v4357_v32  ;;  %v7917_v14 = vld [vmem:[#allocation31_spill] sm:$0xff] }
 0x9eb   :  { %v4366_v31 = vsel %vm4363_vm14, %v4365_v20, %v4361_v18  ;;  %v3297_v45 = vadd.f32 %v7917_v14, %v7550_v2 }
 0x9f0   :  { %v6763_v39 = vpop.eup %6762 }
 0x9f1   :  { %v4372_v6 = vmul.f32 %v6763_v39, %v4366_v31  ;;  %v4505_v39 = vpop.permute.xlu2 %4504 }
 0x9f2   :  { %vm4506_vm6 = vcmp.eq.s32.totalorder %v4505_v39, 1 }
 0x9f3   :  { %v7825_v28 = vsel %vm4378_vm9, %v4372_v6, %v7776_v63 }
 0x9f4   :  { %v4381_v58 = vpack.c.bf16 %v7825_v28, %v7825_v28 }
 0x9f6   :  { %4394 = vmatmul.bf16.vlgmr.msra.gmra.mxu0 %v4381_v58  ;;  %4407 = vmatmul.bf16.vlgmr.msra.gmra.mxu1 %v4381_v58 }
 0x9f7   :  { %4420 = vmatmul.bf16.vlgmr.msra.gmra.mxu2 %v4381_v58  ;;  %4433 = vmatmul.bf16.vlgmr.msra.gmra.mxu3 %v4381_v58 }
 0xa73   :  { %v4395_v48 = vpop.f32.mrf.mxu0  ;;  %v4408_v38 = vpop.f32.mrf.mxu1 }
 0xa74   :  { %v4396_v40 = vadd.f32 %v4395_v48, %v3297_v45  ;;  %v4409_v21 = vadd.f32 %v4408_v38, %v3326_v61 }
 0xa76   :  { %v6153_v30 = vmul.f32 -1.442695, %v4396_v40  ;;  %v6154_v63 = vmul.f32 -1.442695, %v4409_v21 }
 0xa78   :  { %6764 = vpow2.f32 %v6153_v30 }
 0xa79   :  { %6766 = vpow2.f32 %v6154_v63 }
 0xa7a   :  { %v4421_v26 = vpop.f32.mrf.mxu2  ;;  %v4434_v22 = vpop.f32.mrf.mxu3 }
 0xa7b   :  { %v4435_v36 = vadd.f32 %v4434_v22, %v3384_v27  ;;  %v4397_v13 = vpop.f32.mrf.mxu0  ;;  %v4410_v19 = vpop.f32.mrf.mxu1  ;;  %v4422_v0 = vadd.f32 %v4421_v26, %v3355_v46  ;;  %v7922_v26 = vld [vmem:[#allocation36_spill] sm:$0xff] }
 0xa7c   :  { %v3328_v22 = vadd.f32 %v7922_v26, %v7552_v59 }
 0xa7d   :  { %v6155_v37 = vmul.f32 -1.442695, %v4435_v36 }
 0xa7e   :  { %v6765_v3 = vpop.eup %6764 }
 0xa7f   :  { %v6767_v42 = vpop.eup %6766  ;;  %v4441_v50 = vadd.f32 1.0, %v6765_v3  ;;  %6768 = vpow2.f32 %v6155_v37 }
 0xa80   :  { %v4460_v29 = vadd.f32 1.0, %v6767_v42  ;;  %v7923_v42 = vld [vmem:[#allocation38_spill] sm:$0xff] }
 0xa81   :  { %6770 = vrcp.f32 %v4441_v50  ;;  %v4453_v52 = vand.u32 2147483648, %v4441_v50  ;;  %v4451_v10 = vand.u32 2147483647, %v4441_v50  ;;  %vm4447_vm1 = vweird.f32 %v4441_v50 }
 0xa82   :  { %6772 = vrcp.f32 %v4460_v29  ;;  %v4423_v62 = vpop.f32.mrf.mxu2  ;;  %v4436_v34 = vpop.f32.mrf.mxu3  ;;  %v4472_v8 = vand.u32 2147483648, %v4460_v29  ;;  %v4470_v47 = vand.u32 2147483647, %v4460_v29  ;;  %vm4466_vm2 = vweird.f32 %v4460_v29 }
 0xa83   :  { %v4454_v1 = vor.u32 1.1754944e-38, %v4453_v52  ;;  %vm4452_vm4 = vcmp.eq.f32.partialorder %v4451_v10, 8.507059e+37 }
 0xa84   :  { %v4473_v54 = vor.u32 1.1754944e-38, %v4472_v8  ;;  %vm4471_vm5 = vcmp.eq.f32.partialorder %v4470_v47, 8.507059e+37 }
 0xa85   :  { %v6769_v24 = vpop.eup %6768 }
 0xa86   :  { %v4480_v33 = vadd.f32 1.0, %v6769_v24 }
 0xa87   :  { %v6771_v15 = vpop.eup %6770 }
 0xa88   :  { %v6773_v44 = vpop.eup %6772  ;;  %v4443_v16 = vmul.f32 %v6771_v15, %v4441_v50  ;;  %6774 = vrcp.f32 %v4480_v33  ;;  %vm4448_vm15 = vweird.f32 %v6771_v15  ;;  %v4492_v45 = vand.u32 2147483648, %v4480_v33 }
 0xa89   :  { %v4462_v9 = vmul.f32 %v6773_v44, %v4460_v29  ;;  %6776 = vtanh.f32 %v4422_v0  ;;  %vm4467_vm0 = vweird.f32 %v6773_v44  ;;  %vm4449_vm13 = vmor %vm4447_vm1, %vm4448_vm15  ;;  %vm4486_vm8 = vweird.f32 %v4480_v33 }
 0xa8a   :  { %v4444_v53 = vsub.f32 1.0, %v4443_v16  ;;  %vm4468_vm3 = vmor %vm4466_vm2, %vm4467_vm0  ;;  %v4490_v61 = vand.u32 2147483647, %v4480_v33  ;;  %v4493_v38 = vor.u32 1.1754944e-38, %v4492_v45  ;;  %v3386_v50 = vadd.f32 %v7923_v42, %v7560_v57 }
 0xa8b   :  { %v4463_v49 = vsub.f32 1.0, %v4462_v9  ;;  %v7924_v9 = vld [vmem:[#allocation37_spill] sm:$0xff] }
 0xa8c   :  { %v4445_v51 = vmul.f32 %v6771_v15, %v4444_v53  ;;  %vm4491_vm10 = vcmp.eq.f32.partialorder %v4490_v61, 8.507059e+37  ;;  %v3357_v57 = vadd.f32 %v7924_v9, %v7899_v17 }
 0xa8d   :  { %v4464_v56 = vmul.f32 %v6773_v44, %v4463_v49 }
 0xa8e   :  { %v6775_v5 = vpop.eup %6774  ;;  %v4446_v35 = vadd.f32 %v6771_v15, %v4445_v51 }
 0xa8f   :  { %v4465_v60 = vadd.f32 %v6773_v44, %v4464_v56  ;;  %v4482_v55 = vmul.f32 %v6775_v5, %v4480_v33  ;;  %v6777_v12 = vpop.eup %6776  ;;  %vm4487_vm7 = vweird.f32 %v6775_v5 }
 0xa90   :  { %v4450_v41 = vsel %vm4449_vm13, %v6771_v15, %v4446_v35  ;;  %vm4488_vm9 = vmor %vm4486_vm8, %vm4487_vm7 }
 0xa91   :  { %v4455_v32 = vsel %vm4452_vm4, %v4454_v1, %v4450_v41  ;;  %v4469_v43 = vsel %vm4468_vm3, %v6773_v44, %v4465_v60  ;;  %v4483_v11 = vsub.f32 1.0, %v4482_v55 }
 0xa92   :  { %v4474_v18 = vsel %vm4471_vm5, %v4473_v54, %v4469_v43  ;;  %v4497_v20 = vmul.f32 %v6777_v12, %v4455_v32 }
 0xa93   :  { %v4496_v31 = vmul.f32 %v4474_v18, %v7822_v23  ;;  %v4484_v6 = vmul.f32 %v6775_v5, %v4483_v11 }
 0xa95   :  { %v4498_v58 = vadd.f32 %v4497_v20, %v4496_v31  ;;  %v4485_v14 = vadd.f32 %v6775_v5, %v4484_v6 }
 0xa97   :  { %6778 = vtanh.f32 %v4498_v58  ;;  %v7839_v25 = vsel %vm4506_vm6, %v4498_v58, %v7822_v23  ;;  %v4489_v48 = vsel %vm4488_vm9, %v6775_v5, %v4485_v14  ;;  %v7921_v23 = vld [vmem:[#allocation35_spill] sm:$0xff] }
 0xa98   :  { %v4494_v21 = vsel %vm4491_vm10, %v4493_v38, %v4489_v48  ;;  %v3299_v27 = vadd.f32 %v7921_v23, %v7550_v2  ;;  %v4633_v23 = vpop.permute.xlu0 %4632 }
 0xa99   :  { %vm4634_vm7 = vcmp.eq.s32.totalorder %v4633_v23, 1 }
 0xa9d   :  { %v6779_v40 = vpop.eup %6778 }
 0xa9e   :  { %v4500_v30 = vmul.f32 %v6779_v40, %v4494_v21 }
 0xaa0   :  { %v7842_v63 = vsel %vm4506_vm6, %v4500_v30, %v7825_v28 }
 0xaa1   :  { %v4509_v4 = vpack.c.bf16 %v7842_v63, %v7842_v63 }
 0xaa3   :  { %4522 = vmatmul.bf16.vlgmr.msrb.gmra.mxu0 %v4509_v4  ;;  %4535 = vmatmul.bf16.vlgmr.msrb.gmra.mxu1 %v4509_v4 }
 0xaa4   :  { %4548 = vmatmul.bf16.vlgmr.msrb.gmra.mxu2 %v4509_v4  ;;  %4561 = vmatmul.bf16.vlgmr.msrb.gmra.mxu3 %v4509_v4 }
 0xb20   :  { %v4523_v36 = vpop.f32.mrf.mxu0  ;;  %v4536_v13 = vpop.f32.mrf.mxu1 }
 0xb21   :  { %v4524_v19 = vadd.f32 %v4523_v36, %v3299_v27  ;;  %v4537_v37 = vadd.f32 %v4536_v13, %v3328_v22 }
 0xb23   :  { %v6156_v3 = vmul.f32 -1.442695, %v4524_v19  ;;  %v6157_v28 = vmul.f32 -1.442695, %v4537_v37 }
 0xb25   :  { %6780 = vpow2.f32 %v6156_v3 }
 0xb26   :  { %6782 = vpow2.f32 %v6157_v28 }
 0xb27   :  { %v4549_v29 = vpop.f32.mrf.mxu2  ;;  %v4562_v62 = vpop.f32.mrf.mxu3 }
 0xb28   :  { %v4563_v34 = vadd.f32 %v4562_v62, %v3386_v50  ;;  %v4525_v24 = vpop.f32.mrf.mxu0  ;;  %v4538_v7 = vpop.f32.mrf.mxu1  ;;  %v4550_v52 = vadd.f32 %v4549_v29, %v3357_v57 }
 0xb2a   :  { %v6158_v2 = vmul.f32 -1.442695, %v4563_v34 }
 0xb2b   :  { %v6781_v46 = vpop.eup %6780 }
 0xb2c   :  { %v6783_v33 = vpop.eup %6782  ;;  %v4569_v59 = vadd.f32 1.0, %v6781_v46  ;;  %6784 = vpow2.f32 %v6158_v2 }
 0xb2d   :  { %v4588_v15 = vadd.f32 1.0, %v6783_v33 }
 0xb2e   :  { %6786 = vrcp.f32 %v4569_v59  ;;  %v4581_v5 = vand.u32 2147483648, %v4569_v59  ;;  %v4579_v60 = vand.u32 2147483647, %v4569_v59  ;;  %vm4575_vm14 = vweird.f32 %v4569_v59 }
 0xb2f   :  { %6788 = vrcp.f32 %v4588_v15  ;;  %v4551_v0 = vpop.f32.mrf.mxu2  ;;  %v4564_v44 = vpop.f32.mrf.mxu3  ;;  %v4600_v35 = vand.u32 2147483648, %v4588_v15  ;;  %v4598_v54 = vand.u32 2147483647, %v4588_v15  ;;  %vm4594_vm15 = vweird.f32 %v4588_v15 }
 0xb30   :  { %v4582_v12 = vor.u32 1.1754944e-38, %v4581_v5  ;;  %vm4580_vm2 = vcmp.eq.f32.partialorder %v4579_v60, 8.507059e+37 }
 0xb31   :  { %v4601_v11 = vor.u32 1.1754944e-38, %v4600_v35  ;;  %vm4599_vm13 = vcmp.eq.f32.partialorder %v4598_v54, 8.507059e+37 }
 0xb32   :  { %v6785_v16 = vpop.eup %6784 }
 0xb33   :  { %v4608_v53 = vadd.f32 1.0, %v6785_v16 }
 0xb34   :  { %v6787_v49 = vpop.eup %6786 }
 0xb35   :  { %v6789_v8 = vpop.eup %6788  ;;  %v4571_v51 = vmul.f32 %v6787_v49, %v4569_v59  ;;  %6790 = vrcp.f32 %v4608_v53  ;;  %vm4576_vm11 = vweird.f32 %v6787_v49  ;;  %v4620_v40 = vand.u32 2147483648, %v4608_v53 }
 0xb36   :  { %v4590_v10 = vmul.f32 %v6789_v8, %v4588_v15  ;;  %6792 = vtanh.f32 %v4550_v52  ;;  %vm4595_vm12 = vweird.f32 %v6789_v8  ;;  %vm4577_vm0 = vmor %vm4575_vm14, %vm4576_vm11  ;;  %vm4614_vm4 = vweird.f32 %v4608_v53 }
 0xb37   :  { %v4572_v56 = vsub.f32 1.0, %v4571_v51  ;;  %vm4596_vm1 = vmor %vm4594_vm15, %vm4595_vm12  ;;  %v4618_v21 = vand.u32 2147483647, %v4608_v53  ;;  %v4621_v4 = vor.u32 1.1754944e-38, %v4620_v40 }
 0xb38   :  { %v4591_v47 = vsub.f32 1.0, %v4590_v10 }
 0xb39   :  { %v4573_v1 = vmul.f32 %v6787_v49, %v4572_v56  ;;  %vm4619_vm6 = vcmp.eq.f32.partialorder %v4618_v21, 8.507059e+37 }
 0xb3a   :  { %v4592_v55 = vmul.f32 %v6789_v8, %v4591_v47 }
 0xb3b   :  { %v6791_v41 = vpop.eup %6790  ;;  %v4574_v17 = vadd.f32 %v6787_v49, %v4573_v1 }
 0xb3c   :  { %v4593_v32 = vadd.f32 %v6789_v8, %v4592_v55  ;;  %v4610_v43 = vmul.f32 %v6791_v41, %v4608_v53  ;;  %v6793_v20 = vpop.eup %6792  ;;  %vm4615_vm3 = vweird.f32 %v6791_v41 }
 0xb3d   :  { %v4578_v18 = vsel %vm4577_vm0, %v6787_v49, %v4574_v17  ;;  %vm4616_vm5 = vmor %vm4614_vm4, %vm4615_vm3 }
 0xb3e   :  { %v4583_v39 = vsel %vm4580_vm2, %v4582_v12, %v4578_v18  ;;  %v4597_v31 = vsel %vm4596_vm1, %v6789_v8, %v4593_v32  ;;  %v4611_v6 = vsub.f32 1.0, %v4610_v43 }
 0xb3f   :  { %v4602_v58 = vsel %vm4599_vm13, %v4601_v11, %v4597_v31  ;;  %v4625_v14 = vmul.f32 %v6793_v20, %v4583_v39 }
 0xb40   :  { %v4624_v45 = vmul.f32 %v4602_v58, %v7839_v25  ;;  %v4612_v61 = vmul.f32 %v6791_v41, %v4611_v6 }
 0xb42   :  { %v4626_v48 = vadd.f32 %v4625_v14, %v4624_v45  ;;  %v4613_v38 = vadd.f32 %v6791_v41, %v4612_v61 }
 0xb44   :  { %6794 = vtanh.f32 %v4626_v48  ;;  %v4617_v30 = vsel %vm4616_vm5, %v6791_v41, %v4613_v38 }
 0xb45   :  { %v4622_v27 = vsel %vm4619_vm6, %v4621_v4, %v4617_v30 }
 0xb4a   :  { %v6795_v25 = vpop.eup %6794 }
 0xb4b   :  { %v4628_v26 = vmul.f32 %v6795_v25, %v4622_v27 }
 0xb4d   :  { %v4635_v22 = vsel %vm4634_vm7, %v4628_v26, %v7842_v63 }
 0xb4e   :  { %4636 = vst [vmem:[#allocation10] sm:$0xff] %v4635_v22 }
 0xb4f   :  { %4647 = dma.vmem_to_hbm [thread:$0]  %s4643_s18, 128, %s4645_s21, [#allocation6]  }
 0xb50   :  { %6897 = dma.done.wait [#allocation6], 128  }
 0xb51   :  { %6898 = vsyncadd [#allocation6], 4294967168 }
 0xb52   :  { %4652 = vsyncpa [#allocation5], 1 }
 0xb53   :  { %4653 = vsyncpa [#allocation8], 1 }
 0xb54   :  { %4654 = vsyncpa [#allocation6], 1 }

</bundles_post_ra>
